<compile_context>
chip_gen: v7x
topology: tpu7x:2x2x1
jax: 0.10.0
libtpu: 0.0.40
codegen_flags: <defaults>
</compile_context>

<pallas_src>
import numpy as np
import jax
import jax.numpy as jnp
from jax.experimental import pallas as pl
from jax.experimental.pallas import tpu as pltpu


def _round_up(v, m):
    return ((v + m - 1) // m) * m


def _choose_row_tile(M, cap=2048, step_penalty_rows=512):
    """Row tile (multiple of 128, <= cap) balancing padded rows vs grid steps."""
    Mr = _round_up(M, 128)
    if Mr <= cap:
        return Mr
    best_tm, best_cost = None, None
    for tm in range(cap, 0, -128):          # descending: ties -> larger tile
        mpad = _round_up(M, tm)
        cost = mpad + (mpad // tm) * step_penalty_rows
        if best_cost is None or cost < best_cost:
            best_tm, best_cost = tm, cost
    return best_tm


def _heads_kernel(x_ref, w1t_ref, b1_ref, w2t_ref, b2_ref, o_ref):
    # x_ref:   (Dp, tm)              bf16  transposed feature tile (shared by all heads)
    # w1t_ref: (n_pred, Dp, Dp)      bf16  first linear, transposed, zero-padded (resident)
    # b1_ref:  (n_pred, Dp, 1)       f32
    # w2t_ref: (n_pred, out_ch, Dp)  bf16  second linear, transposed (resident)
    # b2_ref:  (n_pred, out_ch, 1)   f32
    # o_ref:   (n_pred, out_ch, tm)        lane-dense output tile
    xt = x_ref[...]
    n_pred = w1t_ref.shape[0]
    for i in range(n_pred):                              # static unroll, n_pred small
        h = jnp.dot(w1t_ref[i], xt, preferred_element_type=jnp.float32)
        h = jnp.maximum(h + b1_ref[i], 0.0).astype(jnp.bfloat16)     # (Dp, tm)
        o = jnp.dot(w2t_ref[i], h, preferred_element_type=jnp.float32)
        o_ref[i] = (o + b2_ref[i]).astype(o_ref.dtype)               # (out_ch, tm)


def init_params(key, hid_ch, out_ch, n_pred):
    """Synthetic params: packed/transposed/zero-padded for the kernel + raw f32.

    Invariant the kernel relies on: every padded entry of W1T / W2T / b1
    (feature rows/cols >= hid_ch+i for head i, and rows D..Dp) is EXACTLY zero,
    so the unused y[..., i:] features and the feature padding cannot leak
    through the ReLU.
    """
    D = hid_ch + n_pred
    Dp = _round_up(D, 16)                    # bf16 sublane-packing granularity (NOT 128)

    W1T = np.zeros((n_pred, Dp, Dp), np.float32)
    b1p = np.zeros((n_pred, Dp, 1), np.float32)
    W2T = np.zeros((n_pred, out_ch, Dp), np.float32)
    b2p = np.zeros((n_pred, out_ch, 1), np.float32)
    raw = []

    for i in range(n_pred):
        d = hid_ch + i
        key, k1, k2, k3, k4 = jax.random.split(key, 5)
        # x @ W convention (PyTorch Linear would be x @ weight.T)
        w1 = jax.random.normal(k1, (d, d), jnp.float32) / np.sqrt(d)
        b1 = jax.random.normal(k2, (d,), jnp.float32) * 0.1
        w2 = jax.random.normal(k3, (d, out_ch), jnp.float32) / np.sqrt(d)
        b2 = jax.random.normal(k4, (out_ch,), jnp.float32) * 0.1
        raw.append((w1, b1, w2, b2))
        W1T[i, :d, :d] = np.asarray(w1).T
        b1p[i, :d, 0] = np.asarray(b1)       # padding of b1 MUST stay zero (ReLU leak)
        W2T[i, :, :d] = np.asarray(w2).T
        b2p[i, :, 0] = np.asarray(b2)

    packed = {
        "Dp": Dp,
        "W1T": jnp.asarray(W1T).astype(jnp.bfloat16),
        "b1": jnp.asarray(b1p),              # f32
        "W2T": jnp.asarray(W2T).astype(jnp.bfloat16),
        "b2": jnp.asarray(b2p),              # f32
    }
    return packed, raw


def factored_predictor_pallas(x, y, params, hid_ch, out_ch, n_pred,
                              out_dtype=jnp.float32, tm_cap=2048):
    N, _, H, W = x.shape
    D = hid_ch + n_pred
    Dp = params["Dp"]
    M = N * H * W

    tm = _choose_row_tile(M, tm_cap)
    Mpad = _round_up(M, tm)
    num_m = Mpad // tm

    # NCHW -> transposed feature matrix X^T (Dp, Mpad), rows flattened in
    # (N, H, W) order: only a cheap leading-axis permute with contiguous H*W
    # inner blocks, cast to bf16 first, feature dim padded only to Dp.
    xr = x.astype(jnp.bfloat16).reshape(N, hid_ch, H * W)
    yr = y.astype(jnp.bfloat16).reshape(N, n_pred, H * W)
    feats = jnp.concatenate([xr, yr], axis=1)                  # (N, D, H*W)
    XT = jnp.transpose(feats, (1, 0, 2)).reshape(D, M)
    XT = jnp.pad(XT, ((0, Dp - D), (0, Mpad - M)))

    # Derive the VMEM request from the actual per-step blocks (double-buffered
    # X/out tiles, resident-but-double-buffered weight stacks, f32+bf16 h).
    out_bytes = jnp.dtype(out_dtype).itemsize
    x_blk = Dp * tm * 2
    o_blk = n_pred * out_ch * tm * out_bytes
    w_res = n_pred * (Dp * Dp * 2 + Dp * 128 * 4 + out_ch * Dp * 2 + out_ch * 128 * 4)
    interm = Dp * tm * (4 + 2)
    vmem_limit = int(min(max(2 * (x_blk + o_blk + w_res) + interm + (2 << 20),
                             8 << 20), 48 << 20))

    flops = 2 * n_pred * Mpad * Dp * (Dp + out_ch)
    bytes_accessed = int(
        Dp * Mpad * 2                              # X^T (bf16)
        + n_pred * (Dp * Dp + out_ch * Dp) * 2     # W1T + W2T (bf16)
        + n_pred * (Dp + out_ch) * 4               # biases (f32)
        + n_pred * out_ch * Mpad * out_bytes)      # output

    out = pl.pallas_call(
        _heads_kernel,
        out_shape=jax.ShapeDtypeStruct((n_pred, out_ch, Mpad), out_dtype),
        grid_spec=pltpu.PrefetchScalarGridSpec(
            num_scalar_prefetch=0,
            grid=(num_m,),
            in_specs=[
                # X^T tile: new DMA per row tile, reused by all heads in-body.
                pl.BlockSpec((Dp, tm), lambda m: (0, m)),
                # Weight/bias stacks: constant index maps -> DMA'd once, resident.
                pl.BlockSpec((n_pred, Dp, Dp), lambda m: (0, 0, 0)),
                pl.BlockSpec((n_pred, Dp, 1), lambda m: (0, 0, 0)),
                pl.BlockSpec((n_pred, out_ch, Dp), lambda m: (0, 0, 0)),
                pl.BlockSpec((n_pred, out_ch, 1), lambda m: (0, 0, 0)),
            ],
            out_specs=pl.BlockSpec((n_pred, out_ch, tm), lambda m: (0, 0, m)),
        ),
        compiler_params=pltpu.CompilerParams(
            dimension_semantics=("parallel",),
            vmem_limit_bytes=vmem_limit,
        ),
        cost_estimate=pl.CostEstimate(
            flops=flops, transcendentals=0, bytes_accessed=bytes_accessed),
    )(XT, params["W1T"], params["b1"], params["W2T"], params["b2"])

    # (n_pred, out_ch, Mpad) -> (N, out_ch, n_pred, H, W).  Rows were flattened
    # in (N, H, W) order, so this permute only moves small leading axes; the
    # contiguous H*W inner blocks stay put.
    out = out[:, :, :M].reshape(n_pred, out_ch, N, H, W)
    return jnp.transpose(out, (2, 1, 0, 3, 4))


def factored_predictor_reference(x, y, raw_params, n_pred):
    # Pure-JAX reference with the same numerics as the kernel: inputs/weights/h
    # quantized to bf16, f32 accumulation, f32 biases.  (Deliberate deviation
    # from PyTorch's pure-f32 Linear numerics.)
    q = lambda a: a.astype(jnp.bfloat16).astype(jnp.float32)
    xt = q(jnp.transpose(x, (0, 3, 2, 1)))       # (N, W, H, hid_ch)
    yt = q(jnp.transpose(y, (0, 3, 2, 1)))       # (N, W, H, n_pred)
    outs = []
    for i in range(n_pred):
        w1, b1, w2, b2 = raw_params[i]
        inp = jnp.concatenate([xt, yt[..., :i]], axis=-1)
        h = jnp.maximum(inp @ q(w1) + b1, 0.0)
        outs.append(q(h) @ q(w2) + b2)
    out = jnp.stack(outs, axis=2)                # (N, W, n_pred, H, out_ch)
    return jnp.swapaxes(out, 1, -1)              # (N, out_ch, n_pred, H, W)


# TODO(synk): `sample()` (autoregressive Categorical sampling over heads) is
# host-side sequential control flow and is not implemented as a Pallas kernel;
# only forward() is.

if __name__ == "__main__":
    # M = 3*30*30 = 2700 -> tile sweep picks tm=1408, Mpad=2816, num_m=2,
    # exercising the multi-tile grid, row padding and the epilogue slice.
    N, hid_ch, out_ch, n_pred, H, W = 3, 32, 16, 4, 30, 30

    key = jax.random.PRNGKey(0)
    kp, kx, ky = jax.random.split(key, 3)
    params, raw = init_params(kp, hid_ch, out_ch, n_pred)

    x = jax.random.normal(kx, (N, hid_ch, H, W), jnp.float32)
    y = jax.random.normal(ky, (N, n_pred, H, W), jnp.float32)

    out = factored_predictor_pallas(x, y, params, hid_ch, out_ch, n_pred)
    out = jax.block_until_ready(out)

    ref = factored_predictor_reference(x, y, raw, n_pred)
    assert out.shape == (N, out_ch, n_pred, H, W), out.shape
    np.testing.assert_allclose(np.asarray(out), np.asarray(ref),
                               rtol=1e-2, atol=1e-2)
    print("KERNEL_OK")
</pallas_src>

<mosaic_0001>
module attributes {stable_mosaic.version = 11 : i64} {
  func.func @_heads_kernel(%arg0: i32, %arg1: memref<48x1408xbf16, #tpu.memory_space<vmem>>, %arg2: memref<4x48x48xbf16, #tpu.memory_space<vmem>>, %arg3: memref<4x48x1xf32, #tpu.memory_space<vmem>>, %arg4: memref<4x16x48xbf16, #tpu.memory_space<vmem>>, %arg5: memref<4x16x1xf32, #tpu.memory_space<vmem>>, %arg6: memref<4x16x1408xf32, #tpu.memory_space<vmem>>) attributes {dimension_semantics = [#tpu.dimension_semantics<parallel>], iteration_bounds = array<i64: 2>, scalar_prefetch = 0 : i64, scratch_operands = 0 : i64, tpu.core_type = #tpu.core_type<tc>, window_params = [{transform_indices = @transform_0, window_bounds = array<i64: 48, 1408>}, {pipeline_mode = #tpu.pipeline_mode<synchronous>, transform_indices = @transform_1, window_bounds = array<i64: 4, 48, 48>}, {pipeline_mode = #tpu.pipeline_mode<synchronous>, transform_indices = @transform_2, window_bounds = array<i64: 4, 48, 1>}, {pipeline_mode = #tpu.pipeline_mode<synchronous>, transform_indices = @transform_3, window_bounds = array<i64: 4, 16, 48>}, {pipeline_mode = #tpu.pipeline_mode<synchronous>, transform_indices = @transform_4, window_bounds = array<i64: 4, 16, 1>}, {transform_indices = @transform_5, window_bounds = array<i64: 4, 16, 1408>}]} {
    %c0 = arith.constant 0 : index
    %c0_0 = arith.constant 0 : index
    %0 = vector.load %arg1[%c0, %c0_0] : memref<48x1408xbf16, #tpu.memory_space<vmem>>, vector<48x1408xbf16>
    %c0_1 = arith.constant 0 : index
    %c0_2 = arith.constant 0 : index
    %c0_3 = arith.constant 0 : index
    %1 = vector.load %arg2[%c0_1, %c0_2, %c0_3] : memref<4x48x48xbf16, #tpu.memory_space<vmem>>, vector<1x48x48xbf16>
    %2 = vector.shape_cast %1 : vector<1x48x48xbf16> to vector<48x48xbf16>
    %cst = arith.constant dense<0.000000e+00> : vector<48x1408xf32>
    %3 = tpu.matmul %2, %0, %cst {dimension_numbers = #tpu.dot_dimension_numbers<[1], [0], [0], [1], [0, 0, 1, 1], [], []>} : vector<48x48xbf16>, vector<48x1408xbf16>, vector<48x1408xf32> -> vector<48x1408xf32>
    %c0_4 = arith.constant 0 : index
    %c0_5 = arith.constant 0 : index
    %c0_6 = arith.constant 0 : index
    %4 = vector.load %arg3[%c0_4, %c0_5, %c0_6] : memref<4x48x1xf32, #tpu.memory_space<vmem>>, vector<1x48x1xf32>
    %5 = vector.shape_cast %4 : vector<1x48x1xf32> to vector<48x1xf32>
    %6 = vector.broadcast %5 : vector<48x1xf32> to vector<48x1408xf32>
    %7 = arith.addf %3, %6 : vector<48x1408xf32>
    %cst_7 = arith.constant 0.000000e+00 : f32
    %8 = vector.broadcast %cst_7 : f32 to vector<48x1408xf32>
    %9 = arith.maximumf %7, %8 : vector<48x1408xf32>
    %10 = arith.truncf %9 : vector<48x1408xf32> to vector<48x1408xbf16>
    %c0_8 = arith.constant 0 : index
    %c0_9 = arith.constant 0 : index
    %c0_10 = arith.constant 0 : index
    %11 = vector.load %arg4[%c0_8, %c0_9, %c0_10] : memref<4x16x48xbf16, #tpu.memory_space<vmem>>, vector<1x16x48xbf16>
    %12 = vector.shape_cast %11 : vector<1x16x48xbf16> to vector<16x48xbf16>
    %cst_11 = arith.constant dense<0.000000e+00> : vector<16x1408xf32>
    %13 = tpu.matmul %12, %10, %cst_11 {dimension_numbers = #tpu.dot_dimension_numbers<[1], [0], [0], [1], [0, 0, 1, 1], [], []>} : vector<16x48xbf16>, vector<48x1408xbf16>, vector<16x1408xf32> -> vector<16x1408xf32>
    %c0_12 = arith.constant 0 : index
    %c0_13 = arith.constant 0 : index
    %c0_14 = arith.constant 0 : index
    %14 = vector.load %arg5[%c0_12, %c0_13, %c0_14] : memref<4x16x1xf32, #tpu.memory_space<vmem>>, vector<1x16x1xf32>
    %15 = vector.shape_cast %14 : vector<1x16x1xf32> to vector<16x1xf32>
    %16 = vector.broadcast %15 : vector<16x1xf32> to vector<16x1408xf32>
    %17 = arith.addf %13, %16 : vector<16x1408xf32>
    %c0_15 = arith.constant 0 : index
    %c0_16 = arith.constant 0 : index
    %c0_17 = arith.constant 0 : index
    %18 = vector.load %arg6[%c0_15, %c0_16, %c0_17] : memref<4x16x1408xf32, #tpu.memory_space<vmem>>, vector<1x16x1408xf32>
    %19 = vector.shape_cast %18 : vector<1x16x1408xf32> to vector<16x1408xf32>
    %20 = vector.shape_cast %17 : vector<16x1408xf32> to vector<1x16x1408xf32>
    tpu.vector_store %arg6[%c0_15, %c0_16, %c0_17], %20 {strides = array<i32>} : memref<4x16x1408xf32, #tpu.memory_space<vmem>>, vector<1x16x1408xf32>,
    %c1 = arith.constant 1 : index
    %c0_18 = arith.constant 0 : index
    %c0_19 = arith.constant 0 : index
    %21 = vector.load %arg2[%c1, %c0_18, %c0_19] : memref<4x48x48xbf16, #tpu.memory_space<vmem>>, vector<1x48x48xbf16>
    %22 = vector.shape_cast %21 : vector<1x48x48xbf16> to vector<48x48xbf16>
    %cst_20 = arith.constant dense<0.000000e+00> : vector<48x1408xf32>
    %23 = tpu.matmul %22, %0, %cst_20 {dimension_numbers = #tpu.dot_dimension_numbers<[1], [0], [0], [1], [0, 0, 1, 1], [], []>} : vector<48x48xbf16>, vector<48x1408xbf16>, vector<48x1408xf32> -> vector<48x1408xf32>
    %c1_21 = arith.constant 1 : index
    %c0_22 = arith.constant 0 : index
    %c0_23 = arith.constant 0 : index
    %24 = vector.load %arg3[%c1_21, %c0_22, %c0_23] : memref<4x48x1xf32, #tpu.memory_space<vmem>>, vector<1x48x1xf32>
    %25 = vector.shape_cast %24 : vector<1x48x1xf32> to vector<48x1xf32>
    %26 = vector.broadcast %25 : vector<48x1xf32> to vector<48x1408xf32>
    %27 = arith.addf %23, %26 : vector<48x1408xf32>
    %cst_24 = arith.constant 0.000000e+00 : f32
    %28 = vector.broadcast %cst_24 : f32 to vector<48x1408xf32>
    %29 = arith.maximumf %27, %28 : vector<48x1408xf32>
    %30 = arith.truncf %29 : vector<48x1408xf32> to vector<48x1408xbf16>
    %c1_25 = arith.constant 1 : index
    %c0_26 = arith.constant 0 : index
    %c0_27 = arith.constant 0 : index
    %31 = vector.load %arg4[%c1_25, %c0_26, %c0_27] : memref<4x16x48xbf16, #tpu.memory_space<vmem>>, vector<1x16x48xbf16>
    %32 = vector.shape_cast %31 : vector<1x16x48xbf16> to vector<16x48xbf16>
    %cst_28 = arith.constant dense<0.000000e+00> : vector<16x1408xf32>
    %33 = tpu.matmul %32, %30, %cst_28 {dimension_numbers = #tpu.dot_dimension_numbers<[1], [0], [0], [1], [0, 0, 1, 1], [], []>} : vector<16x48xbf16>, vector<48x1408xbf16>, vector<16x1408xf32> -> vector<16x1408xf32>
    %c1_29 = arith.constant 1 : index
    %c0_30 = arith.constant 0 : index
    %c0_31 = arith.constant 0 : index
    %34 = vector.load %arg5[%c1_29, %c0_30, %c0_31] : memref<4x16x1xf32, #tpu.memory_space<vmem>>, vector<1x16x1xf32>
    %35 = vector.shape_cast %34 : vector<1x16x1xf32> to vector<16x1xf32>
    %36 = vector.broadcast %35 : vector<16x1xf32> to vector<16x1408xf32>
    %37 = arith.addf %33, %36 : vector<16x1408xf32>
    %c1_32 = arith.constant 1 : index
    %c0_33 = arith.constant 0 : index
    %c0_34 = arith.constant 0 : index
    %38 = vector.load %arg6[%c1_32, %c0_33, %c0_34] : memref<4x16x1408xf32, #tpu.memory_space<vmem>>, vector<1x16x1408xf32>
    %39 = vector.shape_cast %38 : vector<1x16x1408xf32> to vector<16x1408xf32>
    %40 = vector.shape_cast %37 : vector<16x1408xf32> to vector<1x16x1408xf32>
    tpu.vector_store %arg6[%c1_32, %c0_33, %c0_34], %40 {strides = array<i32>} : memref<4x16x1408xf32, #tpu.memory_space<vmem>>, vector<1x16x1408xf32>,
    %c2 = arith.constant 2 : index
    %c0_35 = arith.constant 0 : index
    %c0_36 = arith.constant 0 : index
    %41 = vector.load %arg2[%c2, %c0_35, %c0_36] : memref<4x48x48xbf16, #tpu.memory_space<vmem>>, vector<1x48x48xbf16>
    %42 = vector.shape_cast %41 : vector<1x48x48xbf16> to vector<48x48xbf16>
    %cst_37 = arith.constant dense<0.000000e+00> : vector<48x1408xf32>
    %43 = tpu.matmul %42, %0, %cst_37 {dimension_numbers = #tpu.dot_dimension_numbers<[1], [0], [0], [1], [0, 0, 1, 1], [], []>} : vector<48x48xbf16>, vector<48x1408xbf16>, vector<48x1408xf32> -> vector<48x1408xf32>
    %c2_38 = arith.constant 2 : index
    %c0_39 = arith.constant 0 : index
    %c0_40 = arith.constant 0 : index
    %44 = vector.load %arg3[%c2_38, %c0_39, %c0_40] : memref<4x48x1xf32, #tpu.memory_space<vmem>>, vector<1x48x1xf32>
    %45 = vector.shape_cast %44 : vector<1x48x1xf32> to vector<48x1xf32>
    %46 = vector.broadcast %45 : vector<48x1xf32> to vector<48x1408xf32>
    %47 = arith.addf %43, %46 : vector<48x1408xf32>
    %cst_41 = arith.constant 0.000000e+00 : f32
    %48 = vector.broadcast %cst_41 : f32 to vector<48x1408xf32>
    %49 = arith.maximumf %47, %48 : vector<48x1408xf32>
    %50 = arith.truncf %49 : vector<48x1408xf32> to vector<48x1408xbf16>
    %c2_42 = arith.constant 2 : index
    %c0_43 = arith.constant 0 : index
    %c0_44 = arith.constant 0 : index
    %51 = vector.load %arg4[%c2_42, %c0_43, %c0_44] : memref<4x16x48xbf16, #tpu.memory_space<vmem>>, vector<1x16x48xbf16>
    %52 = vector.shape_cast %51 : vector<1x16x48xbf16> to vector<16x48xbf16>
    %cst_45 = arith.constant dense<0.000000e+00> : vector<16x1408xf32>
    %53 = tpu.matmul %52, %50, %cst_45 {dimension_numbers = #tpu.dot_dimension_numbers<[1], [0], [0], [1], [0, 0, 1, 1], [], []>} : vector<16x48xbf16>, vector<48x1408xbf16>, vector<16x1408xf32> -> vector<16x1408xf32>
    %c2_46 = arith.constant 2 : index
    %c0_47 = arith.constant 0 : index
    %c0_48 = arith.constant 0 : index
    %54 = vector.load %arg5[%c2_46, %c0_47, %c0_48] : memref<4x16x1xf32, #tpu.memory_space<vmem>>, vector<1x16x1xf32>
    %55 = vector.shape_cast %54 : vector<1x16x1xf32> to vector<16x1xf32>
    %56 = vector.broadcast %55 : vector<16x1xf32> to vector<16x1408xf32>
    %57 = arith.addf %53, %56 : vector<16x1408xf32>
    %c2_49 = arith.constant 2 : index
    %c0_50 = arith.constant 0 : index
    %c0_51 = arith.constant 0 : index
    %58 = vector.load %arg6[%c2_49, %c0_50, %c0_51] : memref<4x16x1408xf32, #tpu.memory_space<vmem>>, vector<1x16x1408xf32>
    %59 = vector.shape_cast %58 : vector<1x16x1408xf32> to vector<16x1408xf32>
    %60 = vector.shape_cast %57 : vector<16x1408xf32> to vector<1x16x1408xf32>
    tpu.vector_store %arg6[%c2_49, %c0_50, %c0_51], %60 {strides = array<i32>} : memref<4x16x1408xf32, #tpu.memory_space<vmem>>, vector<1x16x1408xf32>,
    %c3 = arith.constant 3 : index
    %c0_52 = arith.constant 0 : index
    %c0_53 = arith.constant 0 : index
    %61 = vector.load %arg2[%c3, %c0_52, %c0_53] : memref<4x48x48xbf16, #tpu.memory_space<vmem>>, vector<1x48x48xbf16>
    %62 = vector.shape_cast %61 : vector<1x48x48xbf16> to vector<48x48xbf16>
    %cst_54 = arith.constant dense<0.000000e+00> : vector<48x1408xf32>
    %63 = tpu.matmul %62, %0, %cst_54 {dimension_numbers = #tpu.dot_dimension_numbers<[1], [0], [0], [1], [0, 0, 1, 1], [], []>} : vector<48x48xbf16>, vector<48x1408xbf16>, vector<48x1408xf32> -> vector<48x1408xf32>
    %c3_55 = arith.constant 3 : index
    %c0_56 = arith.constant 0 : index
    %c0_57 = arith.constant 0 : index
    %64 = vector.load %arg3[%c3_55, %c0_56, %c0_57] : memref<4x48x1xf32, #tpu.memory_space<vmem>>, vector<1x48x1xf32>
    %65 = vector.shape_cast %64 : vector<1x48x1xf32> to vector<48x1xf32>
    %66 = vector.broadcast %65 : vector<48x1xf32> to vector<48x1408xf32>
    %67 = arith.addf %63, %66 : vector<48x1408xf32>
    %cst_58 = arith.constant 0.000000e+00 : f32
    %68 = vector.broadcast %cst_58 : f32 to vector<48x1408xf32>
    %69 = arith.maximumf %67, %68 : vector<48x1408xf32>
    %70 = arith.truncf %69 : vector<48x1408xf32> to vector<48x1408xbf16>
    %c3_59 = arith.constant 3 : index
    %c0_60 = arith.constant 0 : index
    %c0_61 = arith.constant 0 : index
    %71 = vector.load %arg4[%c3_59, %c0_60, %c0_61] : memref<4x16x48xbf16, #tpu.memory_space<vmem>>, vector<1x16x48xbf16>
    %72 = vector.shape_cast %71 : vector<1x16x48xbf16> to vector<16x48xbf16>
    %cst_62 = arith.constant dense<0.000000e+00> : vector<16x1408xf32>
    %73 = tpu.matmul %72, %70, %cst_62 {dimension_numbers = #tpu.dot_dimension_numbers<[1], [0], [0], [1], [0, 0, 1, 1], [], []>} : vector<16x48xbf16>, vector<48x1408xbf16>, vector<16x1408xf32> -> vector<16x1408xf32>
    %c3_63 = arith.constant 3 : index
    %c0_64 = arith.constant 0 : index
    %c0_65 = arith.constant 0 : index
    %74 = vector.load %arg5[%c3_63, %c0_64, %c0_65] : memref<4x16x1xf32, #tpu.memory_space<vmem>>, vector<1x16x1xf32>
    %75 = vector.shape_cast %74 : vector<1x16x1xf32> to vector<16x1xf32>
    %76 = vector.broadcast %75 : vector<16x1xf32> to vector<16x1408xf32>
    %77 = arith.addf %73, %76 : vector<16x1408xf32>
    %c3_66 = arith.constant 3 : index
    %c0_67 = arith.constant 0 : index
    %c0_68 = arith.constant 0 : index
    %78 = vector.load %arg6[%c3_66, %c0_67, %c0_68] : memref<4x16x1408xf32, #tpu.memory_space<vmem>>, vector<1x16x1408xf32>
    %79 = vector.shape_cast %78 : vector<1x16x1408xf32> to vector<16x1408xf32>
    %80 = vector.shape_cast %77 : vector<16x1408xf32> to vector<1x16x1408xf32>
    tpu.vector_store %arg6[%c3_66, %c0_67, %c0_68], %80 {strides = array<i32>} : memref<4x16x1408xf32, #tpu.memory_space<vmem>>, vector<1x16x1408xf32>,
    return
  }
  func.func @transform_0(%arg0: i32) -> (i32, i32) {
    %c0_i32 = arith.constant 0 : i32
    %c0_i32_0 = arith.constant 0 : i32
    return %c0_i32, %arg0 : i32, i32
  }
  func.func @transform_1(%arg0: i32) -> (i32, i32, i32) {
    %c0_i32 = arith.constant 0 : i32
    %c0_i32_0 = arith.constant 0 : i32
    %c0_i32_1 = arith.constant 0 : i32
    %c0_i32_2 = arith.constant 0 : i32
    return %c0_i32, %c0_i32_0, %c0_i32_1 : i32, i32, i32
  }
  func.func @transform_2(%arg0: i32) -> (i32, i32, i32) {
    %c0_i32 = arith.constant 0 : i32
    %c0_i32_0 = arith.constant 0 : i32
    %c0_i32_1 = arith.constant 0 : i32
    %c0_i32_2 = arith.constant 0 : i32
    return %c0_i32, %c0_i32_0, %c0_i32_1 : i32, i32, i32
  }
  func.func @transform_3(%arg0: i32) -> (i32, i32, i32) {
    %c0_i32 = arith.constant 0 : i32
    %c0_i32_0 = arith.constant 0 : i32
    %c0_i32_1 = arith.constant 0 : i32
    %c0_i32_2 = arith.constant 0 : i32
    return %c0_i32, %c0_i32_0, %c0_i32_1 : i32, i32, i32
  }
  func.func @transform_4(%arg0: i32) -> (i32, i32, i32) {
    %c0_i32 = arith.constant 0 : i32
    %c0_i32_0 = arith.constant 0 : i32
    %c0_i32_1 = arith.constant 0 : i32
    %c0_i32_2 = arith.constant 0 : i32
    return %c0_i32, %c0_i32_0, %c0_i32_1 : i32, i32, i32
  }
  func.func @transform_5(%arg0: i32) -> (i32, i32, i32) {
    %c0_i32 = arith.constant 0 : i32
    %c0_i32_0 = arith.constant 0 : i32
    %c0_i32_1 = arith.constant 0 : i32
    return %c0_i32, %c0_i32_0, %arg0 : i32, i32, i32
  }
}

</mosaic_0001>

<bundles_post_ra>
// kernel: tpu_custom_call.1
= control target key start
LH: loop header
LB: loop body
LE: loop exit
PB: predicated region body
PF: predicated region fallthrough
CT: control target
= control target key end

     0   :  { %10 = vsyncpa [#allocation3], 0  ;;  %s6001_s0 = inlined_call_operand.hbm [shape: bf16[48,2816], index: 0, kind: input, shape index: {}]   ;;  %s6002_s1 = inlined_call_operand.vmem [shape: bf16[4,48,48], index: 1, kind: input, shape index: {}]   ;;  %s6003_s2 = inlined_call_operand.vmem [shape: f32[4,48,1], index: 2, kind: input, shape index: {}]   ;;  %s6004_s3 = inlined_call_operand.vmem [shape: bf16[4,16,48], index: 3, kind: input, shape index: {}]   ;;  %s6005_s4 = inlined_call_operand.vmem [shape: f32[4,16,1], index: 4, kind: input, shape index: {}]   ;;  %s6006_s5 = inlined_call_operand.hbm [shape: f32[4,16,2816], index: 5, kind: output, shape index: {}]  }
   0x1   :  { %12 = vsyncpa [#allocation3 + $0x1], 0 }
   0x2   :  { %13 = vsyncpa [#allocation4], 0 }
   0x3   :  { %15 = vsyncpa [#allocation4 + $0x1], 0  ;;  %s4631_s18 = smov 0   ;;  %s4633_s19 = smov 0  }
   0x4   :  { %s4635_s20 = smov 0   ;;  %s4637_s21 = smov 0  }
   0x5 LB: > { %s4652_s22 = sadd.s32 4294967295, %s4588_s21   ;;  %s3901_s23 = sadd.s32 4294967294, %s4588_s21   ;;  %s4588_s21 = sphi %s4637_s21, %s6019_s21   ;;  %s4584_s20 = sphi %s4635_s20, %s6018_s20   ;;  %s4580_s19 = sphi %s4633_s19, %s6017_s19   ;;  %s4576_s18 = sphi %s4631_s18, %s6016_s18  }
   0x6   : > { %s4656_s24 = sadd.s32 1, %s4588_s21   ;;  %s28_s25 = sadd.s32 1, %s4584_s20 }
   0x7   : > { %s25_s26 = ssub.s32 %s4588_s21, %s4656_s24  ;;  %p35_p0 = scmp.ne.s32.totalorder %s4584_s20, %s4580_s19 }
   0x8   : > { %p26_p1 = scmp.eq.s32.totalorder %s25_s26, 0  ;;  %p36_p2 = scmp.eq.s32.totalorder %s4588_s21, 0 }
   0x9   : > { %p41_p3 = scmp.ne.s32.totalorder %s4580_s19, %s4576_s18  ;;  %p42_p4 = scmp.eq.s32.totalorder %s4652_s22, 0 }
   0xa   : > { %s4668_s27 = scalar_select %p26_p1, %s4584_s20, %s28_s25  }
   0xb   : > { %p37_p5 = por %p36_p2, %p35_p0  ;;  %p4670_p6 = por %p42_p4, %p41_p3 }
   0xc   : > { %p149_p7 = scmp.eq.s32.totalorder %s4652_s22, 1  ;;  %p155_p8 = scmp.eq.s32.totalorder %s3901_s23, 1 }
   0xd   : > { %p4337_p10 = scmp.lt.s32.totalorder %s4588_s21, 2  ;;  %s187_s6 = sand.u32 1, %s4584_s20  }
   0xe   : > { %p4677_p11 = por %p149_p7, %p35_p0  ;;  %p4681_p12 = por %p155_p8, %p41_p3 }
   0xf   : > { %s4168_s7 = smul.u32 704, %s4588_s21  ;;  %p4692_p13 = pnand %p4337_p10, %p37_p5 }
  0x10   : > { %s6009_s29 = scalar_select %p4677_p11, 1, 0 }
  0x11   : > { %s6010_s30 = scalar_select %p4681_p12, 1, 0 }
  0x12   : > { %s4322_s8 = smul.u32 264, %s187_s6  ;;  %s4690_s11 = scalar_lea.hbm %s6001_s0, %s4168_s7 }
  0x13   : > { %s4699_s15 = scalar_lea.sflag [#allocation3], %s187_s6  ;;  %s4492_s16 = scalar_lea.hbm %s4690_s11, 4224 }
  0x14   : > { %s191_s13 = scalar_lea.vmem [#allocation2], %s4322_s8  ;;  %p4493_p1 = scmp.ne.s32.totalorder %s4690_s11, %s4492_s16 }
  0x15   : > { %s198_s14 = sshll.u32 %s191_s13, 4  ;;  %p4494_p2 = pneg %p4692_p13  ;;  %s4696_s14 = int_to_ptr.vmem [resolvable:$true] %s198_s14 }
  0x16   : > { %s4497_s25 = scalar_lea.hbm %s6001_s0, 8448  ;;  %p4498_p5 = scmp.lt.u32.totalorder %s4690_s11, %s6001_s0 }
  0x17   : > { %p4495_p3 = pnand %p4494_p2, %p4493_p1  ;;  %p4499_p7 = scmp.lt.u32.totalorder %s4497_s25, %s4492_s16 }
  0x18   : > { %p4501_p10 = scmp.lt.u32.totalorder %s4492_s16, %s4690_s11 }
  0x19   : > { %p4496_p4 = pneg %p4495_p3  ;;  %p4500_p8 = por %p4499_p7, %p4498_p5 }
  0x1b   : > { %p4502_p9 = por %p4501_p10, %p4500_p8 }
  0x1d   : > { %p4503_p0 = pnand %p4502_p9, %p4496_p4 }
  0x1f   : > { %4506 = shalt.err (!%p4503_p0)
}
  0x20   : > { %s4507_s6 = scalar_lea.vmem %s4696_s14, 4224  ;;  %s4590_s8 = smov [#allocation2]  }
  0x21   : > { %p4508_p1 = scmp.ne.s32.totalorder %s4696_s14, %s4507_s6  ;;  %s4512_s9 = sshll.u32 %s4590_s8, 4  ;;  %s4513_s9 = int_to_ptr.vmem [resolvable:$false] %s4512_s9 }
  0x22   : > { %s4514_s10 = scalar_lea.vmem %s4513_s9, 8448  ;;  %p4515_p11 = scmp.lt.s32.totalorder %s4696_s14, %s4513_s9 }
  0x23   : > { %p4510_p3 = pnand %p4508_p1, %p4494_p2  ;;  %p4516_p5 = scmp.lt.s32.totalorder %s4514_s10, %s4507_s6 }
  0x25   : > { %p4511_p12 = pneg %p4510_p3  ;;  %p4517_p7 = por %p4516_p5, %p4515_p11 }
  0x27   : > { %p4518_p8 = pnand %p4517_p7, %p4511_p12 }
  0x29   : > { %4521 = shalt.err (!%p4518_p8)
}
  0x2a   : > { %s4591_s13 = smov 1408   ;;  %s4592_s16 = smov 704  }
  0x2b   : > { %s4593_s17 = smov 44   ;;  %p206_p9 = scmp.lt.s32.totalorder %s4588_s21, 3 }
  0x2c   : > { %4332 = dma.hbm_to_vmem [thread:$0]  (!%p4692_p13), %s4690_s11, 4224, %s4696_s14, %s4699_s15, %s4591_s13, %s4592_s16, %s4593_s17  }
  0x2d   : > { %p6012_p0 = scmp.ge.s32.totalorder %s4588_s21, 1 }
  0x2f   : > { %p207_p2 = pnand %p6012_p0, %p206_p9 }
  0x30   : > { %s4731_s23 = sand.u32 (!%p207_p2), 1, %s4580_s19  }
  0x31   : > { %210 = sbr.rel (%p207_p2) target bundleno = 1497 (0x5d9), region = 40  ;;  %s213_s26 = scalar_lea.sflag (!%p207_p2), [#allocation3], %s4731_s23 }
  0x32   : > { %s4323_s25 = smul.u32 (!%p207_p2), 264, %s4731_s23 }
  0x34   : > { %s4735_s7 = scalar_lea.vmem (!%p207_p2), [#allocation2], %s4323_s25 }
  0x38   : > { %4567 = dma.done.wait (%p4670_p6), %s213_s26, 4224  }
  0x39   : > { %4569 = vsyncadd (%p4670_p6), %s213_s26, 4294963072  ;;  %v4594_v0 = vmov 0   ;;  %v4382_v1 = vld [vmem:[%s4735_s7 + $0x4] ss:$44 sps:$4 sm:$0xff]   ;;  %v4384_v2 = vld [vmem:[%s4735_s7 + $0xc] ss:$44 sps:$4 sm:$0xff]  }
  0x3a   : > { %549 = vmatprep.mubr.bf16.mxu0 %v4594_v0  ;;  %612 = vmatprep.mubr.bf16.mxu1 %v4594_v0  ;;  %v4386_v3 = vld [vmem:[%s4735_s7] ss:$44 sps:$4 sm:$0xff]   ;;  %v4387_v4 = vld [vmem:[%s4735_s7 + $0x8] ss:$44 sps:$4 sm:$0xff]   ;;  %v4390_v6 = vld [vmem:[%s4735_s7 + $0x64] ss:$44 sps:$4 sm:$0xff]  }
  0x3b   : > { %4380 = vset.pattern.permute.xlu0 %v4594_v0  ;;  %4381 = vset.pattern.permute.xlu1 %v4594_v0  ;;  %v4388_v5 = vld [vmem:[%s4735_s7 + $0x5c] ss:$44 sps:$4 sm:$0xff]   ;;  %v4392_v7 = vld [vmem:[%s4735_s7 + $0x58] ss:$44 sps:$4 sm:$0xff]   ;;  %v4393_v8 = vld [vmem:[%s4735_s7 + $0x60] ss:$44 sps:$4 sm:$0xff]  }
  0x3c   : > { %517 = vmatprep.subr.bf16.mxu0 %v4382_v1  ;;  %580 = vmatprep.subr.bf16.mxu1 %v4384_v2  ;;  %v4394_v9 = vld [vmem:[%s4735_s7 + $0xb4] ss:$44 sps:$4 sm:$0xff]   ;;  %v4396_v10 = vld [vmem:[%s4735_s7 + $0xbc] ss:$44 sps:$4 sm:$0xff]   ;;  %v4399_v12 = vld [vmem:[%s4735_s7 + $0xb8] ss:$44 sps:$4 sm:$0xff]  }
  0x3d   : > { %518 = vmatpush1.bf16.msra.mxu0 %v4386_v3  ;;  %581 = vmatpush1.bf16.msra.mxu1 %v4387_v4  ;;  %v4398_v11 = vld [vmem:[%s4735_s7 + $0xb0] ss:$44 sps:$4 sm:$0xff]   ;;  %v4401_v13 = vld [vmem:[%s4735_s7 + $0x14] ss:$44 sps:$4 sm:$0xff]   ;;  %vm507_vm0 = vcmask 392192   ;;  %v4595_v31 = vmov 0.0  }
  0x3e   : > { %519 = vmatprep.subr.bf16.mxu0 %v4388_v5  ;;  %582 = vmatprep.subr.bf16.mxu1 %v4390_v6  ;;  %v4761_v14 = vld [vmem:[%s6002_s1] sm:$0xff]   ;;  %v4770_v17 = vld [vmem:[%s4735_s7 + $0x68] ss:$44 sps:$4 sm:$0xff]   ;;  %vm4596_vm1 = vmmov 0   ;;  %s4324_s10 = smul.u32 704, %s4731_s23  ;;  %p6013_p11 = scmp.ne.s32.totalorder %s6009_s29, 0 }
  0x3f   : > { %v4764_v15 = vld [vmem:[%s4735_s7 + $0x10] ss:$44 sps:$4 sm:$0xff]   ;;  %v4767_v16 = vld [vmem:[%s4735_s7 + $0x6c] ss:$44 sps:$4 sm:$0xff]   ;;  %v4785_v20 = vld [vmem:[%s4735_s7 + $0x74] ss:$44 sps:$4 sm:$0xff]  }
  0x40   : > { %v4773_v18 = vld [vmem:[%s4735_s7 + $0x1c] ss:$44 sps:$4 sm:$0xff]   ;;  %v4780_v19 = vld [vmem:[%s4735_s7 + $0x18] ss:$44 sps:$4 sm:$0xff]   ;;  %v4802_v23 = vld [vmem:[%s4735_s7 + $0xc0] ss:$44 sps:$4 sm:$0xff]  }
  0x41   : > { %520 = vmatpush1.bf16.msra.mxu0 %v4392_v7  ;;  %583 = vmatpush1.bf16.msra.mxu1 %v4393_v8  ;;  %v4790_v21 = vld [vmem:[%s4735_s7 + $0xc4] ss:$44 sps:$4 sm:$0xff]   ;;  %v4809_v25 = vld [vmem:[%s4735_s7 + $0xcc] ss:$44 sps:$4 sm:$0xff]   ;;  %v4821_v27 = vld [vmem:[%s4735_s7 + $0xc8] ss:$44 sps:$4 sm:$0xff]  }
  0x42   : > { %521 = vmatprep.subr.bf16.mxu0 %v4394_v9  ;;  %584 = vmatprep.subr.bf16.mxu1 %v4396_v10  ;;  %v4796_v22 = vld [vmem:[%s6002_s1 + $0x8] sm:$0xff]   ;;  %v4806_v24 = vld [vmem:[%s4735_s7 + $0x70] ss:$44 sps:$4 sm:$0xff]   ;;  %s5276_s13 = scalar_lea.vmem [#allocation5], %s4324_s10  ;;  %s4169_s28 = smul.u32 1408, %s4652_s22 }
  0x43   : > { %v4812_v26 = vld [vmem:[%s4735_s7 + $0x24] ss:$44 sps:$4 sm:$0xff]   ;;  %v4859_v36 = vld [vmem:[%s4735_s7 + $0x20] ss:$44 sps:$4 sm:$0xff]   ;;  %v4862_v37 = vld [vmem:[%s4735_s7 + $0x7c] ss:$44 sps:$4 sm:$0xff]  }
  0x44   : > { %v288_v28 = vld [vmem:[%s6003_s2] sm:$0xff]  ;;  %v290_v29 = vld [vmem:[%s6003_s2 + $0x10] sm:$0xff]  ;;  %v289_v32 = vld [vmem:[%s6003_s2 + $0x8] sm:$0xff]  ;;  %s3828_s11 = sshll.u32 %s5276_s13, 4  ;;  %s5949_s15 = scalar_lea.hbm %s6006_s5, %s4169_s28  ;;  %s5953_s11 = int_to_ptr.vmem [resolvable:$true] %s3828_s11 }
  0x45   : > { %522 = vmatpush1.bf16.msra.mxu0 %v4398_v11  ;;  %585 = vmatpush1.bf16.msra.mxu1 %v4399_v12  ;;  %v4836_v30 = vld [vmem:[%s6002_s1 + $0x10] sm:$0xff]   ;;  %v291_v33 = vld [vmem:[%s6003_s2 + $0x18] sm:$0xff]  ;;  %v292_v34 = vld [vmem:[%s6003_s2 + $0x20] sm:$0xff]  ;;  %s3815_s22 = scalar_lea.sflag [#allocation4], %s4731_s23  ;;  %s4522_s6 = scalar_lea.vmem %s5953_s11, 11264 }
  0x46   : > { %643 = vmatprep.subr.bf16.mxu0 %v4401_v13  ;;  %706 = vmatprep.subr.bf16.mxu1 %v4773_v18  ;;  %v293_v35 = vld [vmem:[%s6003_s2 + $0x28] sm:$0xff]  ;;  %v3973_v39 = vld [vmem:[%s6003_s2 + $0x30] sm:$0xff]  ;;  %v3974_v41 = vld [vmem:[%s6003_s2 + $0x38] sm:$0xff]  ;;  %p4523_p6 = scmp.ne.s32.totalorder %s5953_s11, %s4522_s6  ;;  %s4597_s8 = smov [#allocation5]  }
  0x47   : > { %296 = vperm.xlu0 %4380, %v288_v28   ;;  %306 = vperm.xlu1 %4381, %v290_v29   ;;  %v4865_v38 = vld [vmem:[%s4735_s7 + $0x28] ss:$44 sps:$4 sm:$0xff]   ;;  %v4871_v40 = vld [vmem:[%s4735_s7 + $0x78] ss:$44 sps:$4 sm:$0xff]   ;;  %v4886_v43 = vld [vmem:[%s4735_s7 + $0x80] ss:$44 sps:$4 sm:$0xff]  }
  0x48   : > { %3942 = vmatmul.mubr.msk.bf16.vlgmr.msra.gmra.mrb[0].mxu0 %vm507_vm0, %v4761_v14  ;;  %3945 = vmatmul.mubr.msk.bf16.vlgmr.msra.gmra.mrb[0].mxu1 %vm507_vm0, %v4761_v14  ;;  %v4881_v42 = vld [vmem:[%s4735_s7 + $0xd4] ss:$44 sps:$4 sm:$0xff]   ;;  %v4898_v45 = vld [vmem:[%s4735_s7 + $0xd0] ss:$44 sps:$4 sm:$0xff]   ;;  %v4902_v46 = vld [vmem:[%s4735_s7 + $0xd8] ss:$44 sps:$4 sm:$0xff]   ;;  %p4524_p12 = pnand %p4523_p6, %p6013_p11 }
  0x49   : > { %644 = vmatpush1.bf16.msra.mxu0 %v4764_v15  ;;  %559 = vmatprep.mubr.bf16.mxu0 %v4594_v0  ;;  %v3975_v44 = vld [vmem:[%s6003_s2 + $0x40] sm:$0xff]  ;;  %v3977_v47 = vld [vmem:[%s6003_s2 + $0x50] sm:$0xff]  ;;  %v3976_v48 = vld [vmem:[%s6003_s2 + $0x48] sm:$0xff]  ;;  %s4526_s9 = sshll.u32 %s4597_s8, 4  ;;  %s4527_s9 = int_to_ptr.vmem [resolvable:$false] %s4526_s9 }
  0x4a   : > { %622 = vmatprep.mubr.bf16.mxu1 %v4594_v0  ;;  %645 = vmatprep.subr.bf16.mxu0 %v4767_v16  ;;  %v4039_v49 = vld [vmem:[%s6003_s2 + $0x60] sm:$0xff]  ;;  %v3978_v50 = vld [vmem:[%s6003_s2 + $0x58] sm:$0xff]  ;;  %v4041_v51 = vld [vmem:[%s6003_s2 + $0x70] sm:$0xff]  ;;  %p4525_p13 = pneg %p4524_p12  ;;  %s4528_s10 = scalar_lea.vmem %s4527_s9, 22528 }
  0x4b   : > { %707 = vmatpush1.bf16.msra.mxu1 %v4780_v19  ;;  %301 = vperm.xlu0 %4380, %v289_v32   ;;  %v4040_v52 = vld [vmem:[%s6003_s2 + $0x68] sm:$0xff]  ;;  %v4043_v53 = vld [vmem:[%s6003_s2 + $0x80] sm:$0xff]  ;;  %v4042_v54 = vld [vmem:[%s6003_s2 + $0x78] sm:$0xff]  ;;  %p4529_p4 = scmp.lt.s32.totalorder %s5953_s11, %s4527_s9  ;;  %p4530_p10 = scmp.lt.s32.totalorder %s4528_s10, %s4522_s6 }
  0x4c   : > { %708 = vmatprep.subr.bf16.mxu1 %v4785_v20  ;;  %311 = vperm.xlu1 %4381, %v291_v33   ;;  %v4105_v55 = vld [vmem:[%s6003_s2 + $0x90] sm:$0xff]  ;;  %v4044_v56 = vld [vmem:[%s6003_s2 + $0x88] sm:$0xff]  ;;  %v4107_v57 = vld [vmem:[%s6003_s2 + $0xa0] sm:$0xff] }
  0x4d   : > { %646 = vmatpush1.bf16.msra.mxu0 %v4770_v17  ;;  %v4106_v58 = vld [vmem:[%s6003_s2 + $0x98] sm:$0xff]  ;;  %v4109_v59 = vld [vmem:[%s6003_s2 + $0xb0] sm:$0xff]  ;;  %v4108_v60 = vld [vmem:[%s6003_s2 + $0xa8] sm:$0xff]  ;;  %p4531_p1 = por %p4530_p10, %p4529_p4 }
  0x4e   : > { %647 = vmatprep.subr.bf16.mxu0 %v4790_v21  ;;  %v990_v61 = vld [vmem:[%s6005_s4] sm:$0xff]  ;;  %v4110_v62 = vld [vmem:[%s6003_s2 + $0xb8] sm:$0xff]  ;;  %v4002_v63 = vld [vmem:[%s6005_s4 + $0x10] sm:$0xff] }
  0x4f   : > { %709 = vmatpush1.bf16.msra.mxu1 %v4806_v24  ;;  %316 = vperm.xlu0 %4380, %v292_v34   ;;  %v991_v1 = vld [vmem:[%s6005_s4 + $0x8] sm:$0xff]  ;;  %v4068_v2 = vld [vmem:[%s6005_s4 + $0x20] sm:$0xff]  ;;  %v4003_v3 = vld [vmem:[%s6005_s4 + $0x18] sm:$0xff]  ;;  %p4532_p3 = pnand %p4531_p1, %p4525_p13 }
  0x50   : > { %3943 = vmatmul.mubr.msk.bf16.gmra.mrb[4].mxu0 %vm507_vm0, %v4796_v22  ;;  %3946 = vmatmul.mubr.msk.bf16.gmra.mrb[4].mxu1 %vm507_vm0, %v4796_v22  ;;  %v4134_v4 = vld [vmem:[%s6005_s4 + $0x30] sm:$0xff]  ;;  %v4069_v5 = vld [vmem:[%s6005_s4 + $0x28] sm:$0xff]  ;;  %v4135_v6 = vld [vmem:[%s6005_s4 + $0x38] sm:$0xff] }
  0x51   : > { %569 = vmatprep.mubr.bf16.mxu0 %v4594_v0  ;;  %632 = vmatprep.mubr.bf16.mxu1 %v4594_v0 }
  0x52   : > { %648 = vmatpush1.bf16.msra.mxu0 %v4802_v23  ;;  %710 = vmatprep.subr.bf16.mxu1 %v4809_v25 }
  0x53   : > { %769 = vmatprep.subr.bf16.mxu0 %v4812_v26  ;;  %711 = vmatpush1.bf16.msra.mxu1 %v4821_v27 }
  0x54   : > { %4210 = vmatprep.subr.bf16.mxu1 %v4595_v31  ;;  %321 = vperm.xlu1 %4381, %v293_v35  }
  0x55   : > { %1304 = vperm.xlu0 %4380, %v3973_v39  }
  0x58   : > { %3944 = vmatmul.mubr.msk.bf16.gmra.mrb[8].mxu0 %vm507_vm0, %v4836_v30  ;;  %3947 = vmatmul.mubr.msk.bf16.gmra.mrb[8].mxu1 %vm507_vm0, %v4836_v30 }
  0x59   : > { %675 = vmatprep.mubr.bf16.mxu0 %v4594_v0  ;;  %738 = vmatprep.mubr.bf16.mxu1 %v4594_v0 }
  0x5a   : > { %1309 = vperm.xlu1 %4381, %v3974_v41   ;;  %1314 = vperm.xlu0 %4380, %v3975_v44  }
  0x5e   : > { %1324 = vperm.xlu0 %4380, %v3977_v47   ;;  %1319 = vperm.xlu1 %4381, %v3976_v48  }
  0x60   : > { %3948 = vmatmul.mubr.msk.bf16.vlgmr.msra.gmra.mrb[12].mxu0 %vm507_vm0, %v4761_v14  ;;  %3951 = vmatmul.mubr.msk.bf16.vlgmr.msra.gmra.mrb[12].mxu1 %vm507_vm0, %v4761_v14 }
  0x61   : > { %770 = vmatpush1.bf16.msra.mxu0 %v4859_v36  ;;  %685 = vmatprep.mubr.bf16.mxu0 %v4594_v0 }
  0x62   : > { %748 = vmatprep.mubr.bf16.mxu1 %v4594_v0  ;;  %771 = vmatprep.subr.bf16.mxu0 %v4862_v37 }
  0x63   : > { %4211 = vmatpush3.bf16.msra.mxu1 %v4865_v38  ;;  %2146 = vperm.xlu0 %4380, %v4039_v49  }
  0x64   : > { %4212 = vmatprep.subr.bf16.mxu1 %v4595_v31  ;;  %1329 = vperm.xlu1 %4381, %v3978_v50  }
  0x65   : > { %772 = vmatpush1.bf16.msra.mxu0 %v4871_v40 }
  0x66   : > { %773 = vmatprep.subr.bf16.mxu0 %v4881_v42 }
  0x67   : > { %4213 = vmatpush3.bf16.msra.mxu1 %v4886_v43  ;;  %2156 = vperm.xlu0 %4380, %v4041_v51  }
  0x68   : > { %3949 = vmatmul.mubr.msk.bf16.gmra.mrb[16].mxu0 %vm507_vm0, %v4796_v22  ;;  %3952 = vmatmul.mubr.msk.bf16.gmra.mrb[16].mxu1 %vm507_vm0, %v4796_v22 }
  0x69   : > { %695 = vmatprep.mubr.bf16.mxu0 %v4594_v0  ;;  %758 = vmatprep.mubr.bf16.mxu1 %v4594_v0 }
  0x6a   : > { %774 = vmatpush1.bf16.msra.mxu0 %v4898_v45  ;;  %4214 = vmatprep.subr.bf16.mxu1 %v4595_v31 }
  0x6b   : > { %4215 = vmatpush3.bf16.msra.mxu1 %v4902_v46  ;;  %2151 = vperm.xlu1 %4381, %v4040_v52  }
  0x6c   : > { %2166 = vperm.xlu0 %4380, %v4043_v53  }
  0x6f   : > { %2161 = vperm.xlu1 %4381, %v4042_v54  }
  0x70   : > { %3950 = vmatmul.mubr.msk.bf16.gmra.mrb[20].mxu0 %vm507_vm0, %v4836_v30  ;;  %3953 = vmatmul.mubr.msk.bf16.gmra.mrb[20].mxu1 %vm507_vm0, %v4836_v30 }
  0x71   : > { %801 = vmatprep.mubr.bf16.mxu0 %v4594_v0  ;;  %4216 = vmatprep.mubr.msk.bf16.mxu1 %vm4596_vm1, %v4595_v31 }
  0x72   : > { %2988 = vperm.xlu0 %4380, %v4105_v55  }
  0x73   : > { %2171 = vperm.xlu1 %4381, %v4044_v56  }
  0x76   : > { %2998 = vperm.xlu0 %4380, %v4107_v57  }
  0x77   : > { %2993 = vperm.xlu1 %4381, %v4106_v58  }
  0x78   : > { %3954 = vmatmul.mubr.msk.bf16.vlgmr.msra.gmra.mrb[24].mxu0 %vm507_vm0, %v4761_v14  ;;  %4217 = vmatmul.mubr.msk.bf16.vlgmr.msra.gmra.mrb[24].mxu1 %vm507_vm0, %v4761_v14 }
  0x79   : > { %811 = vmatprep.mubr.bf16.mxu0 %v4594_v0  ;;  %4220 = vmatprep.mubr.msk.bf16.mxu1 %vm4596_vm1, %v4595_v31 }
  0x7a   : > { %3008 = vperm.xlu0 %4380, %v4109_v59  }
  0x7b   : > { %3003 = vperm.xlu1 %4381, %v4108_v60  }
  0x7e   : > { %994 = vperm.xlu0 %4380, %v990_v61  }
  0x7f   : > { %3013 = vperm.xlu1 %4381, %v4110_v62  }
  0x80   : > { %3955 = vmatmul.mubr.msk.bf16.gmra.mrb[28].mxu0 %vm507_vm0, %v4796_v22  ;;  %4221 = vmatmul.mubr.msk.bf16.gmra.mrb[28].mxu1 %vm507_vm0, %v4796_v22 }
  0x81   : > { %821 = vmatprep.mubr.bf16.mxu0 %v4594_v0  ;;  %4224 = vmatprep.mubr.msk.bf16.mxu1 %vm4596_vm1, %v4595_v31 }
  0x82   : > { %1835 = vperm.xlu0 %4380, %v4002_v63  }
  0x83   : > { %999 = vperm.xlu1 %4381, %v991_v1  }
  0x86   : > { %2677 = vperm.xlu0 %4380, %v4068_v2  }
  0x87   : > { %1840 = vperm.xlu1 %4381, %v4003_v3  }
  0x88   : > { %3956 = vmatmul.mubr.msk.bf16.gmra.mrb[32].mxu0 %vm507_vm0, %v4836_v30  ;;  %4225 = vmatmul.mubr.msk.bf16.gmra.mrb[32].mxu1 %vm507_vm0, %v4836_v30 }
  0x89   : > { %1042 = vmatprep.mubr.bf16.mxu0 %v4594_v0  ;;  %1085 = vmatprep.mubr.bf16.mxu1 %v4594_v0 }
  0x8a   : > { %3519 = vperm.xlu0 %4380, %v4134_v4  }
  0x8b   : > { %2682 = vperm.xlu1 %4381, %v4069_v5  }
  0x8f   : > { %3524 = vperm.xlu1 %4381, %v4135_v6  }
  0xc6   : > { %v5009_v7 = vpop.permute.xlu0 %296  ;;  %v5013_v9 = vpop.permute.xlu1 %306 }
  0xca   : > { %v5011_v8 = vpop.permute.xlu0 %301 }
  0xcb   : > { %v5023_v55 = vpop.permute.xlu1 %311 }
 0x11b   : > { %v551_v10 = vpop.f32.mrb[0].mxu0  ;;  %v614_v11 = vpop.f32.mrb[0].mxu1 }
 0x11c   : > { %v552_v12 = vadd.f32 %v551_v10, %v5009_v7  ;;  %v553_v13 = vpop.f32.mrb[1].mxu0  ;;  %v615_v14 = vadd.f32 %v614_v11, %v5009_v7  ;;  %v616_v22 = vpop.f32.mrb[1].mxu1 }
 0x11d   : > { %v554_v28 = vadd.f32 %v553_v13, %v5009_v7  ;;  %v555_v29 = vpop.f32.mrb[2].mxu0  ;;  %v617_v30 = vadd.f32 %v616_v22, %v5009_v7  ;;  %v618_v32 = vpop.f32.mrb[2].mxu1 }
 0x11e   : > { %v556_v33 = vadd.f32 %v555_v29, %v5011_v8  ;;  %v557_v34 = vpop.f32.mrb[3].mxu0  ;;  %v891_v35 = vmax.f32 %v615_v14, 0.0  ;;  %v619_v39 = vadd.f32 %v618_v32, %v5011_v8  ;;  %v620_v41 = vpop.f32.mrb[3].mxu1  ;;  %v889_v49 = vmax.f32 %v552_v12, 0.0 }
 0x11f   : > { %v558_v44 = vadd.f32 %v557_v34, %v5011_v8  ;;  %v892_v47 = vmax.f32 %v617_v30, 0.0  ;;  %v621_v48 = vadd.f32 %v620_v41, %v5011_v8  ;;  %v890_v52 = vmax.f32 %v554_v28, 0.0  ;;  %v5033_v41 = vpop.permute.xlu0 %316 }
 0x120   : > { %v900_v50 = vmax.f32 %v556_v33, 0.0  ;;  %v902_v51 = vmax.f32 %v619_v39, 0.0 }
 0x121   : > { %v901_v53 = vmax.f32 %v558_v44, 0.0  ;;  %v903_v54 = vmax.f32 %v621_v48, 0.0  ;;  %v5035_v44 = vpop.permute.xlu1 %321 }
 0x122   : > { %v955_v56 = vpack.c.bf16 %v900_v50, %v889_v49  ;;  %v957_v57 = vpack.c.bf16 %v902_v51, %v891_v35 }
 0x123   : > { %v956_v58 = vpack.c.bf16 %v901_v53, %v890_v52  ;;  %v561_v59 = vpop.f32.mrb[4].mxu0  ;;  %v958_v60 = vpack.c.bf16 %v903_v54, %v892_v47  ;;  %v624_v61 = vpop.f32.mrb[4].mxu1 }
 0x124   : > { %v562_v62 = vadd.f32 %v561_v59, %v5013_v9  ;;  %v563_v63 = vpop.f32.mrb[5].mxu0  ;;  %v625_v1 = vadd.f32 %v624_v61, %v5013_v9  ;;  %v626_v2 = vpop.f32.mrb[5].mxu1 }
 0x125   : > { %v564_v3 = vadd.f32 %v563_v63, %v5013_v9  ;;  %v565_v4 = vpop.f32.mrb[6].mxu0  ;;  %1010 = vmatprep.subr.bf16.mxu0 %v956_v58  ;;  %v627_v5 = vadd.f32 %v626_v2, %v5013_v9  ;;  %v628_v6 = vpop.f32.mrb[6].mxu1  ;;  %1053 = vmatprep.subr.bf16.mxu1 %v958_v60 }
 0x126   : > { %v566_v10 = vadd.f32 %v565_v4, %v5023_v55  ;;  %v567_v11 = vpop.f32.mrb[7].mxu0  ;;  %1011 = vmatpush1.bf16.msra.mxu0 %v955_v56  ;;  %v913_v12 = vmax.f32 %v625_v1, 0.0  ;;  %v629_v13 = vadd.f32 %v628_v6, %v5023_v55  ;;  %v630_v14 = vpop.f32.mrb[7].mxu1  ;;  %1054 = vmatpush1.bf16.msra.mxu1 %v957_v57  ;;  %v911_v30 = vmax.f32 %v562_v62, 0.0 }
 0x127   : > { %v568_v22 = vadd.f32 %v567_v11, %v5023_v55  ;;  %v914_v28 = vmax.f32 %v627_v5, 0.0  ;;  %v631_v29 = vadd.f32 %v630_v14, %v5023_v55  ;;  %v912_v34 = vmax.f32 %v564_v3, 0.0 }
 0x128   : > { %v922_v32 = vmax.f32 %v566_v10, 0.0  ;;  %v924_v33 = vmax.f32 %v629_v13, 0.0 }
 0x129   : > { %v923_v35 = vmax.f32 %v568_v22, 0.0  ;;  %v925_v39 = vmax.f32 %v631_v29, 0.0 }
 0x12a   : > { %v966_v47 = vpack.c.bf16 %v922_v32, %v911_v30  ;;  %v968_v48 = vpack.c.bf16 %v924_v33, %v913_v12 }
 0x12b   : > { %v967_v49 = vpack.c.bf16 %v923_v35, %v912_v34  ;;  %v969_v50 = vpack.c.bf16 %v925_v39, %v914_v28  ;;  %v571_v51 = vpop.f32.mrb[8].mxu0  ;;  %v634_v52 = vpop.f32.mrb[8].mxu1 }
 0x12c   : > { %v572_v53 = vadd.f32 %v571_v51, %v5033_v41  ;;  %v635_v54 = vadd.f32 %v634_v52, %v5033_v41  ;;  %v573_v56 = vpop.f32.mrb[9].mxu0  ;;  %v636_v57 = vpop.f32.mrb[9].mxu1 }
 0x12d   : > { %v574_v58 = vadd.f32 %v573_v56, %v5033_v41  ;;  %v637_v59 = vadd.f32 %v636_v57, %v5033_v41  ;;  %v575_v60 = vpop.f32.mrb[10].mxu0  ;;  %v638_v61 = vpop.f32.mrb[10].mxu1  ;;  %1012 = vmatprep.subr.bf16.mxu0 %v967_v49  ;;  %1055 = vmatprep.subr.bf16.mxu1 %v969_v50 }
 0x12e   : > { %v935_v62 = vmax.f32 %v635_v54, 0.0  ;;  %v576_v63 = vadd.f32 %v575_v60, %v5035_v44  ;;  %v639_v1 = vadd.f32 %v638_v61, %v5035_v44  ;;  %v577_v2 = vpop.f32.mrb[11].mxu0  ;;  %v640_v3 = vpop.f32.mrb[11].mxu1  ;;  %1013 = vmatpush1.bf16.msra.mxu0 %v966_v47  ;;  %1056 = vmatpush1.bf16.msra.mxu1 %v968_v48  ;;  %v933_v10 = vmax.f32 %v572_v53, 0.0  ;;  %v5052_v53 = vld [vmem:[%s6004_s3] sm:$0xff]  }
 0x12f   : > { %v936_v4 = vmax.f32 %v637_v59, 0.0  ;;  %v578_v5 = vadd.f32 %v577_v2, %v5035_v44  ;;  %v641_v6 = vadd.f32 %v640_v3, %v5035_v44  ;;  %v934_v13 = vmax.f32 %v574_v58, 0.0 }
 0x130   : > { %v944_v11 = vmax.f32 %v576_v63, 0.0  ;;  %v946_v12 = vmax.f32 %v639_v1, 0.0 }
 0x131   : > { %v945_v14 = vmax.f32 %v578_v5, 0.0  ;;  %v947_v22 = vmax.f32 %v641_v6, 0.0 }
 0x132   : > { %v977_v28 = vpack.c.bf16 %v944_v11, %v933_v10  ;;  %v979_v29 = vpack.c.bf16 %v946_v12, %v935_v62 }
 0x133   : > { %v978_v30 = vpack.c.bf16 %v945_v14, %v934_v13  ;;  %v980_v32 = vpack.c.bf16 %v947_v22, %v936_v4  ;;  %v677_v33 = vpop.f32.mrb[12].mxu0  ;;  %v740_v34 = vpop.f32.mrb[12].mxu1 }
 0x134   : > { %v678_v35 = vadd.f32 %v677_v33, %v5009_v7  ;;  %v741_v39 = vadd.f32 %v740_v34, %v5009_v7  ;;  %v679_v47 = vpop.f32.mrb[13].mxu0  ;;  %v742_v48 = vpop.f32.mrb[13].mxu1 }
 0x135   : > { %v680_v49 = vadd.f32 %v679_v47, %v5009_v7  ;;  %v743_v50 = vadd.f32 %v742_v48, %v5009_v7  ;;  %v681_v51 = vpop.f32.mrb[14].mxu0  ;;  %v744_v52 = vpop.f32.mrb[14].mxu1  ;;  %1014 = vmatprep.subr.bf16.mxu0 %v978_v30  ;;  %1057 = vmatprep.subr.bf16.mxu1 %v980_v32 }
 0x136   : > { %v895_v54 = vmax.f32 %v741_v39, 0.0  ;;  %v682_v56 = vadd.f32 %v681_v51, %v5011_v8  ;;  %v745_v57 = vadd.f32 %v744_v52, %v5011_v8  ;;  %v683_v58 = vpop.f32.mrb[15].mxu0  ;;  %v746_v59 = vpop.f32.mrb[15].mxu1  ;;  %1015 = vmatpush1.bf16.msra.mxu0 %v977_v28  ;;  %1058 = vmatpush1.bf16.msra.mxu1 %v979_v29  ;;  %v893_v63 = vmax.f32 %v678_v35, 0.0 }
 0x137   : > { %v896_v60 = vmax.f32 %v743_v50, 0.0  ;;  %v684_v61 = vadd.f32 %v683_v58, %v5011_v8  ;;  %v747_v62 = vadd.f32 %v746_v59, %v5011_v8  ;;  %v894_v3 = vmax.f32 %v680_v49, 0.0 }
 0x138   : > { %v904_v1 = vmax.f32 %v682_v56, 0.0  ;;  %v906_v2 = vmax.f32 %v745_v57, 0.0 }
 0x139   : > { %v905_v4 = vmax.f32 %v684_v61, 0.0  ;;  %v907_v5 = vmax.f32 %v747_v62, 0.0  ;;  %3961 = vmatmul.mubr.msk.bf16.vlgmr.msra.gmra.mrb[36].mxu0 %vm507_vm0, %v5052_v53  ;;  %3962 = vmatmul.mubr.msk.bf16.vlgmr.msra.gmra.mrb[36].mxu1 %vm507_vm0, %v5052_v53 }
 0x13a   : > { %v959_v6 = vpack.c.bf16 %v904_v1, %v893_v63  ;;  %v961_v10 = vpack.c.bf16 %v906_v2, %v895_v54  ;;  %1128 = vmatprep.mubr.bf16.mxu0 %v4594_v0  ;;  %1171 = vmatprep.mubr.bf16.mxu1 %v4594_v0 }
 0x13b   : > { %v960_v11 = vpack.c.bf16 %v905_v4, %v894_v3  ;;  %v962_v12 = vpack.c.bf16 %v907_v5, %v896_v60  ;;  %v687_v13 = vpop.f32.mrb[16].mxu0  ;;  %v750_v14 = vpop.f32.mrb[16].mxu1 }
 0x13c   : > { %v688_v22 = vadd.f32 %v687_v13, %v5013_v9  ;;  %v751_v28 = vadd.f32 %v750_v14, %v5013_v9  ;;  %v689_v29 = vpop.f32.mrb[17].mxu0  ;;  %v752_v30 = vpop.f32.mrb[17].mxu1 }
 0x13d   : > { %v690_v32 = vadd.f32 %v689_v29, %v5013_v9  ;;  %v753_v33 = vadd.f32 %v752_v30, %v5013_v9  ;;  %v691_v34 = vpop.f32.mrb[18].mxu0  ;;  %v754_v35 = vpop.f32.mrb[18].mxu1  ;;  %1096 = vmatprep.subr.bf16.mxu0 %v960_v11  ;;  %1139 = vmatprep.subr.bf16.mxu1 %v962_v12 }
 0x13e   : > { %v917_v39 = vmax.f32 %v751_v28, 0.0  ;;  %v692_v47 = vadd.f32 %v691_v34, %v5023_v55  ;;  %v755_v48 = vadd.f32 %v754_v35, %v5023_v55  ;;  %v693_v49 = vpop.f32.mrb[19].mxu0  ;;  %v756_v50 = vpop.f32.mrb[19].mxu1  ;;  %1097 = vmatpush1.bf16.msra.mxu0 %v959_v6  ;;  %1140 = vmatpush1.bf16.msra.mxu1 %v961_v10  ;;  %v915_v56 = vmax.f32 %v688_v22, 0.0 }
 0x13f   : > { %v918_v51 = vmax.f32 %v753_v33, 0.0  ;;  %v694_v52 = vadd.f32 %v693_v49, %v5023_v55  ;;  %v757_v54 = vadd.f32 %v756_v50, %v5023_v55  ;;  %v916_v59 = vmax.f32 %v690_v32, 0.0 }
 0x140   : > { %v926_v57 = vmax.f32 %v692_v47, 0.0  ;;  %v928_v58 = vmax.f32 %v755_v48, 0.0 }
 0x141   : > { %v927_v60 = vmax.f32 %v694_v52, 0.0  ;;  %v929_v61 = vmax.f32 %v757_v54, 0.0 }
 0x142   : > { %v970_v62 = vpack.c.bf16 %v926_v57, %v915_v56  ;;  %v972_v63 = vpack.c.bf16 %v928_v58, %v917_v39 }
 0x143   : > { %v971_v1 = vpack.c.bf16 %v927_v60, %v916_v59  ;;  %v973_v2 = vpack.c.bf16 %v929_v61, %v918_v51  ;;  %v697_v3 = vpop.f32.mrb[20].mxu0  ;;  %v760_v4 = vpop.f32.mrb[20].mxu1 }
 0x144   : > { %v698_v5 = vadd.f32 %v697_v3, %v5033_v41  ;;  %v761_v6 = vadd.f32 %v760_v4, %v5033_v41  ;;  %v699_v10 = vpop.f32.mrb[21].mxu0  ;;  %v762_v11 = vpop.f32.mrb[21].mxu1 }
 0x145   : > { %v700_v12 = vadd.f32 %v699_v10, %v5033_v41  ;;  %v763_v13 = vadd.f32 %v762_v11, %v5033_v41  ;;  %v701_v14 = vpop.f32.mrb[22].mxu0  ;;  %v764_v22 = vpop.f32.mrb[22].mxu1  ;;  %1098 = vmatprep.subr.bf16.mxu0 %v971_v1  ;;  %1141 = vmatprep.subr.bf16.mxu1 %v973_v2 }
 0x146   : > { %v702_v28 = vadd.f32 %v701_v14, %v5035_v44  ;;  %v765_v29 = vadd.f32 %v764_v22, %v5035_v44  ;;  %v703_v30 = vpop.f32.mrb[23].mxu0  ;;  %v766_v32 = vpop.f32.mrb[23].mxu1  ;;  %1099 = vmatpush1.bf16.msra.mxu0 %v970_v62  ;;  %1142 = vmatpush1.bf16.msra.mxu1 %v972_v63  ;;  %v937_v35 = vmax.f32 %v698_v5, 0.0  ;;  %v939_v39 = vmax.f32 %v761_v6, 0.0 }
 0x147   : > { %v704_v33 = vadd.f32 %v703_v30, %v5035_v44  ;;  %v767_v34 = vadd.f32 %v766_v32, %v5035_v44  ;;  %v938_v49 = vmax.f32 %v700_v12, 0.0  ;;  %v940_v50 = vmax.f32 %v763_v13, 0.0 }
 0x148   : > { %v948_v47 = vmax.f32 %v702_v28, 0.0  ;;  %v950_v48 = vmax.f32 %v765_v29, 0.0 }
 0x149   : > { %v949_v51 = vmax.f32 %v704_v33, 0.0  ;;  %v951_v52 = vmax.f32 %v767_v34, 0.0 }
 0x14a   : > { %v981_v54 = vpack.c.bf16 %v948_v47, %v937_v35  ;;  %v983_v56 = vpack.c.bf16 %v950_v48, %v939_v39 }
 0x14b   : > { %v982_v57 = vpack.c.bf16 %v949_v51, %v938_v49  ;;  %v984_v58 = vpack.c.bf16 %v951_v52, %v940_v50  ;;  %v803_v59 = vpop.f32.mrb[24].mxu0  ;;  %v866_v60 = vpop.f32.mrb[24].mxu1 }
 0x14c   : > { %v804_v61 = vadd.f32 %v803_v59, %v5009_v7  ;;  %v867_v62 = vadd.f32 %v866_v60, %v5009_v7  ;;  %v805_v63 = vpop.f32.mrb[25].mxu0  ;;  %v4218_v1 = vpop.f32.mrb[25].mxu1 }
 0x14d   : > { %v806_v2 = vadd.f32 %v805_v63, %v5009_v7  ;;  %v807_v3 = vpop.f32.mrb[26].mxu0  ;;  %v869_v4 = vpop.f32.mrb[26].mxu1  ;;  %1100 = vmatprep.subr.bf16.mxu0 %v982_v57  ;;  %1143 = vmatprep.subr.bf16.mxu1 %v984_v58 }
 0x14e   : > { %v808_v5 = vadd.f32 %v807_v3, %v5011_v8  ;;  %v870_v6 = vadd.f32 %v869_v4, %v5011_v8  ;;  %v809_v10 = vpop.f32.mrb[27].mxu0  ;;  %1101 = vmatpush1.bf16.msra.mxu0 %v981_v54  ;;  %1144 = vmatpush1.bf16.msra.mxu1 %v983_v56  ;;  %v4219_v11 = vpop.f32.mrb[27].mxu1  ;;  %v897_v13 = vmax.f32 %v804_v61, 0.0  ;;  %v899_v14 = vmax.f32 %v867_v62, 0.0 }
 0x14f   : > { %v810_v12 = vadd.f32 %v809_v10, %v5011_v8  ;;  %4228 = vmatprep.subr.bf16.mxu1 %v4595_v31  ;;  %v898_v28 = vmax.f32 %v806_v2, 0.0 }
 0x150   : > { %v908_v22 = vmax.f32 %v808_v5, 0.0  ;;  %v910_v7 = vmax.f32 %v870_v6, 0.0 }
 0x151   : > { %v909_v29 = vmax.f32 %v810_v12, 0.0  ;;  %3963 = vmatmul.mubr.msk.bf16.vlgmr.msra.gmra.mrb[40].mxu0 %vm507_vm0, %v5052_v53  ;;  %3964 = vmatmul.mubr.msk.bf16.vlgmr.msra.gmra.mrb[40].mxu1 %vm507_vm0, %v5052_v53 }
 0x152   : > { %v963_v30 = vpack.c.bf16 %v908_v22, %v897_v13  ;;  %v965_v32 = vpack.c.bf16 %v910_v7, %v899_v14  ;;  %4234 = vmatprep.mubr.msk.bf16.mxu1 %vm4596_vm1, %v4595_v31  ;;  %1214 = vmatprep.mubr.bf16.mxu0 %v4594_v0 }
 0x153   : > { %v964_v8 = vpack.c.bf16 %v909_v29, %v898_v28  ;;  %v813_v33 = vpop.f32.mrb[28].mxu0  ;;  %v874_v34 = vpop.f32.mrb[28].mxu1 }
 0x154   : > { %v814_v35 = vadd.f32 %v813_v33, %v5013_v9  ;;  %v875_v39 = vadd.f32 %v874_v34, %v5013_v9  ;;  %v815_v47 = vpop.f32.mrb[29].mxu0  ;;  %v4222_v48 = vpop.f32.mrb[29].mxu1  ;;  %4229 = vmatpush3.bf16.msra.mxu1 %v965_v32 }
 0x155   : > { %v816_v49 = vadd.f32 %v815_v47, %v5013_v9  ;;  %v817_v50 = vpop.f32.mrb[30].mxu0  ;;  %v877_v51 = vpop.f32.mrb[30].mxu1  ;;  %1182 = vmatprep.subr.bf16.mxu0 %v964_v8  ;;  %4230 = vmatprep.subr.bf16.mxu1 %v4595_v31 }
 0x156   : > { %v818_v52 = vadd.f32 %v817_v50, %v5023_v55  ;;  %v878_v54 = vadd.f32 %v877_v51, %v5023_v55  ;;  %v819_v56 = vpop.f32.mrb[31].mxu0  ;;  %1183 = vmatpush1.bf16.msra.mxu0 %v963_v30  ;;  %v4223_v57 = vpop.f32.mrb[31].mxu1  ;;  %v919_v59 = vmax.f32 %v814_v35, 0.0  ;;  %v921_v60 = vmax.f32 %v875_v39, 0.0  ;;  %v5119_v50 = vld [vmem:[%s4735_s7 + $0x8] ss:$44 sps:$4 sm:$0xff]  }
 0x157   : > { %v820_v58 = vadd.f32 %v819_v56, %v5023_v55  ;;  %v920_v63 = vmax.f32 %v816_v49, 0.0  ;;  %v5109_v49 = vld [vmem:[%s4735_s7 + $0xc] ss:$44 sps:$4 sm:$0xff]   ;;  %v5126_v51 = vld [vmem:[%s4735_s7 + $0x64] ss:$44 sps:$4 sm:$0xff]  }
 0x158   : > { %v930_v61 = vmax.f32 %v818_v52, 0.0  ;;  %v932_v62 = vmax.f32 %v878_v54, 0.0  ;;  %v5130_v52 = vld [vmem:[%s4735_s7] ss:$44 sps:$4 sm:$0xff]   ;;  %v5135_v54 = vld [vmem:[%s4735_s7 + $0x5c] ss:$44 sps:$4 sm:$0xff]  }
 0x159   : > { %v931_v9 = vmax.f32 %v820_v58, 0.0  ;;  %v5139_v56 = vld [vmem:[%s4735_s7 + $0x60] ss:$44 sps:$4 sm:$0xff]   ;;  %v5147_v57 = vld [vmem:[%s4735_s7 + $0x58] ss:$44 sps:$4 sm:$0xff]  }
 0x15a   : > { %v974_v1 = vpack.c.bf16 %v930_v61, %v919_v59  ;;  %v976_v2 = vpack.c.bf16 %v932_v62, %v921_v60  ;;  %v5151_v58 = vld [vmem:[%s4735_s7 + $0xb4] ss:$44 sps:$4 sm:$0xff]   ;;  %v5158_v60 = vld [vmem:[%s4735_s7 + $0xb8] ss:$44 sps:$4 sm:$0xff]   ;;  %v5163_v61 = vld [vmem:[%s4735_s7 + $0xb0] ss:$44 sps:$4 sm:$0xff]  }
 0x15b   : > { %v975_v3 = vpack.c.bf16 %v931_v9, %v920_v63  ;;  %v823_v4 = vpop.f32.mrb[32].mxu0  ;;  %v882_v5 = vpop.f32.mrb[32].mxu1  ;;  %v4434_v59 = vld [vmem:[%s6002_s1 + $0x18] sm:$0xff]  }
 0x15c   : > { %v824_v6 = vadd.f32 %v823_v4, %v5033_v41  ;;  %v883_v10 = vadd.f32 %v882_v5, %v5033_v41  ;;  %v825_v11 = vpop.f32.mrb[33].mxu0  ;;  %v4226_v12 = vpop.f32.mrb[33].mxu1  ;;  %4231 = vmatpush3.bf16.msra.mxu1 %v976_v2  ;;  %v5168_v62 = vld [vmem:[%s4735_s7 + $0x14] ss:$44 sps:$4 sm:$0xff]  }
 0x15d   : > { %v826_v55 = vadd.f32 %v825_v11, %v5033_v41  ;;  %v827_v13 = vpop.f32.mrb[34].mxu0  ;;  %v885_v14 = vpop.f32.mrb[34].mxu1  ;;  %1184 = vmatprep.subr.bf16.mxu0 %v975_v3  ;;  %4232 = vmatprep.subr.bf16.mxu1 %v4595_v31 }
 0x15e   : > { %v828_v22 = vadd.f32 %v827_v13, %v5035_v44  ;;  %v886_v7 = vadd.f32 %v885_v14, %v5035_v44  ;;  %v829_v28 = vpop.f32.mrb[35].mxu0  ;;  %1185 = vmatpush1.bf16.msra.mxu0 %v974_v1  ;;  %v4227_v29 = vpop.f32.mrb[35].mxu1  ;;  %v941_v32 = vmax.f32 %v824_v6, 0.0  ;;  %v943_v8 = vmax.f32 %v883_v10, 0.0 }
 0x15f   : > { %v830_v30 = vadd.f32 %v829_v28, %v5035_v44  ;;  %v942_v34 = vmax.f32 %v826_v55, 0.0  ;;  %v5115_v44 = vld [vmem:[%s4735_s7 + $0x4] ss:$44 sps:$4 sm:$0xff]  }
 0x160   : > { %v952_v41 = vmax.f32 %v828_v22, 0.0  ;;  %v954_v33 = vmax.f32 %v886_v7, 0.0 }
 0x161   : > { %v953_v35 = vmax.f32 %v830_v30, 0.0 }
 0x162   : > { %v985_v39 = vpack.c.bf16 %v952_v41, %v941_v32  ;;  %v987_v47 = vpack.c.bf16 %v954_v33, %v943_v8 }
 0x163   : > { %v986_v48 = vpack.c.bf16 %v953_v35, %v942_v34 }
 0x164   : > { %4233 = vmatpush3.bf16.msra.mxu1 %v987_v47 }
 0x165   : > { %1186 = vmatprep.subr.bf16.mxu0 %v986_v48  ;;  %1419 = vmatprep.subr.bf16.mxu1 %v5109_v49 }
 0x166   : > { %1187 = vmatpush1.bf16.msra.mxu0 %v985_v39 }
 0x167   : > { %4235 = vmatmul.mubr.msk.bf16.vlgmr.msra.gmra.mrb[44].mxu1 %vm507_vm0, %v5052_v53  ;;  %1356 = vmatprep.subr.bf16.mxu0 %v5115_v44 }
 0x168   : > { %1420 = vmatpush1.bf16.msra.mxu1 %v5119_v50  ;;  %1451 = vmatprep.mubr.bf16.mxu1 %v4594_v0 }
 0x169   : > { %3965 = vmatmul.mubr.msk.bf16.vlgmr.msra.gmra.mrb[44].mxu0 %vm507_vm0, %v5052_v53  ;;  %1421 = vmatprep.subr.bf16.mxu1 %v5126_v51  ;;  %v5143_v53 = vld [vmem:[%s4735_s7 + $0xbc] ss:$44 sps:$4 sm:$0xff]  }
 0x16a   : > { %1357 = vmatpush1.bf16.msra.mxu0 %v5130_v52  ;;  %1388 = vmatprep.mubr.bf16.mxu0 %v4594_v0 }
 0x16b   : > { %1358 = vmatprep.subr.bf16.mxu0 %v5135_v54 }
 0x16c   : > { %1422 = vmatpush1.bf16.msra.mxu1 %v5139_v56 }
 0x16d   : > { %1423 = vmatprep.subr.bf16.mxu1 %v5143_v53 }
 0x16e   : > { %1359 = vmatpush1.bf16.msra.mxu0 %v5147_v57 }
 0x16f   : > { %1360 = vmatprep.subr.bf16.mxu0 %v5151_v58 }
 0x170   : > { %1424 = vmatpush1.bf16.msra.mxu1 %v5158_v60 }
 0x171   : > { %1545 = vmatprep.subr.bf16.mxu1 %v4773_v18  ;;  %v4435_v18 = vld [vmem:[%s6002_s1 + $0x20] sm:$0xff]  }
 0x172   : > { %1361 = vmatpush1.bf16.msra.mxu0 %v5163_v61 }
 0x173   : > { %3985 = vmatmul.mubr.msk.bf16.vlgmr.msra.gmra.mrb[48].mxu1 %vm507_vm0, %v4434_v59  ;;  %1482 = vmatprep.subr.bf16.mxu0 %v5168_v62 }
 0x174   : > { %1461 = vmatprep.mubr.bf16.mxu1 %v4594_v0  ;;  %1546 = vmatpush1.bf16.msra.mxu1 %v4780_v19 }
 0x175   : > { %3982 = vmatmul.mubr.msk.bf16.vlgmr.msra.gmra.mrb[48].mxu0 %vm507_vm0, %v4434_v59  ;;  %1547 = vmatprep.subr.bf16.mxu1 %v4785_v20 }
 0x176   : > { %1483 = vmatpush1.bf16.msra.mxu0 %v4764_v15  ;;  %1398 = vmatprep.mubr.bf16.mxu0 %v4594_v0  ;;  %v4436_v15 = vld [vmem:[%s6002_s1 + $0x28] sm:$0xff]  }
 0x177   : > { %1484 = vmatprep.subr.bf16.mxu0 %v4767_v16  ;;  %v5237_v16 = vpop.permute.xlu0 %1304 }
 0x178   : > { %1548 = vmatpush1.bf16.msra.mxu1 %v4806_v24 }
 0x179   : > { %1549 = vmatprep.subr.bf16.mxu1 %v4809_v25 }
 0x17a   : > { %1485 = vmatpush1.bf16.msra.mxu0 %v4770_v17  ;;  %v5239_v17 = vpop.permute.xlu1 %1309 }
 0x17b   : > { %3986 = vmatmul.mubr.msk.bf16.gmra.mrb[52].mxu1 %vm507_vm0, %v4435_v18  ;;  %1486 = vmatprep.subr.bf16.mxu0 %v4790_v21  ;;  %v5241_v19 = vpop.permute.xlu0 %1314 }
 0x17c   : > { %1471 = vmatprep.mubr.bf16.mxu1 %v4594_v0  ;;  %1550 = vmatpush1.bf16.msra.mxu1 %v4821_v27 }
 0x17d   : > { %3983 = vmatmul.mubr.msk.bf16.gmra.mrb[52].mxu0 %vm507_vm0, %v4435_v18  ;;  %4238 = vmatprep.subr.bf16.mxu1 %v4595_v31 }
 0x17e   : > { %1408 = vmatprep.mubr.bf16.mxu0 %v4594_v0  ;;  %1487 = vmatpush1.bf16.msra.mxu0 %v4802_v23  ;;  %v5243_v20 = vpop.permute.xlu1 %1319 }
 0x17f   : > { %1608 = vmatprep.subr.bf16.mxu0 %v4812_v26  ;;  %v5245_v21 = vpop.permute.xlu0 %1324 }
 0x182   : > { %v5247_v23 = vpop.permute.xlu1 %1329 }
 0x183   : > { %3987 = vmatmul.mubr.msk.bf16.gmra.mrb[56].mxu1 %vm507_vm0, %v4436_v15  ;;  %v5249_v24 = vpop.permute.xlu0 %2146 }
 0x184   : > { %1577 = vmatprep.mubr.bf16.mxu1 %v4594_v0 }
 0x185   : > { %3984 = vmatmul.mubr.msk.bf16.gmra.mrb[56].mxu0 %vm507_vm0, %v4436_v15 }
 0x186   : > { %1514 = vmatprep.mubr.bf16.mxu0 %v4594_v0  ;;  %v5251_v25 = vpop.permute.xlu1 %2151 }
 0x187   : > { %v5253_v26 = vpop.permute.xlu0 %2156 }
 0x18a   : > { %v5255_v27 = vpop.permute.xlu1 %2161 }
 0x18b   : > { %3991 = vmatmul.mubr.msk.bf16.vlgmr.msra.gmra.mrb[60].mxu1 %vm507_vm0, %v4434_v59 }
 0x18c   : > { %1587 = vmatprep.mubr.bf16.mxu1 %v4594_v0  ;;  %4239 = vmatpush3.bf16.msra.mxu1 %v4865_v38 }
 0x18d   : > { %3988 = vmatmul.mubr.msk.bf16.vlgmr.msra.gmra.mrb[60].mxu0 %vm507_vm0, %v4434_v59  ;;  %4240 = vmatprep.subr.bf16.mxu1 %v4595_v31 }
 0x18e   : > { %1609 = vmatpush1.bf16.msra.mxu0 %v4859_v36  ;;  %1524 = vmatprep.mubr.bf16.mxu0 %v4594_v0  ;;  %v5257_v36 = vpop.permute.xlu0 %2166 }
 0x18f   : > { %1610 = vmatprep.subr.bf16.mxu0 %v4862_v37  ;;  %v5259_v37 = vpop.permute.xlu1 %2171 }
 0x190   : > { %4241 = vmatpush3.bf16.msra.mxu1 %v4886_v43 }
 0x191   : > { %4242 = vmatprep.subr.bf16.mxu1 %v4595_v31 }
 0x192   : > { %1611 = vmatpush1.bf16.msra.mxu0 %v4871_v40  ;;  %v5261_v38 = vpop.permute.xlu0 %2988 }
 0x193   : > { %3992 = vmatmul.mubr.msk.bf16.gmra.mrb[64].mxu1 %vm507_vm0, %v4435_v18  ;;  %1612 = vmatprep.subr.bf16.mxu0 %v4881_v42  ;;  %v5263_v40 = vpop.permute.xlu1 %2993 }
 0x194   : > { %1597 = vmatprep.mubr.bf16.mxu1 %v4594_v0  ;;  %4243 = vmatpush3.bf16.msra.mxu1 %v4902_v46 }
 0x195   : > { %3989 = vmatmul.mubr.msk.bf16.gmra.mrb[64].mxu0 %vm507_vm0, %v4435_v18 }
 0x196   : > { %1534 = vmatprep.mubr.bf16.mxu0 %v4594_v0  ;;  %1613 = vmatpush1.bf16.msra.mxu0 %v4898_v45  ;;  %v5265_v42 = vpop.permute.xlu0 %2998 }
 0x197   : > { %v5267_v43 = vpop.permute.xlu1 %3003 }
 0x19a   : > { %v5269_v45 = vpop.permute.xlu0 %3008 }
 0x19b   : > { %3993 = vmatmul.mubr.msk.bf16.gmra.mrb[68].mxu1 %vm507_vm0, %v4436_v15  ;;  %v5271_v46 = vpop.permute.xlu1 %3013 }
 0x19c   : > { %4244 = vmatprep.mubr.msk.bf16.mxu1 %vm4596_vm1, %v4595_v31 }
 0x19d   : > { %3990 = vmatmul.mubr.msk.bf16.gmra.mrb[68].mxu0 %vm507_vm0, %v4436_v15 }
 0x19e   : > { %1640 = vmatprep.mubr.bf16.mxu0 %v4594_v0  ;;  %v995_v63 = vpop.permute.xlu0 %994 }
 0x19f   : > { %v5274_v9 = vpop.permute.xlu1 %999 }
 0x1a3   : > { %4245 = vmatmul.mubr.msk.bf16.vlgmr.msra.gmra.mrb[72].mxu1 %vm507_vm0, %v4434_v59 }
 0x1a4   : > { %4248 = vmatprep.mubr.msk.bf16.mxu1 %vm4596_vm1, %v4595_v31 }
 0x1a5   : > { %3994 = vmatmul.mubr.msk.bf16.vlgmr.msra.gmra.mrb[72].mxu0 %vm507_vm0, %v4434_v59 }
 0x1a6   : > { %1650 = vmatprep.mubr.bf16.mxu0 %v4594_v0 }
 0x1ab   : > { %4249 = vmatmul.mubr.msk.bf16.gmra.mrb[76].mxu1 %vm507_vm0, %v4435_v18 }
 0x1ac   : > { %4252 = vmatprep.mubr.msk.bf16.mxu1 %vm4596_vm1, %v4595_v31 }
 0x1ad   : > { %3995 = vmatmul.mubr.msk.bf16.gmra.mrb[76].mxu0 %vm507_vm0, %v4435_v18 }
 0x1ae   : > { %1660 = vmatprep.mubr.bf16.mxu0 %v4594_v0 }
 0x1b3   : > { %4253 = vmatmul.mubr.msk.bf16.gmra.mrb[80].mxu1 %vm507_vm0, %v4436_v15 }
 0x1b4   : > { %1926 = vmatprep.mubr.bf16.mxu1 %v4594_v0 }
 0x1b5   : > { %3996 = vmatmul.mubr.msk.bf16.gmra.mrb[80].mxu0 %vm507_vm0, %v4436_v15 }
 0x1b6   : > { %1883 = vmatprep.mubr.bf16.mxu0 %v4594_v0 }
 0x20c   : > { %v1044_v1 = vpop.f32.mrb[36].mxu0  ;;  %v1087_v2 = vpop.f32.mrb[36].mxu1 }
 0x20d   : > { %v1045_v3 = vadd.f32 %v1044_v1, %v995_v63  ;;  %v1088_v4 = vadd.f32 %v1087_v2, %v995_v63  ;;  %v1046_v5 = vpop.f32.mrb[37].mxu0  ;;  %v1089_v6 = vpop.f32.mrb[37].mxu1 }
 0x20e   : > { %v1047_v10 = vadd.f32 %v1046_v5, %v995_v63  ;;  %v1090_v11 = vadd.f32 %v1089_v6, %v995_v63  ;;  %v1048_v12 = vpop.f32.mrb[38].mxu0  ;;  %v1091_v55 = vpop.f32.mrb[38].mxu1 }
 0x20f   : > { %1266 = vst [vmem:[%s5276_s13] sm:$0xff] %v1045_v3  ;;  %1268 = vst [vmem:[%s5276_s13 + $0x10] sm:$0xff] %v1088_v4  ;;  %v1049_v13 = vadd.f32 %v1048_v12, %v5274_v9  ;;  %v1092_v14 = vadd.f32 %v1091_v55, %v5274_v9  ;;  %v1050_v22 = vpop.f32.mrb[39].mxu0  ;;  %v1093_v7 = vpop.f32.mrb[39].mxu1 }
 0x210   : > { %1267 = vst [vmem:[%s5276_s13 + $0x8] sm:$0xff] %v1047_v10  ;;  %1269 = vst [vmem:[%s5276_s13 + $0x18] sm:$0xff] %v1090_v11  ;;  %v1051_v28 = vadd.f32 %v1050_v22, %v5274_v9  ;;  %v1094_v29 = vadd.f32 %v1093_v7, %v5274_v9 }
 0x211   : > { %1277 = vst [vmem:[%s5276_s13 + $0x58] sm:$0xff] %v1049_v13  ;;  %1279 = vst [vmem:[%s5276_s13 + $0x68] sm:$0xff] %v1092_v14 }
 0x212   : > { %1278 = vst [vmem:[%s5276_s13 + $0x60] sm:$0xff] %v1051_v28  ;;  %1280 = vst [vmem:[%s5276_s13 + $0x70] sm:$0xff] %v1094_v29 }
 0x224   : > { %v1130_v30 = vpop.f32.mrb[40].mxu0  ;;  %v1173_v32 = vpop.f32.mrb[40].mxu1 }
 0x225   : > { %v1131_v8 = vadd.f32 %v1130_v30, %v995_v63  ;;  %v1174_v41 = vadd.f32 %v1173_v32, %v995_v63  ;;  %v1132_v33 = vpop.f32.mrb[41].mxu0  ;;  %v1175_v34 = vpop.f32.mrb[41].mxu1 }
 0x226   : > { %v1133_v35 = vadd.f32 %v1132_v33, %v995_v63  ;;  %v1176_v39 = vadd.f32 %v1175_v34, %v995_v63  ;;  %v1134_v47 = vpop.f32.mrb[42].mxu0  ;;  %v1177_v48 = vpop.f32.mrb[42].mxu1 }
 0x227   : > { %1270 = vst [vmem:[%s5276_s13 + $0x20] sm:$0xff] %v1131_v8  ;;  %1272 = vst [vmem:[%s5276_s13 + $0x30] sm:$0xff] %v1174_v41  ;;  %v1135_v59 = vadd.f32 %v1134_v47, %v5274_v9  ;;  %v1178_v18 = vadd.f32 %v1177_v48, %v5274_v9  ;;  %v1136_v15 = vpop.f32.mrb[43].mxu0  ;;  %v1179_v1 = vpop.f32.mrb[43].mxu1 }
 0x228   : > { %1271 = vst [vmem:[%s5276_s13 + $0x28] sm:$0xff] %v1133_v35  ;;  %1273 = vst [vmem:[%s5276_s13 + $0x38] sm:$0xff] %v1176_v39  ;;  %v1137_v2 = vadd.f32 %v1136_v15, %v5274_v9  ;;  %v1180_v3 = vadd.f32 %v1179_v1, %v5274_v9 }
 0x229   : > { %1281 = vst [vmem:[%s5276_s13 + $0x78] sm:$0xff] %v1135_v59  ;;  %1283 = vst [vmem:[%s5276_s13 + $0x88] sm:$0xff] %v1178_v18 }
 0x22a   : > { %1282 = vst [vmem:[%s5276_s13 + $0x80] sm:$0xff] %v1137_v2  ;;  %1284 = vst [vmem:[%s5276_s13 + $0x90] sm:$0xff] %v1180_v3 }
 0x23a   : > { %v1259_v4 = vpop.f32.mrb[44].mxu1 }
 0x23b   : > { %v1260_v5 = vadd.f32 %v1259_v4, %v995_v63  ;;  %v4236_v6 = vpop.f32.mrb[45].mxu1 }
 0x23c   : > { %v1216_v10 = vpop.f32.mrb[44].mxu0  ;;  %v1262_v11 = vpop.f32.mrb[46].mxu1 }
 0x23d   : > { %1276 = vst [vmem:[%s5276_s13 + $0x50] sm:$0xff] %v1260_v5  ;;  %v1217_v12 = vadd.f32 %v1216_v10, %v995_v63  ;;  %v1263_v55 = vadd.f32 %v1262_v11, %v5274_v9  ;;  %v1218_v13 = vpop.f32.mrb[45].mxu0  ;;  %v4237_v14 = vpop.f32.mrb[47].mxu1 }
 0x23e   : > { %v1219_v22 = vadd.f32 %v1218_v13, %v995_v63  ;;  %v1220_v7 = vpop.f32.mrb[46].mxu0 }
 0x23f   : > { %1274 = vst [vmem:[%s5276_s13 + $0x40] sm:$0xff] %v1217_v12  ;;  %1287 = vst [vmem:[%s5276_s13 + $0xa8] sm:$0xff] %v1263_v55  ;;  %v1221_v28 = vadd.f32 %v1220_v7, %v5274_v9  ;;  %v1222_v29 = vpop.f32.mrb[47].mxu0 }
 0x240   : > { %1275 = vst [vmem:[%s5276_s13 + $0x48] sm:$0xff] %v1219_v22  ;;  %v1223_v30 = vadd.f32 %v1222_v29, %v5274_v9 }
 0x241   : > { %1285 = vst [vmem:[%s5276_s13 + $0x98] sm:$0xff] %v1221_v28 }
 0x242   : > { %1286 = vst [vmem:[%s5276_s13 + $0xa0] sm:$0xff] %v1223_v30 }
 0x246   : > { %v1453_v32 = vpop.f32.mrb[48].mxu1 }
 0x247   : > { %v1454_v8 = vadd.f32 %v1453_v32, %v5237_v16  ;;  %v1455_v41 = vpop.f32.mrb[49].mxu1 }
 0x248   : > { %v1456_v33 = vadd.f32 %v1455_v41, %v5237_v16  ;;  %v1390_v34 = vpop.f32.mrb[48].mxu0  ;;  %v1457_v35 = vpop.f32.mrb[50].mxu1 }
 0x249   : > { %v1391_v63 = vadd.f32 %v1390_v34, %v5237_v16  ;;  %v1458_v39 = vadd.f32 %v1457_v35, %v5239_v17  ;;  %v1392_v47 = vpop.f32.mrb[49].mxu0  ;;  %v1459_v48 = vpop.f32.mrb[51].mxu1  ;;  %v1730_v15 = vmax.f32 %v1454_v8, 0.0 }
 0x24a   : > { %v1393_v59 = vadd.f32 %v1392_v47, %v5237_v16  ;;  %v1460_v9 = vadd.f32 %v1459_v48, %v5239_v17  ;;  %v1394_v18 = vpop.f32.mrb[50].mxu0  ;;  %v1731_v4 = vmax.f32 %v1456_v33, 0.0 }
 0x24b   : > { %v1741_v1 = vmax.f32 %v1458_v39, 0.0  ;;  %v1395_v2 = vadd.f32 %v1394_v18, %v5239_v17  ;;  %v1396_v3 = vpop.f32.mrb[51].mxu0  ;;  %v1728_v10 = vmax.f32 %v1391_v63, 0.0 }
 0x24c   : > { %v1742_v5 = vmax.f32 %v1460_v9, 0.0  ;;  %v1397_v6 = vadd.f32 %v1396_v3, %v5239_v17  ;;  %v1729_v55 = vmax.f32 %v1393_v59, 0.0 }
 0x24d   : > { %v1796_v11 = vpack.c.bf16 %v1741_v1, %v1730_v15  ;;  %v1739_v12 = vmax.f32 %v1395_v2, 0.0 }
 0x24e   : > { %v1797_v13 = vpack.c.bf16 %v1742_v5, %v1731_v4  ;;  %v1740_v14 = vmax.f32 %v1397_v6, 0.0  ;;  %v1463_v22 = vpop.f32.mrb[52].mxu1 }
 0x24f   : > { %v1794_v7 = vpack.c.bf16 %v1739_v12, %v1728_v10  ;;  %v1464_v28 = vadd.f32 %v1463_v22, %v5241_v19  ;;  %v1465_v29 = vpop.f32.mrb[53].mxu1 }
 0x250   : > { %v1795_v30 = vpack.c.bf16 %v1740_v14, %v1729_v55  ;;  %v1466_v32 = vadd.f32 %v1465_v29, %v5241_v19  ;;  %v1400_v8 = vpop.f32.mrb[52].mxu0  ;;  %v1467_v41 = vpop.f32.mrb[54].mxu1  ;;  %1894 = vmatprep.subr.bf16.mxu1 %v1797_v13 }
 0x251   : > { %v1401_v33 = vadd.f32 %v1400_v8, %v5241_v19  ;;  %v1468_v34 = vadd.f32 %v1467_v41, %v5243_v20  ;;  %v1402_v35 = vpop.f32.mrb[53].mxu0  ;;  %v1469_v63 = vpop.f32.mrb[55].mxu1  ;;  %1895 = vmatpush1.bf16.msra.mxu1 %v1796_v11  ;;  %v1752_v59 = vmax.f32 %v1464_v28, 0.0 }
 0x252   : > { %v1403_v39 = vadd.f32 %v1402_v35, %v5241_v19  ;;  %v1470_v47 = vadd.f32 %v1469_v63, %v5243_v20  ;;  %v1404_v48 = vpop.f32.mrb[54].mxu0  ;;  %1851 = vmatprep.subr.bf16.mxu0 %v1795_v30  ;;  %v1753_v1 = vmax.f32 %v1466_v32, 0.0 }
 0x253   : > { %v1763_v9 = vmax.f32 %v1468_v34, 0.0  ;;  %v1405_v18 = vadd.f32 %v1404_v48, %v5243_v20  ;;  %v1406_v15 = vpop.f32.mrb[55].mxu0  ;;  %1852 = vmatpush1.bf16.msra.mxu0 %v1794_v7  ;;  %v1750_v4 = vmax.f32 %v1401_v33, 0.0 }
 0x254   : > { %v1764_v2 = vmax.f32 %v1470_v47, 0.0  ;;  %v1407_v3 = vadd.f32 %v1406_v15, %v5243_v20  ;;  %v1751_v10 = vmax.f32 %v1403_v39, 0.0 }
 0x255   : > { %v1807_v5 = vpack.c.bf16 %v1763_v9, %v1752_v59  ;;  %v1761_v6 = vmax.f32 %v1405_v18, 0.0 }
 0x256   : > { %v1808_v11 = vpack.c.bf16 %v1764_v2, %v1753_v1  ;;  %v1762_v12 = vmax.f32 %v1407_v3, 0.0  ;;  %v1473_v55 = vpop.f32.mrb[56].mxu1 }
 0x257   : > { %v1805_v13 = vpack.c.bf16 %v1761_v6, %v1750_v4  ;;  %v1474_v14 = vadd.f32 %v1473_v55, %v5245_v21  ;;  %v1475_v22 = vpop.f32.mrb[57].mxu1 }
 0x258   : > { %v1806_v28 = vpack.c.bf16 %v1762_v12, %v1751_v10  ;;  %v1476_v29 = vadd.f32 %v1475_v22, %v5245_v21  ;;  %v1410_v30 = vpop.f32.mrb[56].mxu0  ;;  %v1477_v7 = vpop.f32.mrb[58].mxu1  ;;  %1896 = vmatprep.subr.bf16.mxu1 %v1808_v11 }
 0x259   : > { %v1411_v32 = vadd.f32 %v1410_v30, %v5245_v21  ;;  %v1478_v8 = vadd.f32 %v1477_v7, %v5247_v23  ;;  %v1412_v41 = vpop.f32.mrb[57].mxu0  ;;  %v1479_v33 = vpop.f32.mrb[59].mxu1  ;;  %1897 = vmatpush1.bf16.msra.mxu1 %v1807_v5  ;;  %v1774_v39 = vmax.f32 %v1474_v14, 0.0 }
 0x25a   : > { %v1413_v34 = vadd.f32 %v1412_v41, %v5245_v21  ;;  %v1480_v35 = vadd.f32 %v1479_v33, %v5247_v23  ;;  %v1414_v63 = vpop.f32.mrb[58].mxu0  ;;  %1853 = vmatprep.subr.bf16.mxu0 %v1806_v28  ;;  %v1775_v9 = vmax.f32 %v1476_v29, 0.0  ;;  %v5340_v29 = vld [vmem:[%s6004_s3 + $0x8] sm:$0xff]  }
 0x25b   : > { %v1785_v47 = vmax.f32 %v1478_v8, 0.0  ;;  %v1415_v48 = vadd.f32 %v1414_v63, %v5247_v23  ;;  %v1416_v59 = vpop.f32.mrb[59].mxu0  ;;  %1854 = vmatpush1.bf16.msra.mxu0 %v1805_v13  ;;  %v1772_v1 = vmax.f32 %v1411_v32, 0.0 }
 0x25c   : > { %v1786_v18 = vmax.f32 %v1480_v35, 0.0  ;;  %v1417_v15 = vadd.f32 %v1416_v59, %v5247_v23  ;;  %v1773_v4 = vmax.f32 %v1413_v34, 0.0 }
 0x25d   : > { %v1818_v2 = vpack.c.bf16 %v1785_v47, %v1774_v39  ;;  %v1783_v3 = vmax.f32 %v1415_v48, 0.0 }
 0x25e   : > { %v1819_v5 = vpack.c.bf16 %v1786_v18, %v1775_v9  ;;  %v1784_v6 = vmax.f32 %v1417_v15, 0.0  ;;  %v1579_v10 = vpop.f32.mrb[60].mxu1 }
 0x25f   : > { %v1816_v11 = vpack.c.bf16 %v1783_v3, %v1772_v1  ;;  %v1580_v12 = vadd.f32 %v1579_v10, %v5237_v16  ;;  %v1581_v55 = vpop.f32.mrb[61].mxu1 }
 0x260   : > { %v1817_v14 = vpack.c.bf16 %v1784_v6, %v1773_v4  ;;  %v1582_v22 = vadd.f32 %v1581_v55, %v5237_v16  ;;  %v1516_v28 = vpop.f32.mrb[60].mxu0  ;;  %v1583_v13 = vpop.f32.mrb[62].mxu1  ;;  %1898 = vmatprep.subr.bf16.mxu1 %v1819_v5 }
 0x261   : > { %v1517_v30 = vadd.f32 %v1516_v28, %v5237_v16  ;;  %v1584_v7 = vadd.f32 %v1583_v13, %v5239_v17  ;;  %v1518_v32 = vpop.f32.mrb[61].mxu0  ;;  %v1585_v8 = vpop.f32.mrb[63].mxu1  ;;  %1899 = vmatpush1.bf16.msra.mxu1 %v1818_v2  ;;  %v1734_v35 = vmax.f32 %v1580_v12, 0.0 }
 0x262   : > { %v1519_v41 = vadd.f32 %v1518_v32, %v5237_v16  ;;  %v1586_v33 = vadd.f32 %v1585_v8, %v5239_v17  ;;  %v1520_v34 = vpop.f32.mrb[62].mxu0  ;;  %1855 = vmatprep.subr.bf16.mxu0 %v1817_v14  ;;  %v1735_v48 = vmax.f32 %v1582_v22, 0.0 }
 0x263   : > { %v1745_v63 = vmax.f32 %v1584_v7, 0.0  ;;  %v1521_v39 = vadd.f32 %v1520_v34, %v5239_v17  ;;  %v1522_v47 = vpop.f32.mrb[63].mxu0  ;;  %1856 = vmatpush1.bf16.msra.mxu0 %v1816_v11  ;;  %v1732_v18 = vmax.f32 %v1517_v30, 0.0 }
 0x264   : > { %v1746_v59 = vmax.f32 %v1586_v33, 0.0  ;;  %v1523_v9 = vadd.f32 %v1522_v47, %v5239_v17  ;;  %4006 = vmatmul.mubr.msk.bf16.vlgmr.msra.gmra.mrb[84].mxu1 %vm507_vm0, %v5340_v29  ;;  %v1733_v2 = vmax.f32 %v1519_v41, 0.0 }
 0x265   : > { %v1800_v15 = vpack.c.bf16 %v1745_v63, %v1734_v35  ;;  %v1743_v1 = vmax.f32 %v1521_v39, 0.0  ;;  %2012 = vmatprep.mubr.bf16.mxu1 %v4594_v0 }
 0x266   : > { %v1801_v3 = vpack.c.bf16 %v1746_v59, %v1735_v48  ;;  %v1744_v4 = vmax.f32 %v1523_v9, 0.0  ;;  %v1589_v5 = vpop.f32.mrb[64].mxu1  ;;  %4005 = vmatmul.mubr.msk.bf16.vlgmr.msra.gmra.mrb[84].mxu0 %vm507_vm0, %v5340_v29 }
 0x267   : > { %v1798_v6 = vpack.c.bf16 %v1743_v1, %v1732_v18  ;;  %v1590_v10 = vadd.f32 %v1589_v5, %v5241_v19  ;;  %v1591_v11 = vpop.f32.mrb[65].mxu1  ;;  %1969 = vmatprep.mubr.bf16.mxu0 %v4594_v0 }
 0x268   : > { %v1799_v12 = vpack.c.bf16 %v1744_v4, %v1733_v2  ;;  %v1592_v55 = vadd.f32 %v1591_v11, %v5241_v19  ;;  %v1526_v14 = vpop.f32.mrb[64].mxu0  ;;  %v1593_v22 = vpop.f32.mrb[66].mxu1  ;;  %1980 = vmatprep.subr.bf16.mxu1 %v1801_v3 }
 0x269   : > { %v1527_v28 = vadd.f32 %v1526_v14, %v5241_v19  ;;  %v1594_v13 = vadd.f32 %v1593_v22, %v5243_v20  ;;  %v1528_v30 = vpop.f32.mrb[65].mxu0  ;;  %v1595_v7 = vpop.f32.mrb[67].mxu1  ;;  %1981 = vmatpush1.bf16.msra.mxu1 %v1800_v15  ;;  %v1756_v33 = vmax.f32 %v1590_v10, 0.0 }
 0x26a   : > { %v1529_v32 = vadd.f32 %v1528_v30, %v5241_v19  ;;  %v1596_v8 = vadd.f32 %v1595_v7, %v5243_v20  ;;  %v1530_v41 = vpop.f32.mrb[66].mxu0  ;;  %1937 = vmatprep.subr.bf16.mxu0 %v1799_v12  ;;  %v1757_v39 = vmax.f32 %v1592_v55, 0.0 }
 0x26b   : > { %v1767_v34 = vmax.f32 %v1594_v13, 0.0  ;;  %v1531_v35 = vadd.f32 %v1530_v41, %v5243_v20  ;;  %v1532_v63 = vpop.f32.mrb[67].mxu0  ;;  %1938 = vmatpush1.bf16.msra.mxu0 %v1798_v6  ;;  %v1754_v59 = vmax.f32 %v1527_v28, 0.0 }
 0x26c   : > { %v1768_v47 = vmax.f32 %v1596_v8, 0.0  ;;  %v1533_v48 = vadd.f32 %v1532_v63, %v5243_v20  ;;  %v1755_v15 = vmax.f32 %v1529_v32, 0.0 }
 0x26d   : > { %v1811_v9 = vpack.c.bf16 %v1767_v34, %v1756_v33  ;;  %v1765_v18 = vmax.f32 %v1531_v35, 0.0 }
 0x26e   : > { %v1812_v1 = vpack.c.bf16 %v1768_v47, %v1757_v39  ;;  %v1766_v2 = vmax.f32 %v1533_v48, 0.0  ;;  %v1599_v3 = vpop.f32.mrb[68].mxu1 }
 0x26f   : > { %v1809_v4 = vpack.c.bf16 %v1765_v18, %v1754_v59  ;;  %v1600_v5 = vadd.f32 %v1599_v3, %v5245_v21  ;;  %v1601_v10 = vpop.f32.mrb[69].mxu1 }
 0x270   : > { %v1810_v11 = vpack.c.bf16 %v1766_v2, %v1755_v15  ;;  %v1602_v12 = vadd.f32 %v1601_v10, %v5245_v21  ;;  %v1536_v14 = vpop.f32.mrb[68].mxu0  ;;  %v1603_v6 = vpop.f32.mrb[70].mxu1  ;;  %1982 = vmatprep.subr.bf16.mxu1 %v1812_v1 }
 0x271   : > { %v1537_v55 = vadd.f32 %v1536_v14, %v5245_v21  ;;  %v1604_v22 = vadd.f32 %v1603_v6, %v5247_v23  ;;  %v1538_v28 = vpop.f32.mrb[69].mxu0  ;;  %v1605_v13 = vpop.f32.mrb[71].mxu1  ;;  %1983 = vmatpush1.bf16.msra.mxu1 %v1811_v9  ;;  %v1778_v8 = vmax.f32 %v1600_v5, 0.0 }
 0x272   : > { %v1539_v30 = vadd.f32 %v1538_v28, %v5245_v21  ;;  %v1606_v7 = vadd.f32 %v1605_v13, %v5247_v23  ;;  %v1540_v32 = vpop.f32.mrb[70].mxu0  ;;  %1939 = vmatprep.subr.bf16.mxu0 %v1810_v11  ;;  %v1779_v35 = vmax.f32 %v1602_v12, 0.0 }
 0x273   : > { %v1789_v41 = vmax.f32 %v1604_v22, 0.0  ;;  %v1541_v33 = vadd.f32 %v1540_v32, %v5247_v23  ;;  %v1542_v34 = vpop.f32.mrb[71].mxu0  ;;  %1940 = vmatpush1.bf16.msra.mxu0 %v1809_v4  ;;  %v1776_v47 = vmax.f32 %v1537_v55, 0.0 }
 0x274   : > { %v1790_v63 = vmax.f32 %v1606_v7, 0.0  ;;  %v1543_v39 = vadd.f32 %v1542_v34, %v5247_v23  ;;  %v1777_v9 = vmax.f32 %v1539_v30, 0.0 }
 0x275   : > { %v1822_v48 = vpack.c.bf16 %v1789_v41, %v1778_v8  ;;  %v1787_v59 = vmax.f32 %v1541_v33, 0.0 }
 0x276   : > { %v1823_v18 = vpack.c.bf16 %v1790_v63, %v1779_v35  ;;  %v1788_v15 = vmax.f32 %v1543_v39, 0.0  ;;  %v1705_v1 = vpop.f32.mrb[72].mxu1 }
 0x277   : > { %v1820_v2 = vpack.c.bf16 %v1787_v59, %v1776_v47  ;;  %v1706_v3 = vadd.f32 %v1705_v1, %v5237_v16  ;;  %v4246_v5 = vpop.f32.mrb[73].mxu1 }
 0x278   : > { %v1821_v10 = vpack.c.bf16 %v1788_v15, %v1777_v9  ;;  %v1642_v11 = vpop.f32.mrb[72].mxu0  ;;  %v1708_v14 = vpop.f32.mrb[74].mxu1  ;;  %1984 = vmatprep.subr.bf16.mxu1 %v1823_v18 }
 0x279   : > { %v1643_v4 = vadd.f32 %v1642_v11, %v5237_v16  ;;  %v1709_v12 = vadd.f32 %v1708_v14, %v5239_v17  ;;  %v1644_v6 = vpop.f32.mrb[73].mxu0  ;;  %1985 = vmatpush1.bf16.msra.mxu1 %v1822_v48  ;;  %v4247_v55 = vpop.f32.mrb[75].mxu1  ;;  %v1738_v13 = vmax.f32 %v1706_v3, 0.0 }
 0x27a   : > { %v1645_v22 = vadd.f32 %v1644_v6, %v5237_v16  ;;  %v1646_v28 = vpop.f32.mrb[74].mxu0  ;;  %1941 = vmatprep.subr.bf16.mxu0 %v1821_v10  ;;  %4256 = vmatprep.subr.bf16.mxu1 %v4595_v31 }
 0x27b   : > { %v1749_v30 = vmax.f32 %v1709_v12, 0.0  ;;  %v1647_v7 = vadd.f32 %v1646_v28, %v5239_v17  ;;  %v1648_v32 = vpop.f32.mrb[75].mxu0  ;;  %1942 = vmatpush1.bf16.msra.mxu0 %v1820_v2  ;;  %v1736_v41 = vmax.f32 %v1643_v4, 0.0 }
 0x27c   : > { %v1649_v8 = vadd.f32 %v1648_v32, %v5239_v17  ;;  %4008 = vmatmul.mubr.msk.bf16.vlgmr.msra.gmra.mrb[88].mxu1 %vm507_vm0, %v5340_v29  ;;  %v1737_v16 = vmax.f32 %v1645_v22, 0.0 }
 0x27d   : > { %v1804_v33 = vpack.c.bf16 %v1749_v30, %v1738_v13  ;;  %v1747_v34 = vmax.f32 %v1647_v7, 0.0  ;;  %4262 = vmatprep.mubr.msk.bf16.mxu1 %vm4596_vm1, %v4595_v31 }
 0x27e   : > { %v1748_v35 = vmax.f32 %v1649_v8, 0.0  ;;  %v1713_v63 = vpop.f32.mrb[76].mxu1  ;;  %4007 = vmatmul.mubr.msk.bf16.vlgmr.msra.gmra.mrb[88].mxu0 %vm507_vm0, %v5340_v29 }
 0x27f   : > { %v1802_v39 = vpack.c.bf16 %v1747_v34, %v1736_v41  ;;  %v1714_v47 = vadd.f32 %v1713_v63, %v5241_v19  ;;  %v4250_v48 = vpop.f32.mrb[77].mxu1  ;;  %4257 = vmatpush3.bf16.msra.mxu1 %v1804_v33  ;;  %2055 = vmatprep.mubr.bf16.mxu0 %v4594_v0 }
 0x280   : > { %v1803_v17 = vpack.c.bf16 %v1748_v35, %v1737_v16  ;;  %v1652_v59 = vpop.f32.mrb[76].mxu0  ;;  %v1716_v9 = vpop.f32.mrb[78].mxu1  ;;  %4258 = vmatprep.subr.bf16.mxu1 %v4595_v31 }
 0x281   : > { %v1653_v18 = vadd.f32 %v1652_v59, %v5241_v19  ;;  %v1717_v15 = vadd.f32 %v1716_v9, %v5243_v20  ;;  %v1654_v1 = vpop.f32.mrb[77].mxu0  ;;  %v4251_v2 = vpop.f32.mrb[79].mxu1  ;;  %v1760_v10 = vmax.f32 %v1714_v47, 0.0 }
 0x282   : > { %v1655_v3 = vadd.f32 %v1654_v1, %v5241_v19  ;;  %v1656_v5 = vpop.f32.mrb[78].mxu0  ;;  %2023 = vmatprep.subr.bf16.mxu0 %v1803_v17 }
 0x283   : > { %v1771_v11 = vmax.f32 %v1717_v15, 0.0  ;;  %v1657_v14 = vadd.f32 %v1656_v5, %v5243_v20  ;;  %v1658_v4 = vpop.f32.mrb[79].mxu0  ;;  %2024 = vmatpush1.bf16.msra.mxu0 %v1802_v39  ;;  %v1758_v6 = vmax.f32 %v1653_v18, 0.0 }
 0x284   : > { %v1659_v12 = vadd.f32 %v1658_v4, %v5243_v20  ;;  %v1759_v28 = vmax.f32 %v1655_v3, 0.0  ;;  %v5515_v4 = vld [vmem:[%s4735_s7 + $0x80] ss:$44 sps:$4 sm:$0xff]  }
 0x285   : > { %v1815_v55 = vpack.c.bf16 %v1771_v11, %v1760_v10  ;;  %v1769_v22 = vmax.f32 %v1657_v14, 0.0  ;;  %v5506_v11 = vld [vmem:[%s4735_s7 + $0x20] ss:$44 sps:$4 sm:$0xff]   ;;  %v5511_v14 = vld [vmem:[%s4735_s7 + $0x7c] ss:$44 sps:$4 sm:$0xff]  }
 0x286   : > { %v1770_v13 = vmax.f32 %v1659_v12, 0.0  ;;  %v1721_v30 = vpop.f32.mrb[80].mxu1  ;;  %v5522_v12 = vld [vmem:[%s4735_s7 + $0x78] ss:$44 sps:$4 sm:$0xff]  }
 0x287   : > { %v1813_v7 = vpack.c.bf16 %v1769_v22, %v1758_v6  ;;  %v1722_v32 = vadd.f32 %v1721_v30, %v5245_v21  ;;  %v4254_v19 = vpop.f32.mrb[81].mxu1  ;;  %4259 = vmatpush3.bf16.msra.mxu1 %v1815_v55  ;;  %v5527_v6 = vld [vmem:[%s4735_s7 + $0xd4] ss:$44 sps:$4 sm:$0xff]   ;;  %v5531_v55 = vld [vmem:[%s4735_s7 + $0xd8] ss:$44 sps:$4 sm:$0xff]   ;;  %v5564_v30 = vpop.permute.xlu1 %1840 }
 0x288   : > { %v1814_v8 = vpack.c.bf16 %v1770_v13, %v1759_v28  ;;  %v1662_v41 = vpop.f32.mrb[80].mxu0  ;;  %v1724_v33 = vpop.f32.mrb[82].mxu1  ;;  %4260 = vmatprep.subr.bf16.mxu1 %v4595_v31  ;;  %v5538_v22 = vld [vmem:[%s4735_s7 + $0xd0] ss:$44 sps:$4 sm:$0xff]  }
 0x289   : > { %v1663_v34 = vadd.f32 %v1662_v41, %v5245_v21  ;;  %v1725_v20 = vadd.f32 %v1724_v33, %v5247_v23  ;;  %v1664_v16 = vpop.f32.mrb[81].mxu0  ;;  %v4255_v35 = vpop.f32.mrb[83].mxu1  ;;  %v1782_v47 = vmax.f32 %v1722_v32, 0.0 }
 0x28a   : > { %v1665_v63 = vadd.f32 %v1664_v16, %v5245_v21  ;;  %v1666_v39 = vpop.f32.mrb[82].mxu0  ;;  %2025 = vmatprep.subr.bf16.mxu0 %v1814_v8  ;;  %v5484_v21 = vld [vmem:[%s4735_s7 + $0xc0] ss:$44 sps:$4 sm:$0xff]   ;;  %v1836_v28 = vpop.permute.xlu0 %1835 }
 0x28b   : > { %v1793_v48 = vmax.f32 %v1725_v20, 0.0  ;;  %v1667_v17 = vadd.f32 %v1666_v39, %v5247_v23  ;;  %v1668_v59 = vpop.f32.mrb[83].mxu0  ;;  %2026 = vmatpush1.bf16.msra.mxu0 %v1813_v7  ;;  %v1780_v18 = vmax.f32 %v1663_v34, 0.0 }
 0x28c   : > { %v1669_v9 = vadd.f32 %v1668_v59, %v5247_v23  ;;  %v1781_v2 = vmax.f32 %v1665_v63, 0.0  ;;  %v5488_v23 = vld [vmem:[%s4735_s7 + $0x24] ss:$44 sps:$4 sm:$0xff]  }
 0x28d   : > { %v1826_v15 = vpack.c.bf16 %v1793_v48, %v1782_v47  ;;  %v1791_v1 = vmax.f32 %v1667_v17, 0.0 }
 0x28e   : > { %v1792_v3 = vmax.f32 %v1669_v9, 0.0 }
 0x28f   : > { %v1824_v5 = vpack.c.bf16 %v1791_v1, %v1780_v18  ;;  %4261 = vmatpush3.bf16.msra.mxu1 %v1826_v15 }
 0x290   : > { %v1825_v10 = vpack.c.bf16 %v1792_v3, %v1781_v2  ;;  %2261 = vmatprep.subr.bf16.mxu1 %v5109_v49  ;;  %v5415_v49 = vld [vmem:[%s6002_s1 + $0x30] sm:$0xff]  }
 0x292   : > { %2027 = vmatprep.subr.bf16.mxu0 %v1825_v10  ;;  %4263 = vmatmul.mubr.msk.bf16.vlgmr.msra.gmra.mrb[92].mxu1 %vm507_vm0, %v5340_v29 }
 0x293   : > { %2028 = vmatpush1.bf16.msra.mxu0 %v1824_v5  ;;  %2262 = vmatpush1.bf16.msra.mxu1 %v5119_v50  ;;  %v5430_v50 = vld [vmem:[%s4735_s7 + $0x18] ss:$44 sps:$4 sm:$0xff]  }
 0x294   : > { %2198 = vmatprep.subr.bf16.mxu0 %v5115_v44  ;;  %2263 = vmatprep.subr.bf16.mxu1 %v5126_v51  ;;  %v5421_v44 = vld [vmem:[%s4735_s7 + $0x1c] ss:$44 sps:$4 sm:$0xff]   ;;  %v5434_v51 = vld [vmem:[%s4735_s7 + $0x74] ss:$44 sps:$4 sm:$0xff]  }
 0x295   : > { %2293 = vmatprep.mubr.bf16.mxu1 %v4594_v0 }
 0x296   : > { %4009 = vmatmul.mubr.msk.bf16.vlgmr.msra.gmra.mrb[92].mxu0 %vm507_vm0, %v5340_v29  ;;  %v5499_v29 = vld [vmem:[%s4735_s7 + $0x28] ss:$44 sps:$4 sm:$0xff]  }
 0x297   : > { %2199 = vmatpush1.bf16.msra.mxu0 %v5130_v52  ;;  %2264 = vmatpush1.bf16.msra.mxu1 %v5139_v56  ;;  %v5442_v52 = vld [vmem:[%s6002_s1 + $0x38] sm:$0xff]  }
 0x298   : > { %2200 = vmatprep.subr.bf16.mxu0 %v5135_v54  ;;  %2265 = vmatprep.subr.bf16.mxu1 %v5143_v53  ;;  %v5445_v54 = vld [vmem:[%s4735_s7 + $0x10] ss:$44 sps:$4 sm:$0xff]   ;;  %v5450_v56 = vld [vmem:[%s4735_s7 + $0x6c] ss:$44 sps:$4 sm:$0xff]  }
 0x299   : > { %2230 = vmatprep.mubr.bf16.mxu0 %v4594_v0  ;;  %v5454_v53 = vld [vmem:[%s4735_s7 + $0x70] ss:$44 sps:$4 sm:$0xff]  }
 0x29b   : > { %2201 = vmatpush1.bf16.msra.mxu0 %v5147_v57  ;;  %2266 = vmatpush1.bf16.msra.mxu1 %v5158_v60  ;;  %v5458_v57 = vld [vmem:[%s4735_s7 + $0xcc] ss:$44 sps:$4 sm:$0xff]   ;;  %v5469_v60 = vld [vmem:[%s4735_s7 + $0xc4] ss:$44 sps:$4 sm:$0xff]  }
 0x29c   : > { %2202 = vmatprep.subr.bf16.mxu0 %v5151_v58  ;;  %2387 = vmatprep.subr.bf16.mxu1 %v5421_v44  ;;  %v5464_v58 = vld [vmem:[%s4735_s7 + $0x68] ss:$44 sps:$4 sm:$0xff]  }
 0x29e   : > { %4051 = vmatmul.mubr.msk.bf16.vlgmr.msra.gmra.mrb[96].mxu1 %vm507_vm0, %v5415_v49 }
 0x29f   : > { %2203 = vmatpush1.bf16.msra.mxu0 %v5163_v61  ;;  %2303 = vmatprep.mubr.bf16.mxu1 %v4594_v0  ;;  %v5473_v61 = vld [vmem:[%s4735_s7 + $0xc8] ss:$44 sps:$4 sm:$0xff]  }
 0x2a0   : > { %2324 = vmatprep.subr.bf16.mxu0 %v5168_v62  ;;  %2388 = vmatpush1.bf16.msra.mxu1 %v5430_v50  ;;  %v4440_v62 = vld [vmem:[%s6002_s1 + $0x40] sm:$0xff]  }
 0x2a1   : > { %2389 = vmatprep.subr.bf16.mxu1 %v5434_v51 }
 0x2a2   : > { %4048 = vmatmul.mubr.msk.bf16.vlgmr.msra.gmra.mrb[96].mxu0 %vm507_vm0, %v5415_v49 }
 0x2a3   : > { %2325 = vmatpush1.bf16.msra.mxu0 %v5445_v54  ;;  %2240 = vmatprep.mubr.bf16.mxu0 %v4594_v0 }
 0x2a4   : > { %2326 = vmatprep.subr.bf16.mxu0 %v5450_v56  ;;  %2390 = vmatpush1.bf16.msra.mxu1 %v5454_v53 }
 0x2a5   : > { %2391 = vmatprep.subr.bf16.mxu1 %v5458_v57 }
 0x2a6   : > { %4052 = vmatmul.mubr.msk.bf16.gmra.mrb[100].mxu1 %vm507_vm0, %v5442_v52 }
 0x2a7   : > { %2327 = vmatpush1.bf16.msra.mxu0 %v5464_v58  ;;  %2313 = vmatprep.mubr.bf16.mxu1 %v4594_v0 }
 0x2a8   : > { %2328 = vmatprep.subr.bf16.mxu0 %v5469_v60  ;;  %2392 = vmatpush1.bf16.msra.mxu1 %v5473_v61 }
 0x2a9   : > { %4266 = vmatprep.subr.bf16.mxu1 %v4595_v31 }
 0x2aa   : > { %4049 = vmatmul.mubr.msk.bf16.gmra.mrb[100].mxu0 %vm507_vm0, %v5442_v52 }
 0x2ab   : > { %2250 = vmatprep.mubr.bf16.mxu0 %v4594_v0  ;;  %2329 = vmatpush1.bf16.msra.mxu0 %v5484_v21 }
 0x2ac   : > { %2450 = vmatprep.subr.bf16.mxu0 %v5488_v23 }
 0x2ae   : > { %4053 = vmatmul.mubr.msk.bf16.gmra.mrb[104].mxu1 %vm507_vm0, %v4440_v62 }
 0x2af   : > { %2419 = vmatprep.mubr.bf16.mxu1 %v4594_v0 }
 0x2b2   : > { %4050 = vmatmul.mubr.msk.bf16.gmra.mrb[104].mxu0 %vm507_vm0, %v4440_v62 }
 0x2b3   : > { %2356 = vmatprep.mubr.bf16.mxu0 %v4594_v0 }
 0x2b6   : > { %4057 = vmatmul.mubr.msk.bf16.vlgmr.msra.gmra.mrb[108].mxu1 %vm507_vm0, %v5415_v49 }
 0x2b7   : > { %2429 = vmatprep.mubr.bf16.mxu1 %v4594_v0  ;;  %4267 = vmatpush3.bf16.msra.mxu1 %v5499_v29 }
 0x2b8   : > { %4268 = vmatprep.subr.bf16.mxu1 %v4595_v31 }
 0x2ba   : > { %4054 = vmatmul.mubr.msk.bf16.vlgmr.msra.gmra.mrb[108].mxu0 %vm507_vm0, %v5415_v49 }
 0x2bb   : > { %2451 = vmatpush1.bf16.msra.mxu0 %v5506_v11  ;;  %2366 = vmatprep.mubr.bf16.mxu0 %v4594_v0 }
 0x2bc   : > { %2452 = vmatprep.subr.bf16.mxu0 %v5511_v14  ;;  %4269 = vmatpush3.bf16.msra.mxu1 %v5515_v4 }
 0x2bd   : > { %4270 = vmatprep.subr.bf16.mxu1 %v4595_v31 }
 0x2be   : > { %4058 = vmatmul.mubr.msk.bf16.gmra.mrb[112].mxu1 %vm507_vm0, %v5442_v52 }
 0x2bf   : > { %2453 = vmatpush1.bf16.msra.mxu0 %v5522_v12  ;;  %2439 = vmatprep.mubr.bf16.mxu1 %v4594_v0 }
 0x2c0   : > { %2454 = vmatprep.subr.bf16.mxu0 %v5527_v6  ;;  %4271 = vmatpush3.bf16.msra.mxu1 %v5531_v55 }
 0x2c2   : > { %4055 = vmatmul.mubr.msk.bf16.gmra.mrb[112].mxu0 %vm507_vm0, %v5442_v52 }
 0x2c3   : > { %2376 = vmatprep.mubr.bf16.mxu0 %v4594_v0  ;;  %2455 = vmatpush1.bf16.msra.mxu0 %v5538_v22 }
 0x2c6   : > { %4059 = vmatmul.mubr.msk.bf16.gmra.mrb[116].mxu1 %vm507_vm0, %v4440_v62 }
 0x2c7   : > { %4272 = vmatprep.mubr.msk.bf16.mxu1 %vm4596_vm1, %v4595_v31 }
 0x2ca   : > { %4056 = vmatmul.mubr.msk.bf16.gmra.mrb[116].mxu0 %vm507_vm0, %v4440_v62 }
 0x2cb   : > { %2482 = vmatprep.mubr.bf16.mxu0 %v4594_v0 }
 0x2ce   : > { %4273 = vmatmul.mubr.msk.bf16.vlgmr.msra.gmra.mrb[120].mxu1 %vm507_vm0, %v5415_v49 }
 0x2cf   : > { %4276 = vmatprep.mubr.msk.bf16.mxu1 %vm4596_vm1, %v4595_v31 }
 0x2d2   : > { %4060 = vmatmul.mubr.msk.bf16.vlgmr.msra.gmra.mrb[120].mxu0 %vm507_vm0, %v5415_v49 }
 0x2d3   : > { %2492 = vmatprep.mubr.bf16.mxu0 %v4594_v0 }
 0x2d6   : > { %4277 = vmatmul.mubr.msk.bf16.gmra.mrb[124].mxu1 %vm507_vm0, %v5442_v52 }
 0x2d7   : > { %4280 = vmatprep.mubr.msk.bf16.mxu1 %vm4596_vm1, %v4595_v31 }
 0x2da   : > { %4061 = vmatmul.mubr.msk.bf16.gmra.mrb[124].mxu0 %vm507_vm0, %v5442_v52 }
 0x2db   : > { %2502 = vmatprep.mubr.bf16.mxu0 %v4594_v0 }
 0x2de   : > { %4281 = vmatmul.mubr.msk.bf16.gmra.mrb[128].mxu1 %vm507_vm0, %v4440_v62 }
 0x2df   : > { %2768 = vmatprep.mubr.bf16.mxu1 %v4594_v0 }
 0x2e2   : > { %4062 = vmatmul.mubr.msk.bf16.gmra.mrb[128].mxu0 %vm507_vm0, %v4440_v62 }
 0x2e3   : > { %2725 = vmatprep.mubr.bf16.mxu0 %v4594_v0 }
 0x337   : > { %v1928_v13 = vpop.f32.mrb[84].mxu1 }
 0x338   : > { %v1929_v7 = vadd.f32 %v1928_v13, %v1836_v28  ;;  %v1930_v32 = vpop.f32.mrb[85].mxu1 }
 0x339   : > { %v1931_v19 = vadd.f32 %v1930_v32, %v1836_v28  ;;  %v1885_v8 = vpop.f32.mrb[84].mxu0  ;;  %v1932_v41 = vpop.f32.mrb[86].mxu1 }
 0x33a   : > { %4013 = vst [vmem:[%s5276_s13 + $0xc0] sm:$0xff] %v1929_v7  ;;  %v1886_v33 = vadd.f32 %v1885_v8, %v1836_v28  ;;  %v1933_v34 = vadd.f32 %v1932_v41, %v5564_v30  ;;  %v1887_v20 = vpop.f32.mrb[85].mxu0  ;;  %v1934_v16 = vpop.f32.mrb[87].mxu1 }
 0x33b   : > { %4014 = vst [vmem:[%s5276_s13 + $0xc8] sm:$0xff] %v1931_v19  ;;  %v1888_v35 = vadd.f32 %v1887_v20, %v1836_v28  ;;  %v1935_v63 = vadd.f32 %v1934_v16, %v5564_v30  ;;  %v1889_v39 = vpop.f32.mrb[86].mxu0 }
 0x33c   : > { %4011 = vst [vmem:[%s5276_s13 + $0xb0] sm:$0xff] %v1886_v33  ;;  %4024 = vst [vmem:[%s5276_s13 + $0x118] sm:$0xff] %v1933_v34  ;;  %v1890_v47 = vadd.f32 %v1889_v39, %v5564_v30  ;;  %v1891_v48 = vpop.f32.mrb[87].mxu0 }
 0x33d   : > { %4012 = vst [vmem:[%s5276_s13 + $0xb8] sm:$0xff] %v1888_v35  ;;  %4025 = vst [vmem:[%s5276_s13 + $0x120] sm:$0xff] %v1935_v63  ;;  %v1892_v17 = vadd.f32 %v1891_v48, %v5564_v30 }
 0x33e   : > { %4022 = vst [vmem:[%s5276_s13 + $0x108] sm:$0xff] %v1890_v47 }
 0x33f   : > { %4023 = vst [vmem:[%s5276_s13 + $0x110] sm:$0xff] %v1892_v17 }
 0x34f   : > { %v2014_v59 = vpop.f32.mrb[88].mxu1 }
 0x350   : > { %v2015_v9 = vadd.f32 %v2014_v59, %v1836_v28  ;;  %v2016_v18 = vpop.f32.mrb[89].mxu1 }
 0x351   : > { %v2017_v15 = vadd.f32 %v2016_v18, %v1836_v28  ;;  %v1971_v1 = vpop.f32.mrb[88].mxu0  ;;  %v2018_v2 = vpop.f32.mrb[90].mxu1 }
 0x352   : > { %4017 = vst [vmem:[%s5276_s13 + $0xe0] sm:$0xff] %v2015_v9  ;;  %v1972_v3 = vadd.f32 %v1971_v1, %v1836_v28  ;;  %v2019_v5 = vadd.f32 %v2018_v2, %v5564_v30  ;;  %v1973_v10 = vpop.f32.mrb[89].mxu0  ;;  %v2020_v49 = vpop.f32.mrb[91].mxu1 }
 0x353   : > { %4018 = vst [vmem:[%s5276_s13 + $0xe8] sm:$0xff] %v2017_v15  ;;  %v1974_v52 = vadd.f32 %v1973_v10, %v1836_v28  ;;  %v2021_v62 = vadd.f32 %v2020_v49, %v5564_v30  ;;  %v1975_v13 = vpop.f32.mrb[90].mxu0 }
 0x354   : > { %4015 = vst [vmem:[%s5276_s13 + $0xd0] sm:$0xff] %v1972_v3  ;;  %4028 = vst [vmem:[%s5276_s13 + $0x138] sm:$0xff] %v2019_v5  ;;  %v1976_v7 = vadd.f32 %v1975_v13, %v5564_v30  ;;  %v1977_v32 = vpop.f32.mrb[91].mxu0 }
 0x355   : > { %4016 = vst [vmem:[%s5276_s13 + $0xd8] sm:$0xff] %v1974_v52  ;;  %4029 = vst [vmem:[%s5276_s13 + $0x140] sm:$0xff] %v2021_v62  ;;  %v1978_v19 = vadd.f32 %v1977_v32, %v5564_v30 }
 0x356   : > { %4026 = vst [vmem:[%s5276_s13 + $0x128] sm:$0xff] %v1976_v7 }
 0x357   : > { %4027 = vst [vmem:[%s5276_s13 + $0x130] sm:$0xff] %v1978_v19 }
 0x365   : > { %v2100_v8 = vpop.f32.mrb[92].mxu1 }
 0x366   : > { %v2101_v41 = vadd.f32 %v2100_v8, %v1836_v28  ;;  %v4264_v33 = vpop.f32.mrb[93].mxu1 }
 0x367   : > { %v2103_v34 = vpop.f32.mrb[94].mxu1 }
 0x368   : > { %4021 = vst [vmem:[%s5276_s13 + $0x100] sm:$0xff] %v2101_v41  ;;  %v2104_v20 = vadd.f32 %v2103_v34, %v5564_v30  ;;  %v4265_v16 = vpop.f32.mrb[95].mxu1 }
 0x369   : > { %v2057_v35 = vpop.f32.mrb[92].mxu0 }
 0x36a   : > { %4032 = vst [vmem:[%s5276_s13 + $0x158] sm:$0xff] %v2104_v20  ;;  %v2058_v63 = vadd.f32 %v2057_v35, %v1836_v28  ;;  %v2059_v39 = vpop.f32.mrb[93].mxu0 }
 0x36b   : > { %v2060_v47 = vadd.f32 %v2059_v39, %v1836_v28  ;;  %v2061_v48 = vpop.f32.mrb[94].mxu0 }
 0x36c   : > { %4019 = vst [vmem:[%s5276_s13 + $0xf0] sm:$0xff] %v2058_v63  ;;  %v2062_v17 = vadd.f32 %v2061_v48, %v5564_v30  ;;  %v2063_v59 = vpop.f32.mrb[95].mxu0 }
 0x36d   : > { %4020 = vst [vmem:[%s5276_s13 + $0xf8] sm:$0xff] %v2060_v47  ;;  %v2064_v9 = vadd.f32 %v2063_v59, %v5564_v30 }
 0x36e   : > { %4030 = vst [vmem:[%s5276_s13 + $0x148] sm:$0xff] %v2062_v17 }
 0x36f   : > { %4031 = vst [vmem:[%s5276_s13 + $0x150] sm:$0xff] %v2064_v9 }
 0x371   : > { %v2295_v18 = vpop.f32.mrb[96].mxu1 }
 0x372   : > { %v2296_v15 = vadd.f32 %v2295_v18, %v5249_v24  ;;  %v2297_v1 = vpop.f32.mrb[97].mxu1 }
 0x373   : > { %v2298_v2 = vadd.f32 %v2297_v1, %v5249_v24  ;;  %v2299_v3 = vpop.f32.mrb[98].mxu1 }
 0x374   : > { %v2300_v5 = vadd.f32 %v2299_v3, %v5251_v25  ;;  %v2301_v28 = vpop.f32.mrb[99].mxu1  ;;  %v2572_v52 = vmax.f32 %v2296_v15, 0.0 }
 0x375   : > { %v2302_v10 = vadd.f32 %v2301_v28, %v5251_v25  ;;  %v2232_v49 = vpop.f32.mrb[96].mxu0  ;;  %v2573_v7 = vmax.f32 %v2298_v2, 0.0 }
 0x376   : > { %v2583_v62 = vmax.f32 %v2300_v5, 0.0  ;;  %v2233_v13 = vadd.f32 %v2232_v49, %v5249_v24  ;;  %v2234_v30 = vpop.f32.mrb[97].mxu0 }
 0x377   : > { %v2584_v32 = vmax.f32 %v2302_v10, 0.0  ;;  %v2235_v19 = vadd.f32 %v2234_v30, %v5249_v24  ;;  %v2236_v8 = vpop.f32.mrb[98].mxu0 }
 0x378   : > { %v2638_v41 = vpack.c.bf16 %v2583_v62, %v2572_v52  ;;  %v2237_v33 = vadd.f32 %v2236_v8, %v5251_v25  ;;  %v2238_v34 = vpop.f32.mrb[99].mxu0  ;;  %v2570_v63 = vmax.f32 %v2233_v13, 0.0 }
 0x379   : > { %v2639_v20 = vpack.c.bf16 %v2584_v32, %v2573_v7  ;;  %v2239_v16 = vadd.f32 %v2238_v34, %v5251_v25  ;;  %v2305_v35 = vpop.f32.mrb[100].mxu1  ;;  %v2571_v17 = vmax.f32 %v2235_v19, 0.0 }
 0x37a   : > { %v2581_v39 = vmax.f32 %v2237_v33, 0.0  ;;  %v2306_v47 = vadd.f32 %v2305_v35, %v5253_v26  ;;  %v2307_v48 = vpop.f32.mrb[101].mxu1 }
 0x37b   : > { %v2582_v59 = vmax.f32 %v2239_v16, 0.0  ;;  %v2308_v9 = vadd.f32 %v2307_v48, %v5253_v26  ;;  %v2309_v18 = vpop.f32.mrb[102].mxu1  ;;  %2736 = vmatprep.subr.bf16.mxu1 %v2639_v20 }
 0x37c   : > { %v2636_v15 = vpack.c.bf16 %v2581_v39, %v2570_v63  ;;  %v2310_v1 = vadd.f32 %v2309_v18, %v5255_v27  ;;  %v2311_v2 = vpop.f32.mrb[103].mxu1  ;;  %2737 = vmatpush1.bf16.msra.mxu1 %v2638_v41  ;;  %v2594_v10 = vmax.f32 %v2306_v47, 0.0 }
 0x37d   : > { %v2637_v3 = vpack.c.bf16 %v2582_v59, %v2571_v17  ;;  %v2312_v5 = vadd.f32 %v2311_v2, %v5255_v27  ;;  %v2242_v28 = vpop.f32.mrb[100].mxu0  ;;  %v2595_v13 = vmax.f32 %v2308_v9, 0.0 }
 0x37e   : > { %v2605_v49 = vmax.f32 %v2310_v1, 0.0  ;;  %v2243_v52 = vadd.f32 %v2242_v28, %v5253_v26  ;;  %v2244_v62 = vpop.f32.mrb[101].mxu0 }
 0x37f   : > { %v2606_v30 = vmax.f32 %v2312_v5, 0.0  ;;  %v2245_v7 = vadd.f32 %v2244_v62, %v5253_v26  ;;  %v2246_v32 = vpop.f32.mrb[102].mxu0  ;;  %2693 = vmatprep.subr.bf16.mxu0 %v2637_v3 }
 0x380   : > { %v2649_v19 = vpack.c.bf16 %v2605_v49, %v2594_v10  ;;  %v2247_v8 = vadd.f32 %v2246_v32, %v5255_v27  ;;  %v2248_v33 = vpop.f32.mrb[103].mxu0  ;;  %2694 = vmatpush1.bf16.msra.mxu0 %v2636_v15  ;;  %v2592_v16 = vmax.f32 %v2243_v52, 0.0 }
 0x381   : > { %v2650_v41 = vpack.c.bf16 %v2606_v30, %v2595_v13  ;;  %v2249_v34 = vadd.f32 %v2248_v33, %v5255_v27  ;;  %v2315_v20 = vpop.f32.mrb[104].mxu1  ;;  %v2593_v47 = vmax.f32 %v2245_v7, 0.0 }
 0x382   : > { %v2603_v35 = vmax.f32 %v2247_v8, 0.0  ;;  %v2316_v63 = vadd.f32 %v2315_v20, %v5257_v36  ;;  %v2317_v39 = vpop.f32.mrb[105].mxu1 }
 0x383   : > { %v2604_v48 = vmax.f32 %v2249_v34, 0.0  ;;  %v2318_v17 = vadd.f32 %v2317_v39, %v5257_v36  ;;  %v2319_v59 = vpop.f32.mrb[106].mxu1  ;;  %2738 = vmatprep.subr.bf16.mxu1 %v2650_v41 }
 0x384   : > { %v2647_v9 = vpack.c.bf16 %v2603_v35, %v2592_v16  ;;  %v2320_v18 = vadd.f32 %v2319_v59, %v5259_v37  ;;  %v2321_v1 = vpop.f32.mrb[107].mxu1  ;;  %2739 = vmatpush1.bf16.msra.mxu1 %v2649_v19  ;;  %v2616_v5 = vmax.f32 %v2316_v63, 0.0 }
 0x385   : > { %v2648_v15 = vpack.c.bf16 %v2604_v48, %v2593_v47  ;;  %v2322_v2 = vadd.f32 %v2321_v1, %v5259_v37  ;;  %v2252_v3 = vpop.f32.mrb[104].mxu0  ;;  %v2617_v52 = vmax.f32 %v2318_v17, 0.0  ;;  %v5628_v17 = vld [vmem:[%s6004_s3 + $0x10] sm:$0xff]  }
 0x386   : > { %v2627_v28 = vmax.f32 %v2320_v18, 0.0  ;;  %v2253_v10 = vadd.f32 %v2252_v3, %v5257_v36  ;;  %v2254_v49 = vpop.f32.mrb[105].mxu0 }
 0x387   : > { %v2628_v62 = vmax.f32 %v2322_v2, 0.0  ;;  %v2255_v13 = vadd.f32 %v2254_v49, %v5257_v36  ;;  %v2256_v30 = vpop.f32.mrb[106].mxu0  ;;  %2695 = vmatprep.subr.bf16.mxu0 %v2648_v15 }
 0x388   : > { %v2660_v7 = vpack.c.bf16 %v2627_v28, %v2616_v5  ;;  %v2257_v32 = vadd.f32 %v2256_v30, %v5259_v37  ;;  %v2258_v8 = vpop.f32.mrb[107].mxu0  ;;  %2696 = vmatpush1.bf16.msra.mxu0 %v2647_v9  ;;  %v2614_v34 = vmax.f32 %v2253_v10, 0.0 }
 0x389   : > { %v2661_v19 = vpack.c.bf16 %v2628_v62, %v2617_v52  ;;  %v2259_v33 = vadd.f32 %v2258_v8, %v5259_v37  ;;  %v2421_v41 = vpop.f32.mrb[108].mxu1  ;;  %v2615_v63 = vmax.f32 %v2255_v13, 0.0 }
 0x38a   : > { %v2625_v20 = vmax.f32 %v2257_v32, 0.0  ;;  %v2422_v16 = vadd.f32 %v2421_v41, %v5249_v24  ;;  %v2423_v35 = vpop.f32.mrb[109].mxu1 }
 0x38b   : > { %v2626_v39 = vmax.f32 %v2259_v33, 0.0  ;;  %v2424_v47 = vadd.f32 %v2423_v35, %v5249_v24  ;;  %v2425_v48 = vpop.f32.mrb[110].mxu1  ;;  %2740 = vmatprep.subr.bf16.mxu1 %v2661_v19 }
 0x38c   : > { %v2658_v59 = vpack.c.bf16 %v2625_v20, %v2614_v34  ;;  %v2426_v9 = vadd.f32 %v2425_v48, %v5251_v25  ;;  %v2427_v18 = vpop.f32.mrb[111].mxu1  ;;  %2741 = vmatpush1.bf16.msra.mxu1 %v2660_v7  ;;  %v2576_v3 = vmax.f32 %v2422_v16, 0.0 }
 0x38d   : > { %v2659_v1 = vpack.c.bf16 %v2626_v39, %v2615_v63  ;;  %v2428_v15 = vadd.f32 %v2427_v18, %v5251_v25  ;;  %v2358_v2 = vpop.f32.mrb[108].mxu0  ;;  %v2577_v49 = vmax.f32 %v2424_v47, 0.0 }
 0x38e   : > { %v2587_v5 = vmax.f32 %v2426_v9, 0.0  ;;  %v2359_v28 = vadd.f32 %v2358_v2, %v5249_v24  ;;  %v2360_v10 = vpop.f32.mrb[109].mxu0 }
 0x38f   : > { %v2588_v52 = vmax.f32 %v2428_v15, 0.0  ;;  %v2361_v62 = vadd.f32 %v2360_v10, %v5249_v24  ;;  %v2362_v13 = vpop.f32.mrb[110].mxu0  ;;  %2697 = vmatprep.subr.bf16.mxu0 %v2659_v1  ;;  %4072 = vmatmul.mubr.msk.bf16.vlgmr.msra.gmra.mrb[132].mxu1 %vm507_vm0, %v5628_v17 }
 0x390   : > { %v2642_v30 = vpack.c.bf16 %v2587_v5, %v2576_v3  ;;  %v2363_v7 = vadd.f32 %v2362_v13, %v5251_v25  ;;  %v2364_v32 = vpop.f32.mrb[111].mxu0  ;;  %2698 = vmatpush1.bf16.msra.mxu0 %v2658_v59  ;;  %2854 = vmatprep.mubr.bf16.mxu1 %v4594_v0  ;;  %v2574_v41 = vmax.f32 %v2359_v28, 0.0 }
 0x391   : > { %v2643_v8 = vpack.c.bf16 %v2588_v52, %v2577_v49  ;;  %v2365_v19 = vadd.f32 %v2364_v32, %v5251_v25  ;;  %v2431_v33 = vpop.f32.mrb[112].mxu1  ;;  %v2575_v35 = vmax.f32 %v2361_v62, 0.0 }
 0x392   : > { %v2585_v34 = vmax.f32 %v2363_v7, 0.0  ;;  %v2432_v20 = vadd.f32 %v2431_v33, %v5253_v26  ;;  %v2433_v16 = vpop.f32.mrb[113].mxu1 }
 0x393   : > { %v2586_v63 = vmax.f32 %v2365_v19, 0.0  ;;  %v2434_v39 = vadd.f32 %v2433_v16, %v5253_v26  ;;  %v2435_v47 = vpop.f32.mrb[114].mxu1  ;;  %4071 = vmatmul.mubr.msk.bf16.vlgmr.msra.gmra.mrb[132].mxu0 %vm507_vm0, %v5628_v17  ;;  %2822 = vmatprep.subr.bf16.mxu1 %v2643_v8 }
 0x394   : > { %v2640_v48 = vpack.c.bf16 %v2585_v34, %v2574_v41  ;;  %v2436_v59 = vadd.f32 %v2435_v47, %v5255_v27  ;;  %v2437_v9 = vpop.f32.mrb[115].mxu1  ;;  %2823 = vmatpush1.bf16.msra.mxu1 %v2642_v30  ;;  %2811 = vmatprep.mubr.bf16.mxu0 %v4594_v0  ;;  %v2598_v2 = vmax.f32 %v2432_v20, 0.0 }
 0x395   : > { %v2641_v18 = vpack.c.bf16 %v2586_v63, %v2575_v35  ;;  %v2438_v1 = vadd.f32 %v2437_v9, %v5255_v27  ;;  %v2368_v15 = vpop.f32.mrb[112].mxu0  ;;  %v2599_v10 = vmax.f32 %v2434_v39, 0.0 }
 0x396   : > { %v2609_v3 = vmax.f32 %v2436_v59, 0.0  ;;  %v2369_v5 = vadd.f32 %v2368_v15, %v5253_v26  ;;  %v2370_v28 = vpop.f32.mrb[113].mxu0 }
 0x397   : > { %v2610_v49 = vmax.f32 %v2438_v1, 0.0  ;;  %v2371_v52 = vadd.f32 %v2370_v28, %v5253_v26  ;;  %v2372_v62 = vpop.f32.mrb[114].mxu0  ;;  %2779 = vmatprep.subr.bf16.mxu0 %v2641_v18 }
 0x398   : > { %v2653_v13 = vpack.c.bf16 %v2609_v3, %v2598_v2  ;;  %v2373_v30 = vadd.f32 %v2372_v62, %v5255_v27  ;;  %v2374_v7 = vpop.f32.mrb[115].mxu0  ;;  %2780 = vmatpush1.bf16.msra.mxu0 %v2640_v48  ;;  %v2596_v33 = vmax.f32 %v2369_v5, 0.0 }
 0x399   : > { %v2654_v32 = vpack.c.bf16 %v2610_v49, %v2599_v10  ;;  %v2375_v8 = vadd.f32 %v2374_v7, %v5255_v27  ;;  %v2441_v19 = vpop.f32.mrb[116].mxu1  ;;  %v2597_v16 = vmax.f32 %v2371_v52, 0.0 }
 0x39a   : > { %v2607_v41 = vmax.f32 %v2373_v30, 0.0  ;;  %v2442_v34 = vadd.f32 %v2441_v19, %v5257_v36  ;;  %v2443_v20 = vpop.f32.mrb[117].mxu1 }
 0x39b   : > { %v2608_v35 = vmax.f32 %v2375_v8, 0.0  ;;  %v2444_v63 = vadd.f32 %v2443_v20, %v5257_v36  ;;  %v2445_v39 = vpop.f32.mrb[118].mxu1  ;;  %2824 = vmatprep.subr.bf16.mxu1 %v2654_v32 }
 0x39c   : > { %v2651_v47 = vpack.c.bf16 %v2607_v41, %v2596_v33  ;;  %v2446_v59 = vadd.f32 %v2445_v39, %v5259_v37  ;;  %v2447_v9 = vpop.f32.mrb[119].mxu1  ;;  %2825 = vmatpush1.bf16.msra.mxu1 %v2653_v13  ;;  %v2620_v15 = vmax.f32 %v2442_v34, 0.0 }
 0x39d   : > { %v2652_v48 = vpack.c.bf16 %v2608_v35, %v2597_v16  ;;  %v2448_v18 = vadd.f32 %v2447_v9, %v5259_v37  ;;  %v2378_v1 = vpop.f32.mrb[116].mxu0  ;;  %v2621_v28 = vmax.f32 %v2444_v63, 0.0 }
 0x39e   : > { %v2631_v2 = vmax.f32 %v2446_v59, 0.0  ;;  %v2379_v3 = vadd.f32 %v2378_v1, %v5257_v36  ;;  %v2380_v5 = vpop.f32.mrb[117].mxu0 }
 0x39f   : > { %v2632_v10 = vmax.f32 %v2448_v18, 0.0  ;;  %v2381_v49 = vadd.f32 %v2380_v5, %v5257_v36  ;;  %v2382_v52 = vpop.f32.mrb[118].mxu0  ;;  %2781 = vmatprep.subr.bf16.mxu0 %v2652_v48 }
 0x3a0   : > { %v2664_v62 = vpack.c.bf16 %v2631_v2, %v2620_v15  ;;  %v2383_v30 = vadd.f32 %v2382_v52, %v5259_v37  ;;  %v2384_v7 = vpop.f32.mrb[119].mxu0  ;;  %2782 = vmatpush1.bf16.msra.mxu0 %v2651_v47  ;;  %v2618_v19 = vmax.f32 %v2379_v3, 0.0 }
 0x3a1   : > { %v2665_v13 = vpack.c.bf16 %v2632_v10, %v2621_v28  ;;  %v2385_v32 = vadd.f32 %v2384_v7, %v5259_v37  ;;  %v2547_v8 = vpop.f32.mrb[120].mxu1  ;;  %v2619_v20 = vmax.f32 %v2381_v49, 0.0 }
 0x3a2   : > { %v2629_v33 = vmax.f32 %v2383_v30, 0.0  ;;  %v2548_v41 = vadd.f32 %v2547_v8, %v5249_v24  ;;  %v4274_v34 = vpop.f32.mrb[121].mxu1 }
 0x3a3   : > { %v2630_v16 = vmax.f32 %v2385_v32, 0.0  ;;  %v2550_v35 = vpop.f32.mrb[122].mxu1  ;;  %2826 = vmatprep.subr.bf16.mxu1 %v2665_v13 }
 0x3a4   : > { %v2662_v63 = vpack.c.bf16 %v2629_v33, %v2618_v19  ;;  %v2551_v39 = vadd.f32 %v2550_v35, %v5251_v25  ;;  %2827 = vmatpush1.bf16.msra.mxu1 %v2664_v62  ;;  %v4275_v59 = vpop.f32.mrb[123].mxu1  ;;  %v2580_v48 = vmax.f32 %v2548_v41, 0.0 }
 0x3a5   : > { %v2663_v9 = vpack.c.bf16 %v2630_v16, %v2619_v20  ;;  %v2484_v47 = vpop.f32.mrb[120].mxu0  ;;  %4284 = vmatprep.subr.bf16.mxu1 %v4595_v31 }
 0x3a6   : > { %v2591_v18 = vmax.f32 %v2551_v39, 0.0  ;;  %v2485_v1 = vadd.f32 %v2484_v47, %v5249_v24  ;;  %v2486_v15 = vpop.f32.mrb[121].mxu0 }
 0x3a7   : > { %v2487_v2 = vadd.f32 %v2486_v15, %v5249_v24  ;;  %v2488_v3 = vpop.f32.mrb[122].mxu0  ;;  %2783 = vmatprep.subr.bf16.mxu0 %v2663_v9  ;;  %4074 = vmatmul.mubr.msk.bf16.vlgmr.msra.gmra.mrb[136].mxu1 %vm507_vm0, %v5628_v17 }
 0x3a8   : > { %v2646_v5 = vpack.c.bf16 %v2591_v18, %v2580_v48  ;;  %v2489_v28 = vadd.f32 %v2488_v3, %v5251_v25  ;;  %v2490_v10 = vpop.f32.mrb[123].mxu0  ;;  %2784 = vmatpush1.bf16.msra.mxu0 %v2662_v63  ;;  %4290 = vmatprep.mubr.msk.bf16.mxu1 %vm4596_vm1, %v4595_v31  ;;  %v2578_v62 = vmax.f32 %v2485_v1, 0.0 }
 0x3a9   : > { %v2491_v49 = vadd.f32 %v2490_v10, %v5251_v25  ;;  %v2555_v52 = vpop.f32.mrb[124].mxu1  ;;  %v2579_v13 = vmax.f32 %v2487_v2, 0.0 }
 0x3aa   : > { %v2589_v30 = vmax.f32 %v2489_v28, 0.0  ;;  %v2556_v24 = vadd.f32 %v2555_v52, %v5253_v26  ;;  %v4278_v7 = vpop.f32.mrb[125].mxu1  ;;  %4285 = vmatpush3.bf16.msra.mxu1 %v2646_v5 }
 0x3ab   : > { %v2590_v32 = vmax.f32 %v2491_v49, 0.0  ;;  %v2558_v8 = vpop.f32.mrb[126].mxu1  ;;  %4073 = vmatmul.mubr.msk.bf16.vlgmr.msra.gmra.mrb[136].mxu0 %vm507_vm0, %v5628_v17  ;;  %4286 = vmatprep.subr.bf16.mxu1 %v4595_v31 }
 0x3ac   : > { %v2644_v19 = vpack.c.bf16 %v2589_v30, %v2578_v62  ;;  %v2559_v33 = vadd.f32 %v2558_v8, %v5255_v27  ;;  %v4279_v41 = vpop.f32.mrb[127].mxu1  ;;  %2897 = vmatprep.mubr.bf16.mxu0 %v4594_v0  ;;  %v2602_v20 = vmax.f32 %v2556_v24, 0.0 }
 0x3ad   : > { %v2645_v25 = vpack.c.bf16 %v2590_v32, %v2579_v13  ;;  %v2494_v34 = vpop.f32.mrb[124].mxu0 }
 0x3ae   : > { %v2613_v16 = vmax.f32 %v2559_v33, 0.0  ;;  %v2495_v35 = vadd.f32 %v2494_v34, %v5253_v26  ;;  %v2496_v63 = vpop.f32.mrb[125].mxu0 }
 0x3af   : > { %v2497_v39 = vadd.f32 %v2496_v63, %v5253_v26  ;;  %v2498_v59 = vpop.f32.mrb[126].mxu0  ;;  %2865 = vmatprep.subr.bf16.mxu0 %v2645_v25 }
 0x3b0   : > { %v2657_v9 = vpack.c.bf16 %v2613_v16, %v2602_v20  ;;  %v2499_v47 = vadd.f32 %v2498_v59, %v5255_v27  ;;  %v2500_v48 = vpop.f32.mrb[127].mxu0  ;;  %2866 = vmatpush1.bf16.msra.mxu0 %v2644_v19  ;;  %v2600_v15 = vmax.f32 %v2495_v35, 0.0 }
 0x3b1   : > { %v2501_v18 = vadd.f32 %v2500_v48, %v5255_v27  ;;  %v2563_v1 = vpop.f32.mrb[128].mxu1  ;;  %v2601_v28 = vmax.f32 %v2497_v39, 0.0  ;;  %v4479_v39 = vld [vmem:[%s4735_s7 + $0xc] ss:$44 sps:$4 sm:$0xff]  }
 0x3b2   : > { %v2611_v2 = vmax.f32 %v2499_v47, 0.0  ;;  %v2564_v3 = vadd.f32 %v2563_v1, %v5257_v36  ;;  %v4282_v5 = vpop.f32.mrb[129].mxu1  ;;  %4287 = vmatpush3.bf16.msra.mxu1 %v2657_v9  ;;  %v4480_v9 = vld [vmem:[%s4735_s7 + $0x8] ss:$44 sps:$4 sm:$0xff]   ;;  %v4482_v47 = vld [vmem:[%s4735_s7 + $0x4] ss:$44 sps:$4 sm:$0xff]  }
 0x3b3   : > { %v2612_v10 = vmax.f32 %v2501_v18, 0.0  ;;  %v2566_v49 = vpop.f32.mrb[130].mxu1  ;;  %4288 = vmatprep.subr.bf16.mxu1 %v4595_v31  ;;  %v4483_v48 = vld [vmem:[%s4735_s7 + $0x60] ss:$44 sps:$4 sm:$0xff]   ;;  %v4484_v18 = vld [vmem:[%s4735_s7 + $0xbc] ss:$44 sps:$4 sm:$0xff]  }
 0x3b4   : > { %v2655_v26 = vpack.c.bf16 %v2611_v2, %v2600_v15  ;;  %v2567_v52 = vadd.f32 %v2566_v49, %v5259_v37  ;;  %v4283_v62 = vpop.f32.mrb[131].mxu1  ;;  %v2624_v7 = vmax.f32 %v2564_v3, 0.0  ;;  %v4485_v1 = vld [vmem:[%s4735_s7] ss:$44 sps:$4 sm:$0xff]   ;;  %v4486_v15 = vld [vmem:[%s4735_s7 + $0x5c] ss:$44 sps:$4 sm:$0xff]  }
 0x3b5   : > { %v2656_v30 = vpack.c.bf16 %v2612_v10, %v2601_v28  ;;  %v2504_v24 = vpop.f32.mrb[128].mxu0  ;;  %v4442_v2 = vld [vmem:[%s6002_s1 + $0x48] sm:$0xff]   ;;  %v4490_v28 = vld [vmem:[%s4735_s7 + $0xb0] ss:$44 sps:$4 sm:$0xff]  }
 0x3b6   : > { %v2635_v27 = vmax.f32 %v2567_v52, 0.0  ;;  %v2505_v13 = vadd.f32 %v2504_v24, %v5257_v36  ;;  %v2506_v32 = vpop.f32.mrb[129].mxu0  ;;  %v4487_v3 = vld [vmem:[%s4735_s7 + $0xb8] ss:$44 sps:$4 sm:$0xff]   ;;  %v4491_v10 = vld [vmem:[%s4735_s7 + $0x14] ss:$44 sps:$4 sm:$0xff]  }
 0x3b7   : > { %v2507_v8 = vadd.f32 %v2506_v32, %v5257_v36  ;;  %v2508_v19 = vpop.f32.mrb[130].mxu0  ;;  %2867 = vmatprep.subr.bf16.mxu0 %v2656_v30  ;;  %v4488_v5 = vld [vmem:[%s4735_s7 + $0x58] ss:$44 sps:$4 sm:$0xff]  }
 0x3b8   : > { %v2668_v33 = vpack.c.bf16 %v2635_v27, %v2624_v7  ;;  %v2509_v41 = vadd.f32 %v2508_v19, %v5259_v37  ;;  %v2510_v25 = vpop.f32.mrb[131].mxu0  ;;  %2868 = vmatpush1.bf16.msra.mxu0 %v2655_v26  ;;  %v2622_v20 = vmax.f32 %v2505_v13, 0.0 }
 0x3b9   : > { %v2511_v34 = vadd.f32 %v2510_v25, %v5259_v37  ;;  %v2623_v35 = vmax.f32 %v2507_v8, 0.0  ;;  %v4481_v37 = vld [vmem:[%s4735_s7 + $0x64] ss:$44 sps:$4 sm:$0xff]  }
 0x3ba   : > { %v2633_v16 = vmax.f32 %v2509_v41, 0.0  ;;  %4289 = vmatpush3.bf16.msra.mxu1 %v2668_v33 }
 0x3bb   : > { %v2634_v63 = vmax.f32 %v2511_v34, 0.0  ;;  %3103 = vmatprep.subr.bf16.mxu1 %v4479_v39 }
 0x3bc   : > { %v2666_v36 = vpack.c.bf16 %v2633_v16, %v2622_v20 }
 0x3bd   : > { %v2667_v59 = vpack.c.bf16 %v2634_v63, %v2623_v35  ;;  %4291 = vmatmul.mubr.msk.bf16.vlgmr.msra.gmra.mrb[140].mxu1 %vm507_vm0, %v5628_v17 }
 0x3be   : > { %3104 = vmatpush1.bf16.msra.mxu1 %v4480_v9  ;;  %3135 = vmatprep.mubr.bf16.mxu1 %v4594_v0 }
 0x3bf   : > { %2869 = vmatprep.subr.bf16.mxu0 %v2667_v59  ;;  %3105 = vmatprep.subr.bf16.mxu1 %v4481_v37 }
 0x3c0   : > { %2870 = vmatpush1.bf16.msra.mxu0 %v2666_v36 }
 0x3c1   : > { %3040 = vmatprep.subr.bf16.mxu0 %v4482_v47 }
 0x3c2   : > { %3106 = vmatpush1.bf16.msra.mxu1 %v4483_v48 }
 0x3c3   : > { %4075 = vmatmul.mubr.msk.bf16.vlgmr.msra.gmra.mrb[140].mxu0 %vm507_vm0, %v5628_v17  ;;  %3107 = vmatprep.subr.bf16.mxu1 %v4484_v18  ;;  %v4489_v17 = vld [vmem:[%s4735_s7 + $0xb4] ss:$44 sps:$4 sm:$0xff]  }
 0x3c4   : > { %3041 = vmatpush1.bf16.msra.mxu0 %v4485_v1  ;;  %3072 = vmatprep.mubr.bf16.mxu0 %v4594_v0 }
 0x3c5   : > { %3042 = vmatprep.subr.bf16.mxu0 %v4486_v15 }
 0x3c6   : > { %3108 = vmatpush1.bf16.msra.mxu1 %v4487_v3 }
 0x3c7   : > { %3229 = vmatprep.subr.bf16.mxu1 %v5421_v44  ;;  %v4443_v44 = vld [vmem:[%s6002_s1 + $0x50] sm:$0xff]  }
 0x3c8   : > { %3043 = vmatpush1.bf16.msra.mxu0 %v4488_v5 }
 0x3c9   : > { %4117 = vmatmul.mubr.msk.bf16.vlgmr.msra.gmra.mrb[144].mxu1 %vm507_vm0, %v4442_v2  ;;  %3044 = vmatprep.subr.bf16.mxu0 %v4489_v17 }
 0x3ca   : > { %3145 = vmatprep.mubr.bf16.mxu1 %v4594_v0  ;;  %3230 = vmatpush1.bf16.msra.mxu1 %v5430_v50  ;;  %v4444_v50 = vld [vmem:[%s6002_s1 + $0x58] sm:$0xff]  }
 0x3cb   : > { %3231 = vmatprep.subr.bf16.mxu1 %v5434_v51  ;;  %v2678_v51 = vpop.permute.xlu0 %2677 }
 0x3cc   : > { %3045 = vmatpush1.bf16.msra.mxu0 %v4490_v28 }
 0x3cd   : > { %3166 = vmatprep.subr.bf16.mxu0 %v4491_v10 }
 0x3ce   : > { %3232 = vmatpush1.bf16.msra.mxu1 %v5454_v53 }
 0x3cf   : > { %4114 = vmatmul.mubr.msk.bf16.vlgmr.msra.gmra.mrb[144].mxu0 %vm507_vm0, %v4442_v2  ;;  %3233 = vmatprep.subr.bf16.mxu1 %v5458_v57  ;;  %v5776_v57 = vpop.permute.xlu1 %2682 }
 0x3d0   : > { %3167 = vmatpush1.bf16.msra.mxu0 %v5445_v54  ;;  %3082 = vmatprep.mubr.bf16.mxu0 %v4594_v0 }
 0x3d1   : > { %4118 = vmatmul.mubr.msk.bf16.gmra.mrb[148].mxu1 %vm507_vm0, %v4443_v44  ;;  %3168 = vmatprep.subr.bf16.mxu0 %v5450_v56 }
 0x3d2   : > { %3155 = vmatprep.mubr.bf16.mxu1 %v4594_v0  ;;  %3234 = vmatpush1.bf16.msra.mxu1 %v5473_v61 }
 0x3d3   : > { %4294 = vmatprep.subr.bf16.mxu1 %v4595_v31 }
 0x3d4   : > { %3169 = vmatpush1.bf16.msra.mxu0 %v5464_v58 }
 0x3d5   : > { %3170 = vmatprep.subr.bf16.mxu0 %v5469_v60 }
 0x3d7   : > { %4115 = vmatmul.mubr.msk.bf16.gmra.mrb[148].mxu0 %vm507_vm0, %v4443_v44 }
 0x3d8   : > { %3092 = vmatprep.mubr.bf16.mxu0 %v4594_v0  ;;  %3171 = vmatpush1.bf16.msra.mxu0 %v5484_v21 }
 0x3d9   : > { %4119 = vmatmul.mubr.msk.bf16.gmra.mrb[152].mxu1 %vm507_vm0, %v4444_v50  ;;  %3292 = vmatprep.subr.bf16.mxu0 %v5488_v23 }
 0x3da   : > { %3261 = vmatprep.mubr.bf16.mxu1 %v4594_v0 }
 0x3df   : > { %4116 = vmatmul.mubr.msk.bf16.gmra.mrb[152].mxu0 %vm507_vm0, %v4444_v50 }
 0x3e0   : > { %3198 = vmatprep.mubr.bf16.mxu0 %v4594_v0 }
 0x3e1   : > { %4123 = vmatmul.mubr.msk.bf16.vlgmr.msra.gmra.mrb[156].mxu1 %vm507_vm0, %v4442_v2 }
 0x3e2   : > { %3271 = vmatprep.mubr.bf16.mxu1 %v4594_v0  ;;  %4295 = vmatpush3.bf16.msra.mxu1 %v5499_v29 }
 0x3e3   : > { %4296 = vmatprep.subr.bf16.mxu1 %v4595_v31 }
 0x3e6   : > { %4297 = vmatpush3.bf16.msra.mxu1 %v5515_v4 }
 0x3e7   : > { %4120 = vmatmul.mubr.msk.bf16.vlgmr.msra.gmra.mrb[156].mxu0 %vm507_vm0, %v4442_v2  ;;  %4298 = vmatprep.subr.bf16.mxu1 %v4595_v31 }
 0x3e8   : > { %3293 = vmatpush1.bf16.msra.mxu0 %v5506_v11  ;;  %3208 = vmatprep.mubr.bf16.mxu0 %v4594_v0 }
 0x3e9   : > { %4124 = vmatmul.mubr.msk.bf16.gmra.mrb[160].mxu1 %vm507_vm0, %v4443_v44  ;;  %3294 = vmatprep.subr.bf16.mxu0 %v5511_v14 }
 0x3ea   : > { %3281 = vmatprep.mubr.bf16.mxu1 %v4594_v0  ;;  %4299 = vmatpush3.bf16.msra.mxu1 %v5531_v55 }
 0x3ec   : > { %3295 = vmatpush1.bf16.msra.mxu0 %v5522_v12 }
 0x3ed   : > { %3296 = vmatprep.subr.bf16.mxu0 %v5527_v6 }
 0x3ef   : > { %4121 = vmatmul.mubr.msk.bf16.gmra.mrb[160].mxu0 %vm507_vm0, %v4443_v44 }
 0x3f0   : > { %3218 = vmatprep.mubr.bf16.mxu0 %v4594_v0  ;;  %3297 = vmatpush1.bf16.msra.mxu0 %v5538_v22 }
 0x3f1   : > { %4125 = vmatmul.mubr.msk.bf16.gmra.mrb[164].mxu1 %vm507_vm0, %v4444_v50 }
 0x3f2   : > { %4300 = vmatprep.mubr.msk.bf16.mxu1 %vm4596_vm1, %v4595_v31 }
 0x3f7   : > { %4122 = vmatmul.mubr.msk.bf16.gmra.mrb[164].mxu0 %vm507_vm0, %v4444_v50 }
 0x3f8   : > { %3324 = vmatprep.mubr.bf16.mxu0 %v4594_v0 }
 0x3f9   : > { %4301 = vmatmul.mubr.msk.bf16.vlgmr.msra.gmra.mrb[168].mxu1 %vm507_vm0, %v4442_v2 }
 0x3fa   : > { %4304 = vmatprep.mubr.msk.bf16.mxu1 %vm4596_vm1, %v4595_v31 }
 0x3ff   : > { %4126 = vmatmul.mubr.msk.bf16.vlgmr.msra.gmra.mrb[168].mxu0 %vm507_vm0, %v4442_v2 }
 0x400   : > { %3334 = vmatprep.mubr.bf16.mxu0 %v4594_v0 }
 0x401   : > { %4305 = vmatmul.mubr.msk.bf16.gmra.mrb[172].mxu1 %vm507_vm0, %v4443_v44 }
 0x402   : > { %4308 = vmatprep.mubr.msk.bf16.mxu1 %vm4596_vm1, %v4595_v31 }
 0x407   : > { %4127 = vmatmul.mubr.msk.bf16.gmra.mrb[172].mxu0 %vm507_vm0, %v4443_v44 }
 0x408   : > { %3344 = vmatprep.mubr.bf16.mxu0 %v4594_v0 }
 0x409   : > { %4309 = vmatmul.mubr.msk.bf16.gmra.mrb[176].mxu1 %vm507_vm0, %v4444_v50 }
 0x40a   : > { %3610 = vmatprep.mubr.bf16.mxu1 %v4594_v0 }
 0x40f   : > { %4128 = vmatmul.mubr.msk.bf16.gmra.mrb[176].mxu0 %vm507_vm0, %v4444_v50 }
 0x410   : > { %3567 = vmatprep.mubr.bf16.mxu0 %v4594_v0 }
 0x462   : > { %v2770_v54 = vpop.f32.mrb[132].mxu1 }
 0x463   : > { %v2771_v56 = vadd.f32 %v2770_v54, %v2678_v51  ;;  %v2772_v53 = vpop.f32.mrb[133].mxu1 }
 0x464   : > { %v2773_v58 = vadd.f32 %v2772_v53, %v2678_v51  ;;  %v2774_v60 = vpop.f32.mrb[134].mxu1 }
 0x465   : > { %4079 = vst [vmem:[%s5276_s13 + $0x170] sm:$0xff] %v2771_v56  ;;  %v2775_v61 = vadd.f32 %v2774_v60, %v5776_v57  ;;  %v2776_v21 = vpop.f32.mrb[135].mxu1 }
 0x466   : > { %4080 = vst [vmem:[%s5276_s13 + $0x178] sm:$0xff] %v2773_v58  ;;  %v2777_v23 = vadd.f32 %v2776_v21, %v5776_v57  ;;  %v2727_v29 = vpop.f32.mrb[132].mxu0 }
 0x467   : > { %4090 = vst [vmem:[%s5276_s13 + $0x1c8] sm:$0xff] %v2775_v61  ;;  %v2728_v11 = vadd.f32 %v2727_v29, %v2678_v51  ;;  %v2729_v14 = vpop.f32.mrb[133].mxu0 }
 0x468   : > { %4091 = vst [vmem:[%s5276_s13 + $0x1d0] sm:$0xff] %v2777_v23  ;;  %v2730_v4 = vadd.f32 %v2729_v14, %v2678_v51  ;;  %v2731_v12 = vpop.f32.mrb[134].mxu0 }
 0x469   : > { %4077 = vst [vmem:[%s5276_s13 + $0x160] sm:$0xff] %v2728_v11  ;;  %v2732_v6 = vadd.f32 %v2731_v12, %v5776_v57  ;;  %v2733_v55 = vpop.f32.mrb[135].mxu0 }
 0x46a   : > { %4078 = vst [vmem:[%s5276_s13 + $0x168] sm:$0xff] %v2730_v4  ;;  %v2734_v22 = vadd.f32 %v2733_v55, %v5776_v57 }
 0x46b   : > { %4088 = vst [vmem:[%s5276_s13 + $0x1b8] sm:$0xff] %v2732_v6 }
 0x46c   : > { %4089 = vst [vmem:[%s5276_s13 + $0x1c0] sm:$0xff] %v2734_v22 }
 0x47a   : > { %v2856_v49 = vpop.f32.mrb[136].mxu1 }
 0x47b   : > { %v2857_v26 = vadd.f32 %v2856_v49, %v2678_v51  ;;  %v2858_v52 = vpop.f32.mrb[137].mxu1 }
 0x47c   : > { %v2859_v62 = vadd.f32 %v2858_v52, %v2678_v51  ;;  %v2860_v30 = vpop.f32.mrb[138].mxu1 }
 0x47d   : > { %4083 = vst [vmem:[%s5276_s13 + $0x190] sm:$0xff] %v2857_v26  ;;  %v2861_v24 = vadd.f32 %v2860_v30, %v5776_v57  ;;  %v2862_v7 = vpop.f32.mrb[139].mxu1 }
 0x47e   : > { %4084 = vst [vmem:[%s5276_s13 + $0x198] sm:$0xff] %v2859_v62  ;;  %v2863_v27 = vadd.f32 %v2862_v7, %v5776_v57  ;;  %v2813_v13 = vpop.f32.mrb[136].mxu0 }
 0x47f   : > { %4094 = vst [vmem:[%s5276_s13 + $0x1e8] sm:$0xff] %v2861_v24  ;;  %v2814_v32 = vadd.f32 %v2813_v13, %v2678_v51  ;;  %v2815_v8 = vpop.f32.mrb[137].mxu0 }
 0x480   : > { %4095 = vst [vmem:[%s5276_s13 + $0x1f0] sm:$0xff] %v2863_v27  ;;  %v2816_v19 = vadd.f32 %v2815_v8, %v2678_v51  ;;  %v2817_v33 = vpop.f32.mrb[138].mxu0 }
 0x481   : > { %4081 = vst [vmem:[%s5276_s13 + $0x180] sm:$0xff] %v2814_v32  ;;  %v2818_v41 = vadd.f32 %v2817_v33, %v5776_v57  ;;  %v2819_v25 = vpop.f32.mrb[139].mxu0 }
 0x482   : > { %4082 = vst [vmem:[%s5276_s13 + $0x188] sm:$0xff] %v2816_v19  ;;  %v2820_v34 = vadd.f32 %v2819_v25, %v5776_v57 }
 0x483   : > { %4092 = vst [vmem:[%s5276_s13 + $0x1d8] sm:$0xff] %v2818_v41 }
 0x484   : > { %4093 = vst [vmem:[%s5276_s13 + $0x1e0] sm:$0xff] %v2820_v34 }
 0x490   : > { %v2942_v20 = vpop.f32.mrb[140].mxu1 }
 0x491   : > { %v2943_v16 = vadd.f32 %v2942_v20, %v2678_v51  ;;  %v4292_v35 = vpop.f32.mrb[141].mxu1 }
 0x492   : > { %v2945_v63 = vpop.f32.mrb[142].mxu1 }
 0x493   : > { %4087 = vst [vmem:[%s5276_s13 + $0x1b0] sm:$0xff] %v2943_v16  ;;  %v2946_v39 = vadd.f32 %v2945_v63, %v5776_v57  ;;  %v4293_v36 = vpop.f32.mrb[143].mxu1 }
 0x495   : > { %4098 = vst [vmem:[%s5276_s13 + $0x208] sm:$0xff] %v2946_v39 }
 0x496   : > { %v2899_v59 = vpop.f32.mrb[140].mxu0 }
 0x497   : > { %v2900_v9 = vadd.f32 %v2899_v59, %v2678_v51  ;;  %v2901_v37 = vpop.f32.mrb[141].mxu0 }
 0x498   : > { %v2902_v47 = vadd.f32 %v2901_v37, %v2678_v51  ;;  %v2903_v48 = vpop.f32.mrb[142].mxu0 }
 0x499   : > { %4085 = vst [vmem:[%s5276_s13 + $0x1a0] sm:$0xff] %v2900_v9  ;;  %v2904_v18 = vadd.f32 %v2903_v48, %v5776_v57  ;;  %v2905_v1 = vpop.f32.mrb[143].mxu0 }
 0x49a   : > { %4086 = vst [vmem:[%s5276_s13 + $0x1a8] sm:$0xff] %v2902_v47  ;;  %v2906_v15 = vadd.f32 %v2905_v1, %v5776_v57 }
 0x49b   : > { %4096 = vst [vmem:[%s5276_s13 + $0x1f8] sm:$0xff] %v2904_v18 }
 0x49c   : > { %4097 = vst [vmem:[%s5276_s13 + $0x200] sm:$0xff] %v2906_v15  ;;  %v3137_v2 = vpop.f32.mrb[144].mxu1 }
 0x49d   : > { %v3138_v3 = vadd.f32 %v3137_v2, %v5261_v38  ;;  %v3139_v5 = vpop.f32.mrb[145].mxu1 }
 0x49e   : > { %v3140_v17 = vadd.f32 %v3139_v5, %v5261_v38  ;;  %v3141_v28 = vpop.f32.mrb[146].mxu1 }
 0x49f   : > { %v3142_v10 = vadd.f32 %v3141_v28, %v5263_v40  ;;  %v3143_v44 = vpop.f32.mrb[147].mxu1  ;;  %v3414_v51 = vmax.f32 %v3138_v3, 0.0 }
 0x4a0   : > { %v3144_v50 = vadd.f32 %v3143_v44, %v5263_v40  ;;  %v3415_v56 = vmax.f32 %v3140_v17, 0.0 }
 0x4a1   : > { %v3425_v54 = vmax.f32 %v3142_v10, 0.0 }
 0x4a2   : > { %v3426_v53 = vmax.f32 %v3144_v50, 0.0  ;;  %v3074_v58 = vpop.f32.mrb[144].mxu0 }
 0x4a3   : > { %v3480_v57 = vpack.c.bf16 %v3425_v54, %v3414_v51  ;;  %v3075_v60 = vadd.f32 %v3074_v58, %v5261_v38  ;;  %v3076_v61 = vpop.f32.mrb[145].mxu0 }
 0x4a4   : > { %v3481_v21 = vpack.c.bf16 %v3426_v53, %v3415_v56  ;;  %v3077_v23 = vadd.f32 %v3076_v61, %v5261_v38  ;;  %v3078_v29 = vpop.f32.mrb[146].mxu0  ;;  %v3147_v11 = vpop.f32.mrb[148].mxu1 }
 0x4a5   : > { %v3079_v14 = vadd.f32 %v3078_v29, %v5263_v40  ;;  %v3148_v4 = vadd.f32 %v3147_v11, %v5265_v42  ;;  %v3080_v12 = vpop.f32.mrb[147].mxu0  ;;  %v3149_v6 = vpop.f32.mrb[149].mxu1  ;;  %v3412_v26 = vmax.f32 %v3075_v60, 0.0 }
 0x4a6   : > { %v3081_v55 = vadd.f32 %v3080_v12, %v5263_v40  ;;  %v3150_v22 = vadd.f32 %v3149_v6, %v5265_v42  ;;  %v3151_v49 = vpop.f32.mrb[150].mxu1  ;;  %3578 = vmatprep.subr.bf16.mxu1 %v3481_v21  ;;  %v3413_v24 = vmax.f32 %v3077_v23, 0.0 }
 0x4a7   : > { %v3423_v52 = vmax.f32 %v3079_v14, 0.0  ;;  %v3152_v62 = vadd.f32 %v3151_v49, %v5267_v43  ;;  %v3153_v30 = vpop.f32.mrb[151].mxu1  ;;  %3579 = vmatpush1.bf16.msra.mxu1 %v3480_v57  ;;  %v3436_v32 = vmax.f32 %v3148_v4, 0.0 }
 0x4a8   : > { %v3424_v7 = vmax.f32 %v3081_v55, 0.0  ;;  %v3154_v27 = vadd.f32 %v3153_v30, %v5267_v43  ;;  %v3437_v33 = vmax.f32 %v3150_v22, 0.0 }
 0x4a9   : > { %v3478_v13 = vpack.c.bf16 %v3423_v52, %v3412_v26  ;;  %v3447_v8 = vmax.f32 %v3152_v62, 0.0  ;;  %v5840_v26 = vld [vmem:[%s6004_s3 + $0x18] sm:$0xff]  }
 0x4aa   : > { %v3479_v19 = vpack.c.bf16 %v3424_v7, %v3413_v24  ;;  %v3448_v41 = vmax.f32 %v3154_v27, 0.0  ;;  %v3084_v25 = vpop.f32.mrb[148].mxu0 }
 0x4ab   : > { %v3491_v34 = vpack.c.bf16 %v3447_v8, %v3436_v32  ;;  %v3085_v20 = vadd.f32 %v3084_v25, %v5265_v42  ;;  %v3086_v16 = vpop.f32.mrb[149].mxu0 }
 0x4ac   : > { %v3492_v35 = vpack.c.bf16 %v3448_v41, %v3437_v33  ;;  %v3087_v63 = vadd.f32 %v3086_v16, %v5265_v42  ;;  %v3088_v39 = vpop.f32.mrb[150].mxu0  ;;  %v3157_v36 = vpop.f32.mrb[152].mxu1  ;;  %3535 = vmatprep.subr.bf16.mxu0 %v3479_v19 }
 0x4ad   : > { %v3089_v59 = vadd.f32 %v3088_v39, %v5267_v43  ;;  %v3158_v9 = vadd.f32 %v3157_v36, %v5269_v45  ;;  %v3090_v37 = vpop.f32.mrb[151].mxu0  ;;  %v3159_v47 = vpop.f32.mrb[153].mxu1  ;;  %3536 = vmatpush1.bf16.msra.mxu0 %v3478_v13  ;;  %v3434_v15 = vmax.f32 %v3085_v20, 0.0 }
 0x4ae   : > { %v3091_v48 = vadd.f32 %v3090_v37, %v5267_v43  ;;  %v3160_v18 = vadd.f32 %v3159_v47, %v5269_v45  ;;  %v3161_v1 = vpop.f32.mrb[154].mxu1  ;;  %3580 = vmatprep.subr.bf16.mxu1 %v3492_v35  ;;  %v3435_v17 = vmax.f32 %v3087_v63, 0.0 }
 0x4af   : > { %v3445_v2 = vmax.f32 %v3089_v59, 0.0  ;;  %v3162_v3 = vadd.f32 %v3161_v1, %v5271_v46  ;;  %v3163_v5 = vpop.f32.mrb[155].mxu1  ;;  %3581 = vmatpush1.bf16.msra.mxu1 %v3491_v34  ;;  %v3458_v50 = vmax.f32 %v3158_v9, 0.0 }
 0x4b0   : > { %v3446_v28 = vmax.f32 %v3091_v48, 0.0  ;;  %v3164_v10 = vadd.f32 %v3163_v5, %v5271_v46  ;;  %v3459_v56 = vmax.f32 %v3160_v18, 0.0 }
 0x4b1   : > { %v3489_v44 = vpack.c.bf16 %v3445_v2, %v3434_v15  ;;  %v3469_v51 = vmax.f32 %v3162_v3, 0.0 }
 0x4b2   : > { %v3490_v54 = vpack.c.bf16 %v3446_v28, %v3435_v17  ;;  %v3470_v53 = vmax.f32 %v3164_v10, 0.0  ;;  %v3094_v58 = vpop.f32.mrb[152].mxu0 }
 0x4b3   : > { %v3502_v57 = vpack.c.bf16 %v3469_v51, %v3458_v50  ;;  %v3095_v60 = vadd.f32 %v3094_v58, %v5269_v45  ;;  %v3096_v61 = vpop.f32.mrb[153].mxu0 }
 0x4b4   : > { %v3503_v21 = vpack.c.bf16 %v3470_v53, %v3459_v56  ;;  %v3097_v23 = vadd.f32 %v3096_v61, %v5269_v45  ;;  %v3098_v29 = vpop.f32.mrb[154].mxu0  ;;  %v3263_v11 = vpop.f32.mrb[156].mxu1  ;;  %3537 = vmatprep.subr.bf16.mxu0 %v3490_v54 }
 0x4b5   : > { %v3099_v14 = vadd.f32 %v3098_v29, %v5271_v46  ;;  %v3264_v4 = vadd.f32 %v3263_v11, %v5261_v38  ;;  %v3100_v12 = vpop.f32.mrb[155].mxu0  ;;  %v3265_v6 = vpop.f32.mrb[157].mxu1  ;;  %3538 = vmatpush1.bf16.msra.mxu0 %v3489_v44  ;;  %v3456_v52 = vmax.f32 %v3095_v60, 0.0 }
 0x4b6   : > { %v3101_v55 = vadd.f32 %v3100_v12, %v5271_v46  ;;  %v3266_v22 = vadd.f32 %v3265_v6, %v5261_v38  ;;  %v3267_v49 = vpop.f32.mrb[158].mxu1  ;;  %3582 = vmatprep.subr.bf16.mxu1 %v3503_v21  ;;  %v3457_v7 = vmax.f32 %v3097_v23, 0.0 }
 0x4b7   : > { %v3467_v62 = vmax.f32 %v3099_v14, 0.0  ;;  %v3268_v30 = vadd.f32 %v3267_v49, %v5263_v40  ;;  %v3269_v24 = vpop.f32.mrb[159].mxu1  ;;  %3583 = vmatpush1.bf16.msra.mxu1 %v3502_v57  ;;  %v3418_v8 = vmax.f32 %v3264_v4, 0.0 }
 0x4b8   : > { %v3468_v27 = vmax.f32 %v3101_v55, 0.0  ;;  %v3270_v13 = vadd.f32 %v3269_v24, %v5263_v40  ;;  %v3419_v41 = vmax.f32 %v3266_v22, 0.0 }
 0x4b9   : > { %v3500_v32 = vpack.c.bf16 %v3467_v62, %v3456_v52  ;;  %v3429_v19 = vmax.f32 %v3268_v30, 0.0 }
 0x4ba   : > { %v3501_v33 = vpack.c.bf16 %v3468_v27, %v3457_v7  ;;  %v3430_v25 = vmax.f32 %v3270_v13, 0.0  ;;  %v3200_v34 = vpop.f32.mrb[156].mxu0  ;;  %4138 = vmatmul.mubr.msk.bf16.vlgmr.msra.gmra.mrb[180].mxu1 %vm507_vm0, %v5840_v26 }
 0x4bb   : > { %v3484_v20 = vpack.c.bf16 %v3429_v19, %v3418_v8  ;;  %v3201_v16 = vadd.f32 %v3200_v34, %v5261_v38  ;;  %v3202_v35 = vpop.f32.mrb[157].mxu0  ;;  %3696 = vmatprep.mubr.bf16.mxu1 %v4594_v0 }
 0x4bc   : > { %v3485_v63 = vpack.c.bf16 %v3430_v25, %v3419_v41  ;;  %v3203_v39 = vadd.f32 %v3202_v35, %v5261_v38  ;;  %v3204_v36 = vpop.f32.mrb[158].mxu0  ;;  %v3273_v59 = vpop.f32.mrb[160].mxu1  ;;  %3539 = vmatprep.subr.bf16.mxu0 %v3501_v33 }
 0x4bd   : > { %v3205_v9 = vadd.f32 %v3204_v36, %v5263_v40  ;;  %v3274_v37 = vadd.f32 %v3273_v59, %v5265_v42  ;;  %v3206_v47 = vpop.f32.mrb[159].mxu0  ;;  %v3275_v48 = vpop.f32.mrb[161].mxu1  ;;  %3540 = vmatpush1.bf16.msra.mxu0 %v3500_v32  ;;  %v3416_v2 = vmax.f32 %v3201_v16, 0.0 }
 0x4be   : > { %v3207_v18 = vadd.f32 %v3206_v47, %v5263_v40  ;;  %v3276_v1 = vadd.f32 %v3275_v48, %v5265_v42  ;;  %v3277_v15 = vpop.f32.mrb[162].mxu1  ;;  %3664 = vmatprep.subr.bf16.mxu1 %v3485_v63  ;;  %v3417_v28 = vmax.f32 %v3203_v39, 0.0 }
 0x4bf   : > { %v3427_v3 = vmax.f32 %v3205_v9, 0.0  ;;  %v3278_v5 = vadd.f32 %v3277_v15, %v5267_v43  ;;  %v3279_v17 = vpop.f32.mrb[163].mxu1  ;;  %3665 = vmatpush1.bf16.msra.mxu1 %v3484_v20  ;;  %v3440_v51 = vmax.f32 %v3274_v37, 0.0 }
 0x4c0   : > { %v3428_v10 = vmax.f32 %v3207_v18, 0.0  ;;  %v3280_v44 = vadd.f32 %v3279_v17, %v5267_v43  ;;  %4137 = vmatmul.mubr.msk.bf16.vlgmr.msra.gmra.mrb[180].mxu0 %vm507_vm0, %v5840_v26  ;;  %v3441_v53 = vmax.f32 %v3276_v1, 0.0 }
 0x4c1   : > { %v3482_v50 = vpack.c.bf16 %v3427_v3, %v3416_v2  ;;  %v3451_v54 = vmax.f32 %v3278_v5, 0.0  ;;  %3653 = vmatprep.mubr.bf16.mxu0 %v4594_v0 }
 0x4c2   : > { %v3483_v56 = vpack.c.bf16 %v3428_v10, %v3417_v28  ;;  %v3452_v58 = vmax.f32 %v3280_v44, 0.0  ;;  %v3210_v57 = vpop.f32.mrb[160].mxu0 }
 0x4c3   : > { %v3495_v60 = vpack.c.bf16 %v3451_v54, %v3440_v51  ;;  %v3211_v61 = vadd.f32 %v3210_v57, %v5265_v42  ;;  %v3212_v21 = vpop.f32.mrb[161].mxu0 }
 0x4c4   : > { %v3496_v23 = vpack.c.bf16 %v3452_v58, %v3441_v53  ;;  %v3213_v29 = vadd.f32 %v3212_v21, %v5265_v42  ;;  %v3214_v11 = vpop.f32.mrb[162].mxu0  ;;  %v3283_v14 = vpop.f32.mrb[164].mxu1  ;;  %3621 = vmatprep.subr.bf16.mxu0 %v3483_v56 }
 0x4c5   : > { %v3215_v4 = vadd.f32 %v3214_v11, %v5267_v43  ;;  %v3284_v12 = vadd.f32 %v3283_v14, %v5269_v45  ;;  %v3216_v6 = vpop.f32.mrb[163].mxu0  ;;  %v3285_v55 = vpop.f32.mrb[165].mxu1  ;;  %3622 = vmatpush1.bf16.msra.mxu0 %v3482_v50  ;;  %v3438_v62 = vmax.f32 %v3211_v61, 0.0 }
 0x4c6   : > { %v3217_v22 = vadd.f32 %v3216_v6, %v5267_v43  ;;  %v3286_v49 = vadd.f32 %v3285_v55, %v5269_v45  ;;  %v3287_v52 = vpop.f32.mrb[166].mxu1  ;;  %3666 = vmatprep.subr.bf16.mxu1 %v3496_v23  ;;  %v3439_v27 = vmax.f32 %v3213_v29, 0.0 }
 0x4c7   : > { %v3449_v30 = vmax.f32 %v3215_v4, 0.0  ;;  %v3288_v24 = vadd.f32 %v3287_v52, %v5271_v46  ;;  %v3289_v7 = vpop.f32.mrb[167].mxu1  ;;  %3667 = vmatpush1.bf16.msra.mxu1 %v3495_v60  ;;  %v3462_v19 = vmax.f32 %v3284_v12, 0.0 }
 0x4c8   : > { %v3450_v13 = vmax.f32 %v3217_v22, 0.0  ;;  %v3290_v32 = vadd.f32 %v3289_v7, %v5271_v46  ;;  %v3463_v25 = vmax.f32 %v3286_v49, 0.0 }
 0x4c9   : > { %v3493_v8 = vpack.c.bf16 %v3449_v30, %v3438_v62  ;;  %v3473_v33 = vmax.f32 %v3288_v24, 0.0 }
 0x4ca   : > { %v3494_v41 = vpack.c.bf16 %v3450_v13, %v3439_v27  ;;  %v3474_v34 = vmax.f32 %v3290_v32, 0.0  ;;  %v3220_v20 = vpop.f32.mrb[164].mxu0 }
 0x4cb   : > { %v3506_v16 = vpack.c.bf16 %v3473_v33, %v3462_v19  ;;  %v3221_v35 = vadd.f32 %v3220_v20, %v5269_v45  ;;  %v3222_v63 = vpop.f32.mrb[165].mxu0 }
 0x4cc   : > { %v3507_v39 = vpack.c.bf16 %v3474_v34, %v3463_v25  ;;  %v3223_v36 = vadd.f32 %v3222_v63, %v5269_v45  ;;  %v3224_v59 = vpop.f32.mrb[166].mxu0  ;;  %v3389_v9 = vpop.f32.mrb[168].mxu1  ;;  %3623 = vmatprep.subr.bf16.mxu0 %v3494_v41 }
 0x4cd   : > { %v3225_v37 = vadd.f32 %v3224_v59, %v5271_v46  ;;  %v3390_v47 = vadd.f32 %v3389_v9, %v5261_v38  ;;  %v3226_v48 = vpop.f32.mrb[167].mxu0  ;;  %v4302_v18 = vpop.f32.mrb[169].mxu1  ;;  %3624 = vmatpush1.bf16.msra.mxu0 %v3493_v8  ;;  %v3460_v2 = vmax.f32 %v3221_v35, 0.0 }
 0x4ce   : > { %v3227_v1 = vadd.f32 %v3226_v48, %v5271_v46  ;;  %v3392_v15 = vpop.f32.mrb[170].mxu1  ;;  %3668 = vmatprep.subr.bf16.mxu1 %v3507_v39  ;;  %v3461_v28 = vmax.f32 %v3223_v36, 0.0 }
 0x4cf   : > { %v3471_v3 = vmax.f32 %v3225_v37, 0.0  ;;  %v3393_v5 = vadd.f32 %v3392_v15, %v5263_v40  ;;  %3669 = vmatpush1.bf16.msra.mxu1 %v3506_v16  ;;  %v4303_v17 = vpop.f32.mrb[171].mxu1  ;;  %v3422_v50 = vmax.f32 %v3390_v47, 0.0 }
 0x4d0   : > { %v3472_v10 = vmax.f32 %v3227_v1, 0.0  ;;  %4312 = vmatprep.subr.bf16.mxu1 %v4595_v31 }
 0x4d1   : > { %v3504_v44 = vpack.c.bf16 %v3471_v3, %v3460_v2  ;;  %v3433_v51 = vmax.f32 %v3393_v5, 0.0 }
 0x4d2   : > { %v3505_v54 = vpack.c.bf16 %v3472_v10, %v3461_v28  ;;  %v3326_v56 = vpop.f32.mrb[168].mxu0  ;;  %4140 = vmatmul.mubr.msk.bf16.vlgmr.msra.gmra.mrb[184].mxu1 %vm507_vm0, %v5840_v26 }
 0x4d3   : > { %v3488_v53 = vpack.c.bf16 %v3433_v51, %v3422_v50  ;;  %v3327_v58 = vadd.f32 %v3326_v56, %v5261_v38  ;;  %v3328_v57 = vpop.f32.mrb[169].mxu0  ;;  %4318 = vmatprep.mubr.msk.bf16.mxu1 %vm4596_vm1, %v4595_v31 }
 0x4d4   : > { %v3329_v60 = vadd.f32 %v3328_v57, %v5261_v38  ;;  %v3330_v61 = vpop.f32.mrb[170].mxu0  ;;  %v3397_v21 = vpop.f32.mrb[172].mxu1  ;;  %3625 = vmatprep.subr.bf16.mxu0 %v3505_v54 }
 0x4d5   : > { %v3331_v23 = vadd.f32 %v3330_v61, %v5263_v40  ;;  %v3398_v29 = vadd.f32 %v3397_v21, %v5265_v42  ;;  %v3332_v11 = vpop.f32.mrb[171].mxu0  ;;  %v4306_v14 = vpop.f32.mrb[173].mxu1  ;;  %3626 = vmatpush1.bf16.msra.mxu0 %v3504_v44  ;;  %4313 = vmatpush3.bf16.msra.mxu1 %v3488_v53  ;;  %v3420_v6 = vmax.f32 %v3327_v58, 0.0 }
 0x4d6   : > { %v3333_v4 = vadd.f32 %v3332_v11, %v5263_v40  ;;  %v3400_v12 = vpop.f32.mrb[174].mxu1  ;;  %4314 = vmatprep.subr.bf16.mxu1 %v4595_v31  ;;  %v3421_v49 = vmax.f32 %v3329_v60, 0.0  ;;  %v5902_v54 = vpop.permute.xlu0 %3519 }
 0x4d7   : > { %v3431_v55 = vmax.f32 %v3331_v23, 0.0  ;;  %v3401_v38 = vadd.f32 %v3400_v12, %v5267_v43  ;;  %v4307_v22 = vpop.f32.mrb[175].mxu1  ;;  %v3444_v30 = vmax.f32 %v3398_v29, 0.0  ;;  %v5905_v58 = vpop.permute.xlu1 %3524 }
 0x4d8   : > { %v3432_v52 = vmax.f32 %v3333_v4, 0.0  ;;  %4139 = vmatmul.mubr.msk.bf16.vlgmr.msra.gmra.mrb[184].mxu0 %vm507_vm0, %v5840_v26 }
 0x4d9   : > { %v3486_v62 = vpack.c.bf16 %v3431_v55, %v3420_v6  ;;  %v3455_v24 = vmax.f32 %v3401_v38, 0.0  ;;  %3739 = vmatprep.mubr.bf16.mxu0 %v4594_v0 }
 0x4da   : > { %v3487_v7 = vpack.c.bf16 %v3432_v52, %v3421_v49  ;;  %v3336_v40 = vpop.f32.mrb[172].mxu0 }
 0x4db   : > { %v3499_v27 = vpack.c.bf16 %v3455_v24, %v3444_v30  ;;  %v3337_v13 = vadd.f32 %v3336_v40, %v5265_v42  ;;  %v3338_v32 = vpop.f32.mrb[173].mxu0 }
 0x4dc   : > { %v3339_v8 = vadd.f32 %v3338_v32, %v5265_v42  ;;  %v3340_v19 = vpop.f32.mrb[174].mxu0  ;;  %v3405_v33 = vpop.f32.mrb[176].mxu1  ;;  %3707 = vmatprep.subr.bf16.mxu0 %v3487_v7 }
 0x4dd   : > { %v3341_v41 = vadd.f32 %v3340_v19, %v5267_v43  ;;  %v3406_v25 = vadd.f32 %v3405_v33, %v5269_v45  ;;  %v3342_v34 = vpop.f32.mrb[175].mxu0  ;;  %v4310_v20 = vpop.f32.mrb[177].mxu1  ;;  %3708 = vmatpush1.bf16.msra.mxu0 %v3486_v62  ;;  %4315 = vmatpush3.bf16.msra.mxu1 %v3499_v27  ;;  %v3442_v35 = vmax.f32 %v3337_v13, 0.0 }
 0x4de   : > { %v3343_v0 = vadd.f32 %v3342_v34, %v5267_v43  ;;  %v3408_v16 = vpop.f32.mrb[178].mxu1  ;;  %4316 = vmatprep.subr.bf16.mxu1 %v4595_v31  ;;  %v3443_v36 = vmax.f32 %v3339_v8, 0.0 }
 0x4df   : > { %v3453_v63 = vmax.f32 %v3341_v41, 0.0  ;;  %v3409_v42 = vadd.f32 %v3408_v16, %v5271_v46  ;;  %v4311_v39 = vpop.f32.mrb[179].mxu1  ;;  %v3466_v37 = vmax.f32 %v3406_v25, 0.0 }
 0x4e0   : > { %v3454_v59 = vmax.f32 %v3343_v0, 0.0 }
 0x4e1   : > { %v3497_v9 = vpack.c.bf16 %v3453_v63, %v3442_v35  ;;  %v3477_v47 = vmax.f32 %v3409_v42, 0.0 }
 0x4e2   : > { %v3498_v48 = vpack.c.bf16 %v3454_v59, %v3443_v36  ;;  %v3346_v18 = vpop.f32.mrb[176].mxu0 }
 0x4e3   : > { %v3510_v1 = vpack.c.bf16 %v3477_v47, %v3466_v37  ;;  %v3347_v15 = vadd.f32 %v3346_v18, %v5269_v45  ;;  %v3348_v2 = vpop.f32.mrb[177].mxu0 }
 0x4e4   : > { %v3349_v43 = vadd.f32 %v3348_v2, %v5269_v45  ;;  %v3350_v3 = vpop.f32.mrb[178].mxu0  ;;  %3709 = vmatprep.subr.bf16.mxu0 %v3498_v48 }
 0x4e5   : > { %v3351_v31 = vadd.f32 %v3350_v3, %v5271_v46  ;;  %v3352_v5 = vpop.f32.mrb[179].mxu0  ;;  %3710 = vmatpush1.bf16.msra.mxu0 %v3497_v9  ;;  %4317 = vmatpush3.bf16.msra.mxu1 %v3510_v1  ;;  %v3464_v28 = vmax.f32 %v3347_v15, 0.0 }
 0x4e6   : > { %v3353_v17 = vadd.f32 %v3352_v5, %v5271_v46  ;;  %v3465_v44 = vmax.f32 %v3349_v43, 0.0 }
 0x4e7   : > { %v3475_v10 = vmax.f32 %v3351_v31, 0.0 }
 0x4e8   : > { %v3476_v50 = vmax.f32 %v3353_v17, 0.0  ;;  %4319 = vmatmul.mubr.msk.bf16.vlgmr.msra.gmra.mrb[188].mxu1 %vm507_vm0, %v5840_v26 }
 0x4e9   : > { %v3508_v51 = vpack.c.bf16 %v3475_v10, %v3464_v28 }
 0x4ea   : > { %v3509_v45 = vpack.c.bf16 %v3476_v50, %v3465_v44 }
 0x4ec   : > { %3711 = vmatprep.subr.bf16.mxu0 %v3509_v45 }
 0x4ed   : > { %3712 = vmatpush1.bf16.msra.mxu0 %v3508_v51 }
 0x4f0   : > { %4141 = vmatmul.mubr.msk.bf16.vlgmr.msra.gmra.mrb[188].mxu0 %vm507_vm0, %v5840_v26 }
 0x58d   : > { %v3612_v46 = vpop.f32.mrb[180].mxu1 }
 0x58e   : > { %v3613_v56 = vadd.f32 %v3612_v46, %v5902_v54  ;;  %v3614_v53 = vpop.f32.mrb[181].mxu1 }
 0x58f   : > { %v3615_v57 = vadd.f32 %v3614_v53, %v5902_v54  ;;  %v3616_v60 = vpop.f32.mrb[182].mxu1 }
 0x590   : > { %4145 = vst [vmem:[%s5276_s13 + $0x220] sm:$0xff] %v3613_v56  ;;  %v3617_v61 = vadd.f32 %v3616_v60, %v5905_v58  ;;  %v3618_v21 = vpop.f32.mrb[183].mxu1 }
 0x591   : > { %4146 = vst [vmem:[%s5276_s13 + $0x228] sm:$0xff] %v3615_v57  ;;  %v3619_v26 = vadd.f32 %v3618_v21, %v5905_v58 }
 0x592   : > { %4156 = vst [vmem:[%s5276_s13 + $0x278] sm:$0xff] %v3617_v61 }
 0x593   : > { %4157 = vst [vmem:[%s5276_s13 + $0x280] sm:$0xff] %v3619_v26  ;;  %v3569_v23 = vpop.f32.mrb[180].mxu0 }
 0x594   : > { %v3570_v29 = vadd.f32 %v3569_v23, %v5902_v54  ;;  %v3571_v11 = vpop.f32.mrb[181].mxu0 }
 0x595   : > { %v3572_v14 = vadd.f32 %v3571_v11, %v5902_v54  ;;  %v3573_v4 = vpop.f32.mrb[182].mxu0 }
 0x596   : > { %4143 = vst [vmem:[%s5276_s13 + $0x210] sm:$0xff] %v3570_v29  ;;  %v3574_v12 = vadd.f32 %v3573_v4, %v5905_v58  ;;  %v3575_v6 = vpop.f32.mrb[183].mxu0 }
 0x597   : > { %4144 = vst [vmem:[%s5276_s13 + $0x218] sm:$0xff] %v3572_v14  ;;  %v3576_v55 = vadd.f32 %v3575_v6, %v5905_v58 }
 0x598   : > { %4154 = vst [vmem:[%s5276_s13 + $0x268] sm:$0xff] %v3574_v12 }
 0x599   : > { %4155 = vst [vmem:[%s5276_s13 + $0x270] sm:$0xff] %v3576_v55 }
 0x5a5   : > { %v3698_v38 = vpop.f32.mrb[184].mxu1 }
 0x5a6   : > { %v3699_v22 = vadd.f32 %v3698_v38, %v5902_v54  ;;  %v3700_v49 = vpop.f32.mrb[185].mxu1 }
 0x5a7   : > { %v3701_v52 = vadd.f32 %v3700_v49, %v5902_v54  ;;  %v3702_v62 = vpop.f32.mrb[186].mxu1 }
 0x5a8   : > { %4149 = vst [vmem:[%s5276_s13 + $0x240] sm:$0xff] %v3699_v22  ;;  %v3703_v30 = vadd.f32 %v3702_v62, %v5905_v58  ;;  %v3704_v24 = vpop.f32.mrb[187].mxu1 }
 0x5a9   : > { %4150 = vst [vmem:[%s5276_s13 + $0x248] sm:$0xff] %v3701_v52  ;;  %v3705_v7 = vadd.f32 %v3704_v24, %v5905_v58 }
 0x5aa   : > { %4160 = vst [vmem:[%s5276_s13 + $0x298] sm:$0xff] %v3703_v30 }
 0x5ab   : > { %4161 = vst [vmem:[%s5276_s13 + $0x2a0] sm:$0xff] %v3705_v7  ;;  %v3655_v40 = vpop.f32.mrb[184].mxu0 }
 0x5ac   : > { %v3656_v27 = vadd.f32 %v3655_v40, %v5902_v54  ;;  %v3657_v13 = vpop.f32.mrb[185].mxu0 }
 0x5ad   : > { %v3658_v32 = vadd.f32 %v3657_v13, %v5902_v54  ;;  %v3659_v8 = vpop.f32.mrb[186].mxu0 }
 0x5ae   : > { %4147 = vst [vmem:[%s5276_s13 + $0x230] sm:$0xff] %v3656_v27  ;;  %v3660_v19 = vadd.f32 %v3659_v8, %v5905_v58  ;;  %v3661_v33 = vpop.f32.mrb[187].mxu0 }
 0x5af   : > { %4148 = vst [vmem:[%s5276_s13 + $0x238] sm:$0xff] %v3658_v32  ;;  %v3662_v41 = vadd.f32 %v3661_v33, %v5905_v58 }
 0x5b0   : > { %4158 = vst [vmem:[%s5276_s13 + $0x288] sm:$0xff] %v3660_v19 }
 0x5b1   : > { %4159 = vst [vmem:[%s5276_s13 + $0x290] sm:$0xff] %v3662_v41 }
 0x5bb   : > { %v3784_v25 = vpop.f32.mrb[188].mxu1 }
 0x5bc   : > { %v3785_v34 = vadd.f32 %v3784_v25, %v5902_v54  ;;  %v4320_v20 = vpop.f32.mrb[189].mxu1 }
 0x5bd   : > { %v3787_v0 = vpop.f32.mrb[190].mxu1 }
 0x5be   : > { %4153 = vst [vmem:[%s5276_s13 + $0x260] sm:$0xff] %v3785_v34  ;;  %v3788_v16 = vadd.f32 %v3787_v0, %v5905_v58  ;;  %v4321_v35 = vpop.f32.mrb[191].mxu1 }
 0x5c0   : > { %4164 = vst [vmem:[%s5276_s13 + $0x2b8] sm:$0xff] %v3788_v16 }
 0x5c3   : > { %v3741_v63 = vpop.f32.mrb[188].mxu0 }
 0x5c4   : > { %v3742_v42 = vadd.f32 %v3741_v63, %v5902_v54  ;;  %v3743_v39 = vpop.f32.mrb[189].mxu0 }
 0x5c5   : > { %v3744_v36 = vadd.f32 %v3743_v39, %v5902_v54  ;;  %v3745_v59 = vpop.f32.mrb[190].mxu0 }
 0x5c6   : > { %4151 = vst [vmem:[%s5276_s13 + $0x250] sm:$0xff] %v3742_v42  ;;  %v3746_v9 = vadd.f32 %v3745_v59, %v5905_v58  ;;  %v3747_v37 = vpop.f32.mrb[191].mxu0 }
 0x5c7   : > { %4152 = vst [vmem:[%s5276_s13 + $0x258] sm:$0xff] %v3744_v36  ;;  %v3748_v47 = vadd.f32 %v3747_v37, %v5905_v58 }
 0x5c8   : > { %4162 = vst [vmem:[%s5276_s13 + $0x2a8] sm:$0xff] %v3746_v9 }
 0x5c9   : > { %4163 = vst [vmem:[%s5276_s13 + $0x2b0] sm:$0xff] %v3748_v47 }
 0x5ca   : > { %4535 = shalt.err (!%p4532_p3)
}
 0x5cb   : > { %s4536_s13 = scalar_lea.hbm %s5949_s15, 11264  ;;  %s4540_s17 = scalar_lea.hbm %s6006_s5, 22528 }
 0x5cc   : > { %p4537_p5 = scmp.ne.s32.totalorder %s5949_s15, %s4536_s13  ;;  %p4541_p9 = scmp.lt.u32.totalorder %s5949_s15, %s6006_s5 }
 0x5cd   : > { %p4542_p0 = scmp.lt.u32.totalorder %s4540_s17, %s4536_s13  ;;  %p4544_p6 = scmp.lt.u32.totalorder %s4536_s13, %s5949_s15 }
 0x5ce   : > { %p4538_p7 = pnand %p4537_p5, %p6013_p11 }
 0x5cf   : > { %p4543_p2 = por %p4542_p0, %p4541_p9 }
 0x5d0   : > { %p4539_p8 = pneg %p4538_p7 }
 0x5d1   : > { %p4545_p12 = por %p4544_p6, %p4543_p2 }
 0x5d3   : > { %p4546_p13 = pnand %p4545_p12, %p4539_p8 }
 0x5d5   : > { %4549 = shalt.err (!%p4546_p13)
}
 0x5d6   : > { %s4598_s28 = smov 1408   ;;  %s4599_s12 = smov 2816  }
 0x5d7   : > { %s4600_s14 = smov 88  }
 0x5d8   : > { %4327 = dma.vmem_to_hbm [thread:$0]  (%p6013_p11), %s5953_s11, 11264, %s5949_s15, %s3815_s22, %s4598_s28, %s4599_s12, %s4600_s14  }
 0x5d9 PF: > { %s3843_s6 = sand.u32 1, %s4576_s18   ;;  %p6014_p4 = scmp.ne.s32.totalorder %s6010_s30, 0 }
 0x5da   : > { %p6015_p10 = scmp.ge.s32.totalorder %s4588_s21, 2  ;;  %s3844_s8 = scalar_lea.sflag [#allocation4], %s3843_s6 }
 0x5dc   : > { %p4334_p1 = pnand %p6015_p10, %p6014_p4 }
 0x5de   : > { %4571 = dma.done.wait (!%p4334_p1), %s3844_s8, 11264  }
 0x5df   : > { %4573 = vsyncadd (!%p4334_p1), %s3844_s8, 4294956032  ;;  %p18_p3 = scmp.ge.s32.totalorder %s4656_s24, 4   ;;  %s6016_s18 = smov %s4580_s19 }
 0x5e0   : > { %s6017_s19 = smov %s4584_s20  ;;  %s6018_s20 = smov %s4668_s27 }
 0x5e1   : > { %s6019_s21 = smov %s4656_s24  ;;  %20 = sbr.rel (!%p18_p3) target bundleno = 5 (0x5), region = 100 }
 0x5e8   :  { %3849 = vsyncpa [#allocation3], 1 }
 0x5e9   :  { %3851 = vsyncpa [#allocation3 + $0x1], 1 }
 0x5ea   :  { %3852 = vsyncpa [#allocation4], 1 }
 0x5eb   :  { %3854 = vsyncpa [#allocation4 + $0x1], 1 }

</bundles_post_ra>
